<compile_context>
chip_gen: v7x
topology: tpu7x:2x2x1
jax: 0.10.0
libtpu: 0.0.40
codegen_flags: <defaults>
</compile_context>

<pallas_src>
import jax
import jax.numpy as jnp
from jax.experimental import pallas as pl
from jax.experimental.pallas import tpu as pltpu


# (dh, dw) tap order matches w.reshape(9, Cin, Cout) of an HWIO (3,3,Cin,Cout) weight.
_TAPS = tuple((dh, dw) for dh in range(3) for dw in range(3))


# ----------------------------------------------------------------------------
# In-kernel helpers (NHWC-style compute layout: channels on the lane axis)
# ----------------------------------------------------------------------------
def _zero_border(pad_ref, H, W):
    """Zero only the 1-pixel border of a [H+2, W+2, C] pad scratch.

    The interior is fully overwritten right afterwards each grid step, so a
    full-buffer memset would just double the store traffic on the pad buffer.
    """
    C = pad_ref.shape[-1]
    row = jnp.zeros((1, W + 2, C), jnp.float32)
    col = jnp.zeros((H + 2, 1, C), jnp.float32)
    pad_ref[0:1, :, :] = row
    pad_ref[H + 1:H + 2, :, :] = row
    pad_ref[:, 0:1, :] = col
    pad_ref[:, W + 1:W + 2, :] = col


def _conv3x3_taps(pad_ref, w_ref):
    """3x3 'same' conv as 9 tap-wise MXU matmuls (no materialized im2col).

    pad_ref: [H+2, W+2, Cin] f32 (zero border), w_ref: [9, Cin, Cout] bf16.
    Returns [H*W, Cout] f32 (pre-bias, pre-activation).
    """
    Hp2, Wp2, Cin = pad_ref.shape
    H, W = Hp2 - 2, Wp2 - 2
    Cout = w_ref.shape[-1]
    acc = jnp.zeros((H * W, Cout), jnp.float32)
    for tap, (dh, dw) in enumerate(_TAPS):
        xs = pad_ref[dh:dh + H, dw:dw + W, :].reshape(H * W, Cin)
        acc = acc + jnp.dot(xs.astype(jnp.bfloat16), w_ref[tap],
                            preferred_element_type=jnp.float32)
    return acc


# ----------------------------------------------------------------------------
# Fused kernels
# ----------------------------------------------------------------------------
def _depth_fused_kernel(x_ref, w1_ref, b1_ref, w2_ref, b2_ref, o_ref,
                        xpad_ref, hpad_ref):
    """Depth net for one batch image: conv3x3 -> ReLU -> conv3x3 -> sigmoid.

    x_ref : [1, H, W, Cin] f32        o_ref : [1, 1, H, W] f32 (lane-dense NCHW)
    w1_ref: [9, Cin, C1]  bf16        b1_ref: [1, C1] f32
    w2_ref: [9, C1]       f32 (VPU)   b2_ref: [1, 1] f32
    xpad_ref / hpad_ref: VMEM scratch [H+2, W+2, Cin / C1] f32
    """
    _, H, W, _ = x_ref.shape
    C1 = hpad_ref.shape[-1]

    _zero_border(xpad_ref, H, W)
    xpad_ref[1:H + 1, 1:W + 1, :] = x_ref[0]

    # conv1 + bias + ReLU (9 tap-wise MXU matmuls, bf16 in / f32 acc)
    h = _conv3x3_taps(xpad_ref, w1_ref)
    h = jnp.maximum(h + b1_ref[...], 0.0)                       # [H*W, C1]

    # Hidden activation stays in VMEM scratch -- never touches HBM.
    _zero_border(hpad_ref, H, W)
    hpad_ref[1:H + 1, 1:W + 1, :] = h.reshape(H, W, C1)

    # conv2 with a single output channel: keep it off the MXU (N=1 would waste
    # >99% of the systolic array).  9 VPU multiply-accumulates over [H, W, C1]
    # and one lane reduction; the reduced [H, W] result has W on lanes, so the
    # final NCHW store is lane dense.
    acc = hpad_ref[0:H, 0:W, :] * w2_ref[0:1, :]
    for tap, (dh, dw) in enumerate(_TAPS[1:], start=1):
        acc = acc + hpad_ref[dh:dh + H, dw:dw + W, :] * w2_ref[tap:tap + 1, :]
    d = jnp.sum(acc, axis=-1) + b2_ref[...]                     # [H, W]
    o_ref[...] = jax.nn.sigmoid(d).reshape(1, 1, H, W)


def _make_pose_kernel(n_imgs):
    def kernel(*args):
        """Pose net for one batch element:
           conv3x3 -> ReLU -> conv3x3 -> ReLU -> global-avg-pool -> FC (x0.01).

        img refs : n_imgs x [1, H, W, 3] f32     o_ref : [1, n*6] f32
        w1_ref: [9, Cin, C1] bf16   b1_ref: [1, C1] f32
        w2_ref: [9, C1, C2]  bf16   b2_ref: [1, C2] f32
        fcw_ref: [C2, n*6] f32      fcb_ref: [1, n*6] f32
        """
        img_refs = args[:n_imgs]
        (w1_ref, b1_ref, w2_ref, b2_ref, fcw_ref, fcb_ref,
         o_ref, xpad_ref, hpad_ref) = args[n_imgs:]
        _, H, W, _ = img_refs[0].shape
        C1 = hpad_ref.shape[-1]

        _zero_border(xpad_ref, H, W)
        # Channel-concat target + contexts in VMEM (no wrapper-side HBM concat).
        if n_imgs == 1:
            xin = img_refs[0][0]
        else:
            xin = jnp.concatenate([r[0] for r in img_refs], axis=-1)
        xpad_ref[1:H + 1, 1:W + 1, :] = xin

        h1 = _conv3x3_taps(xpad_ref, w1_ref)
        h1 = jnp.maximum(h1 + b1_ref[...], 0.0)                  # [H*W, C1]

        _zero_border(hpad_ref, H, W)
        hpad_ref[1:H + 1, 1:W + 1, :] = h1.reshape(H, W, C1)

        h2 = _conv3x3_taps(hpad_ref, w2_ref)
        h2 = jnp.maximum(h2 + b2_ref[...], 0.0)                  # [H*W, C2]

        # Global average pool + FC fused right behind conv2 (feature map never
        # leaves VMEM).
        pooled = jnp.sum(h2, axis=0, keepdims=True) * (1.0 / (H * W))  # [1, C2]
        vec = jnp.dot(pooled, fcw_ref[...], preferred_element_type=jnp.float32)
        o_ref[...] = 0.01 * (vec + fcb_ref[...])                 # [1, n*6]
    return kernel


# ----------------------------------------------------------------------------
# pallas_call wrappers (grid over batch, weights resident, VMEM pad scratch)
# ----------------------------------------------------------------------------
_PARALLEL = pltpu.CompilerParams(dimension_semantics=("parallel",))


def fused_depth_net(x_nhwc, w1, b1, w2, b2):
    """x [B,H,W,3] NHWC -> inverse depth [B,1,H,W] (lane-dense NCHW output)."""
    B, H, W, Cin = x_nhwc.shape
    C1 = w1.shape[-1]
    return pl.pallas_call(
        _depth_fused_kernel,
        out_shape=jax.ShapeDtypeStruct((B, 1, H, W), jnp.float32),
        grid=(B,),
        in_specs=[
            pl.BlockSpec((1, H, W, Cin), lambda b: (b, 0, 0, 0)),
            pl.BlockSpec((9, Cin, C1), lambda b: (0, 0, 0)),
            pl.BlockSpec((1, C1), lambda b: (0, 0)),
            pl.BlockSpec((9, C1), lambda b: (0, 0)),
            pl.BlockSpec((1, 1), lambda b: (0, 0)),
        ],
        out_specs=pl.BlockSpec((1, 1, H, W), lambda b: (b, 0, 0, 0)),
        scratch_shapes=[
            pltpu.VMEM((H + 2, W + 2, Cin), jnp.float32),
            pltpu.VMEM((H + 2, W + 2, C1), jnp.float32),
        ],
        compiler_params=_PARALLEL,
    )(x_nhwc,
      w1.reshape(9, Cin, C1).astype(jnp.bfloat16),   # MXU operand -> bf16
      b1.reshape(1, C1),
      w2.reshape(9, C1),                             # VPU per-tap weights, f32
      b2.reshape(1, 1))


def fused_pose_net(images_nhwc, w1, b1, w2, b2, fc_w, fc_b):
    """images_nhwc: list of [B,H,W,3] (target first) -> pose vectors [B, n*6]."""
    n_imgs = len(images_nhwc)
    B, H, W, _ = images_nhwc[0].shape
    Cin = 3 * n_imgs
    C1 = w1.shape[-1]
    C2 = w2.shape[-1]
    n6 = fc_w.shape[-1]
    img_spec = pl.BlockSpec((1, H, W, 3), lambda b: (b, 0, 0, 0))
    return pl.pallas_call(
        _make_pose_kernel(n_imgs),
        out_shape=jax.ShapeDtypeStruct((B, n6), jnp.float32),
        grid=(B,),
        in_specs=[img_spec] * n_imgs + [
            pl.BlockSpec((9, Cin, C1), lambda b: (0, 0, 0)),
            pl.BlockSpec((1, C1), lambda b: (0, 0)),
            pl.BlockSpec((9, C1, C2), lambda b: (0, 0, 0)),
            pl.BlockSpec((1, C2), lambda b: (0, 0)),
            pl.BlockSpec((C2, n6), lambda b: (0, 0)),
            pl.BlockSpec((1, n6), lambda b: (0, 0)),
        ],
        out_specs=pl.BlockSpec((1, n6), lambda b: (b, 0)),
        scratch_shapes=[
            pltpu.VMEM((H + 2, W + 2, Cin), jnp.float32),
            pltpu.VMEM((H + 2, W + 2, C1), jnp.float32),
        ],
        compiler_params=_PARALLEL,
    )(*images_nhwc,
      w1.reshape(9, Cin, C1).astype(jnp.bfloat16),
      b1.reshape(1, C1),
      w2.reshape(9, C1, C2).astype(jnp.bfloat16),
      b2.reshape(1, C2),
      fc_w,
      fc_b.reshape(1, n6))


# ----------------------------------------------------------------------------
# Pose utilities (packnet_sfm pose_utils semantics) -- tiny glue, plain JAX
# ----------------------------------------------------------------------------
def euler2mat(angle):
    """angle [B,3] (x,y,z) -> rotation matrix [B,3,3] = Rx @ Ry @ Rz."""
    x, y, z = angle[:, 0], angle[:, 1], angle[:, 2]
    zeros = jnp.zeros_like(z)
    ones = jnp.ones_like(z)

    cz, sz = jnp.cos(z), jnp.sin(z)
    zmat = jnp.stack([cz, -sz, zeros,
                      sz, cz, zeros,
                      zeros, zeros, ones], axis=1).reshape(-1, 3, 3)

    cy, sy = jnp.cos(y), jnp.sin(y)
    ymat = jnp.stack([cy, zeros, sy,
                      zeros, ones, zeros,
                      -sy, zeros, cy], axis=1).reshape(-1, 3, 3)

    cx, sx = jnp.cos(x), jnp.sin(x)
    xmat = jnp.stack([ones, zeros, zeros,
                      zeros, cx, -sx,
                      zeros, sx, cx], axis=1).reshape(-1, 3, 3)

    return xmat @ ymat @ zmat


def pose_from_vec_euler(vec):
    """vec [B,6] (tx,ty,tz,rx,ry,rz) -> homogeneous pose matrix [B,4,4]."""
    B = vec.shape[0]
    t = vec[:, :3]
    rot = euler2mat(vec[:, 3:])                                  # [B,3,3]
    top = jnp.concatenate([rot, t[:, :, None]], axis=2)          # [B,3,4]
    bottom = jnp.tile(jnp.array([[[0., 0., 0., 1.]]], jnp.float32), (B, 1, 1))
    return jnp.concatenate([top, bottom], axis=1)                # [B,4,4]


# ----------------------------------------------------------------------------
# SfmModel with synthetic Pallas depth_net / pose_net
# ----------------------------------------------------------------------------
class SfmModelPallas:
    def __init__(self, rotation_mode="euler", flip_lr_prob=0.0,
                 upsample_depth_maps=False, stage=1, num_context=2,
                 hidden=16, seed=0):
        assert rotation_mode == "euler"
        self.rotation_mode = rotation_mode
        self.flip_lr_prob = flip_lr_prob
        self.upsample_depth_maps = upsample_depth_maps
        self.stage = stage
        self.num_context = num_context
        self.training = False
        self._logs, self._losses = {}, {}
        self._network_requirements = {"depth_net": True, "pose_net": True}
        self._train_requirements = {"gt_depth": False, "gt_pose": False,
                                    "FDA_target": False,
                                    "pseudo_inv_depth": False}

        k = jax.random.split(jax.random.PRNGKey(seed), 8)
        s = 0.1
        # depth_net: conv(3->hidden) ReLU, conv(hidden->1) sigmoid
        self.d_w1 = s * jax.random.normal(k[0], (3, 3, 3, hidden), jnp.float32)
        self.d_b1 = jnp.zeros((hidden,), jnp.float32)
        self.d_w2 = s * jax.random.normal(k[1], (3, 3, hidden, 1), jnp.float32)
        self.d_b2 = jnp.zeros((1,), jnp.float32)
        # pose_net: conv(3*(1+N)->hidden) ReLU, conv(hidden->2*hidden) ReLU,
        #           global avg pool, fc(2*hidden -> N*6), scaled by 0.01
        cin = 3 * (1 + num_context)
        self.p_w1 = s * jax.random.normal(k[2], (3, 3, cin, hidden), jnp.float32)
        self.p_b1 = jnp.zeros((hidden,), jnp.float32)
        self.p_w2 = s * jax.random.normal(k[3], (3, 3, hidden, 2 * hidden),
                                          jnp.float32)
        self.p_b2 = jnp.zeros((2 * hidden,), jnp.float32)
        self.p_fc_w = s * jax.random.normal(k[4], (2 * hidden, num_context * 6),
                                            jnp.float32)
        self.p_fc_b = jnp.zeros((num_context * 6,), jnp.float32)

    # ---- depth path -------------------------------------------------------
    def compute_inv_depths(self, image):
        """image [B,3,H,W] NCHW -> list of inv depth maps [B,1,H,W]."""
        # flip_model (random LR flip) and interpolate_scales are no-ops here
        # (flip_lr_prob=0.0, eval mode, upsample_depth_maps=False).
        x = jnp.transpose(image, (0, 2, 3, 1))                   # NCHW -> NHWC
        inv_depth = fused_depth_net(x, self.d_w1, self.d_b1,
                                    self.d_w2, self.d_b2)        # [B,1,H,W]
        return [inv_depth]                                       # make_list

    # ---- pose path --------------------------------------------------------
    def compute_poses(self, image, contexts):
        """image [B,3,H,W], contexts list of [B,3,H,W] -> list of [B,4,4]."""
        B = image.shape[0]
        n = len(contexts)
        imgs_nhwc = [jnp.transpose(t, (0, 2, 3, 1))
                     for t in [image] + list(contexts)]
        vec = fused_pose_net(imgs_nhwc, self.p_w1, self.p_b1,
                             self.p_w2, self.p_b2,
                             self.p_fc_w, self.p_fc_b)           # [B, n*6]
        vec = vec.reshape(B, n, 6)
        return [pose_from_vec_euler(vec[:, i]) for i in range(n)]

    # ---- forward ----------------------------------------------------------
    def forward(self, batch):
        # stage==3 only toggles BatchNorm eval + no_grad in the reference;
        # there are no BN layers / grads here, so the compute is identical.
        inv_depths = self.compute_inv_depths(batch["rgb"])
        pose = None
        if self.stage != 2:
            if "rgb_context" in batch:
                pose = self.compute_poses(batch["rgb"], batch["rgb_context"])
        return {"inv_depths": inv_depths, "poses": pose}

    __call__ = forward


# ----------------------------------------------------------------------------
if __name__ == "__main__":
    key = jax.random.PRNGKey(0)
    k_rgb, k_c0, k_c1 = jax.random.split(key, 3)
    B, C, H, W = 2, 3, 16, 16
    rgb = jax.random.uniform(k_rgb, (B, C, H, W), jnp.float32)
    rgb_context = [jax.random.uniform(k_c0, (B, C, H, W), jnp.float32),
                   jax.random.uniform(k_c1, (B, C, H, W), jnp.float32)]

    model = SfmModelPallas(rotation_mode="euler", flip_lr_prob=0.0,
                           upsample_depth_maps=False, stage=1,
                           num_context=len(rgb_context), hidden=16, seed=0)

    out = model({"rgb": rgb, "rgb_context": rgb_context})

    inv_depth = out["inv_depths"][0]
    jax.block_until_ready(inv_depth)
    for p in out["poses"]:
        jax.block_until_ready(p)

    assert inv_depth.shape == (B, 1, H, W)
    assert bool(jnp.all(jnp.isfinite(inv_depth)))
    assert bool(jnp.all((inv_depth > 0.0) & (inv_depth < 1.0)))  # sigmoid range
    assert len(out["poses"]) == 2 and out["poses"][0].shape == (B, 4, 4)
    assert all(bool(jnp.all(jnp.isfinite(p))) for p in out["poses"])
    print("KERNEL_OK")
</pallas_src>

<mosaic_0001>
module attributes {stable_mosaic.version = 11 : i64} {
  func.func @_depth_fused_kernel(%arg0: i32, %arg1: memref<1x16x16x3xf32, #tpu.memory_space<vmem>>, %arg2: memref<9x3x16xbf16, #tpu.memory_space<vmem>>, %arg3: memref<1x16xf32, #tpu.memory_space<vmem>>, %arg4: memref<9x16xf32, #tpu.memory_space<vmem>>, %arg5: memref<1x1xf32, #tpu.memory_space<vmem>>, %arg6: memref<1x1x16x16xf32, #tpu.memory_space<vmem>>, %arg7: memref<18x18x3xf32, #tpu.memory_space<vmem>>, %arg8: memref<18x18x16xf32, #tpu.memory_space<vmem>>) attributes {dimension_semantics = [#tpu.dimension_semantics<parallel>], iteration_bounds = array<i64: 2>, scalar_prefetch = 0 : i64, scratch_operands = 2 : i64, tpu.core_type = #tpu.core_type<tc>, window_params = [{transform_indices = @transform_0, window_bounds = array<i64: 1, 16, 16, 3>}, {pipeline_mode = #tpu.pipeline_mode<synchronous>, transform_indices = @transform_1, window_bounds = array<i64: 9, 3, 16>}, {pipeline_mode = #tpu.pipeline_mode<synchronous>, transform_indices = @transform_2, window_bounds = array<i64: 1, 16>}, {pipeline_mode = #tpu.pipeline_mode<synchronous>, transform_indices = @transform_3, window_bounds = array<i64: 9, 16>}, {pipeline_mode = #tpu.pipeline_mode<synchronous>, transform_indices = @transform_4, window_bounds = array<i64: 1, 1>}, {transform_indices = @transform_5, window_bounds = array<i64: 1, 1, 16, 16>}]} {
    %cst = arith.constant 0.000000e+00 : f32
    %0 = vector.broadcast %cst : f32 to vector<1x18x3xf32>
    %cst_0 = arith.constant 0.000000e+00 : f32
    %1 = vector.broadcast %cst_0 : f32 to vector<18x1x3xf32>
    %c0 = arith.constant 0 : index
    %c0_1 = arith.constant 0 : index
    %c0_2 = arith.constant 0 : index
    %2 = vector.load %arg7[%c0, %c0_1, %c0_2] : memref<18x18x3xf32, #tpu.memory_space<vmem>>, vector<1x18x3xf32>
    tpu.vector_store %arg7[%c0, %c0_1, %c0_2], %0 {strides = array<i32>} : memref<18x18x3xf32, #tpu.memory_space<vmem>>, vector<1x18x3xf32>,
    %c17 = arith.constant 17 : index
    %c0_3 = arith.constant 0 : index
    %c0_4 = arith.constant 0 : index
    %3 = vector.load %arg7[%c17, %c0_3, %c0_4] : memref<18x18x3xf32, #tpu.memory_space<vmem>>, vector<1x18x3xf32>
    tpu.vector_store %arg7[%c17, %c0_3, %c0_4], %0 {strides = array<i32>} : memref<18x18x3xf32, #tpu.memory_space<vmem>>, vector<1x18x3xf32>,
    %c0_5 = arith.constant 0 : index
    %c0_6 = arith.constant 0 : index
    %c0_7 = arith.constant 0 : index
    %4 = vector.load %arg7[%c0_5, %c0_6, %c0_7] : memref<18x18x3xf32, #tpu.memory_space<vmem>>, vector<18x1x3xf32>
    tpu.vector_store %arg7[%c0_5, %c0_6, %c0_7], %1 {strides = array<i32>} : memref<18x18x3xf32, #tpu.memory_space<vmem>>, vector<18x1x3xf32>,
    %c0_8 = arith.constant 0 : index
    %c17_9 = arith.constant 17 : index
    %c0_10 = arith.constant 0 : index
    %5 = vector.load %arg7[%c0_8, %c17_9, %c0_10] : memref<18x18x3xf32, #tpu.memory_space<vmem>>, vector<18x1x3xf32>
    tpu.vector_store %arg7[%c0_8, %c17_9, %c0_10], %1 {strides = array<i32>} : memref<18x18x3xf32, #tpu.memory_space<vmem>>, vector<18x1x3xf32>,
    %c0_11 = arith.constant 0 : index
    %c0_12 = arith.constant 0 : index
    %c0_13 = arith.constant 0 : index
    %c0_14 = arith.constant 0 : index
    %6 = vector.load %arg1[%c0_11, %c0_12, %c0_13, %c0_14] : memref<1x16x16x3xf32, #tpu.memory_space<vmem>>, vector<1x16x16x3xf32>
    %7 = vector.shape_cast %6 : vector<1x16x16x3xf32> to vector<16x16x3xf32>
    %c1 = arith.constant 1 : index
    %c1_15 = arith.constant 1 : index
    %c0_16 = arith.constant 0 : index
    %8 = vector.load %arg7[%c1, %c1_15, %c0_16] : memref<18x18x3xf32, #tpu.memory_space<vmem>>, vector<16x16x3xf32>
    tpu.vector_store %arg7[%c1, %c1_15, %c0_16], %7 {strides = array<i32>} : memref<18x18x3xf32, #tpu.memory_space<vmem>>, vector<16x16x3xf32>,
    %cst_17 = arith.constant 0.000000e+00 : f32
    %9 = vector.broadcast %cst_17 : f32 to vector<256x16xf32>
    %c0_18 = arith.constant 0 : index
    %c0_19 = arith.constant 0 : index
    %c0_20 = arith.constant 0 : index
    %10 = vector.load %arg7[%c0_18, %c0_19, %c0_20] : memref<18x18x3xf32, #tpu.memory_space<vmem>>, vector<16x16x3xf32>
    %11 = vector.shape_cast %10 : vector<16x16x3xf32> to vector<256x3xf32>
    %12 = arith.truncf %11 : vector<256x3xf32> to vector<256x3xbf16>
    %c0_21 = arith.constant 0 : index
    %c0_22 = arith.constant 0 : index
    %c0_23 = arith.constant 0 : index
    %13 = vector.load %arg2[%c0_21, %c0_22, %c0_23] : memref<9x3x16xbf16, #tpu.memory_space<vmem>>, vector<1x3x16xbf16>
    %14 = vector.shape_cast %13 : vector<1x3x16xbf16> to vector<3x16xbf16>
    %cst_24 = arith.constant dense<0.000000e+00> : vector<256x16xf32>
    %15 = tpu.matmul %12, %14, %cst_24 {dimension_numbers = #tpu.dot_dimension_numbers<[1], [0], [0], [1], [0, 0, 1, 1], [], []>} : vector<256x3xbf16>, vector<3x16xbf16>, vector<256x16xf32> -> vector<256x16xf32>
    %16 = arith.addf %9, %15 : vector<256x16xf32>
    %c0_25 = arith.constant 0 : index
    %c1_26 = arith.constant 1 : index
    %c0_27 = arith.constant 0 : index
    %17 = vector.load %arg7[%c0_25, %c1_26, %c0_27] : memref<18x18x3xf32, #tpu.memory_space<vmem>>, vector<16x16x3xf32>
    %18 = vector.shape_cast %17 : vector<16x16x3xf32> to vector<256x3xf32>
    %19 = arith.truncf %18 : vector<256x3xf32> to vector<256x3xbf16>
    %c1_28 = arith.constant 1 : index
    %c0_29 = arith.constant 0 : index
    %c0_30 = arith.constant 0 : index
    %20 = vector.load %arg2[%c1_28, %c0_29, %c0_30] : memref<9x3x16xbf16, #tpu.memory_space<vmem>>, vector<1x3x16xbf16>
    %21 = vector.shape_cast %20 : vector<1x3x16xbf16> to vector<3x16xbf16>
    %cst_31 = arith.constant dense<0.000000e+00> : vector<256x16xf32>
    %22 = tpu.matmul %19, %21, %cst_31 {dimension_numbers = #tpu.dot_dimension_numbers<[1], [0], [0], [1], [0, 0, 1, 1], [], []>} : vector<256x3xbf16>, vector<3x16xbf16>, vector<256x16xf32> -> vector<256x16xf32>
    %23 = arith.addf %16, %22 : vector<256x16xf32>
    %c0_32 = arith.constant 0 : index
    %c2 = arith.constant 2 : index
    %c0_33 = arith.constant 0 : index
    %24 = vector.load %arg7[%c0_32, %c2, %c0_33] : memref<18x18x3xf32, #tpu.memory_space<vmem>>, vector<16x16x3xf32>
    %25 = vector.shape_cast %24 : vector<16x16x3xf32> to vector<256x3xf32>
    %26 = arith.truncf %25 : vector<256x3xf32> to vector<256x3xbf16>
    %c2_34 = arith.constant 2 : index
    %c0_35 = arith.constant 0 : index
    %c0_36 = arith.constant 0 : index
    %27 = vector.load %arg2[%c2_34, %c0_35, %c0_36] : memref<9x3x16xbf16, #tpu.memory_space<vmem>>, vector<1x3x16xbf16>
    %28 = vector.shape_cast %27 : vector<1x3x16xbf16> to vector<3x16xbf16>
    %cst_37 = arith.constant dense<0.000000e+00> : vector<256x16xf32>
    %29 = tpu.matmul %26, %28, %cst_37 {dimension_numbers = #tpu.dot_dimension_numbers<[1], [0], [0], [1], [0, 0, 1, 1], [], []>} : vector<256x3xbf16>, vector<3x16xbf16>, vector<256x16xf32> -> vector<256x16xf32>
    %30 = arith.addf %23, %29 : vector<256x16xf32>
    %c1_38 = arith.constant 1 : index
    %c0_39 = arith.constant 0 : index
    %c0_40 = arith.constant 0 : index
    %31 = vector.load %arg7[%c1_38, %c0_39, %c0_40] : memref<18x18x3xf32, #tpu.memory_space<vmem>>, vector<16x16x3xf32>
    %32 = vector.shape_cast %31 : vector<16x16x3xf32> to vector<256x3xf32>
    %33 = arith.truncf %32 : vector<256x3xf32> to vector<256x3xbf16>
    %c3 = arith.constant 3 : index
    %c0_41 = arith.constant 0 : index
    %c0_42 = arith.constant 0 : index
    %34 = vector.load %arg2[%c3, %c0_41, %c0_42] : memref<9x3x16xbf16, #tpu.memory_space<vmem>>, vector<1x3x16xbf16>
    %35 = vector.shape_cast %34 : vector<1x3x16xbf16> to vector<3x16xbf16>
    %cst_43 = arith.constant dense<0.000000e+00> : vector<256x16xf32>
    %36 = tpu.matmul %33, %35, %cst_43 {dimension_numbers = #tpu.dot_dimension_numbers<[1], [0], [0], [1], [0, 0, 1, 1], [], []>} : vector<256x3xbf16>, vector<3x16xbf16>, vector<256x16xf32> -> vector<256x16xf32>
    %37 = arith.addf %30, %36 : vector<256x16xf32>
    %c1_44 = arith.constant 1 : index
    %c1_45 = arith.constant 1 : index
    %c0_46 = arith.constant 0 : index
    %38 = vector.load %arg7[%c1_44, %c1_45, %c0_46] : memref<18x18x3xf32, #tpu.memory_space<vmem>>, vector<16x16x3xf32>
    %39 = vector.shape_cast %38 : vector<16x16x3xf32> to vector<256x3xf32>
    %40 = arith.truncf %39 : vector<256x3xf32> to vector<256x3xbf16>
    %c4 = arith.constant 4 : index
    %c0_47 = arith.constant 0 : index
    %c0_48 = arith.constant 0 : index
    %41 = vector.load %arg2[%c4, %c0_47, %c0_48] : memref<9x3x16xbf16, #tpu.memory_space<vmem>>, vector<1x3x16xbf16>
    %42 = vector.shape_cast %41 : vector<1x3x16xbf16> to vector<3x16xbf16>
    %cst_49 = arith.constant dense<0.000000e+00> : vector<256x16xf32>
    %43 = tpu.matmul %40, %42, %cst_49 {dimension_numbers = #tpu.dot_dimension_numbers<[1], [0], [0], [1], [0, 0, 1, 1], [], []>} : vector<256x3xbf16>, vector<3x16xbf16>, vector<256x16xf32> -> vector<256x16xf32>
    %44 = arith.addf %37, %43 : vector<256x16xf32>
    %c1_50 = arith.constant 1 : index
    %c2_51 = arith.constant 2 : index
    %c0_52 = arith.constant 0 : index
    %45 = vector.load %arg7[%c1_50, %c2_51, %c0_52] : memref<18x18x3xf32, #tpu.memory_space<vmem>>, vector<16x16x3xf32>
    %46 = vector.shape_cast %45 : vector<16x16x3xf32> to vector<256x3xf32>
    %47 = arith.truncf %46 : vector<256x3xf32> to vector<256x3xbf16>
    %c5 = arith.constant 5 : index
    %c0_53 = arith.constant 0 : index
    %c0_54 = arith.constant 0 : index
    %48 = vector.load %arg2[%c5, %c0_53, %c0_54] : memref<9x3x16xbf16, #tpu.memory_space<vmem>>, vector<1x3x16xbf16>
    %49 = vector.shape_cast %48 : vector<1x3x16xbf16> to vector<3x16xbf16>
    %cst_55 = arith.constant dense<0.000000e+00> : vector<256x16xf32>
    %50 = tpu.matmul %47, %49, %cst_55 {dimension_numbers = #tpu.dot_dimension_numbers<[1], [0], [0], [1], [0, 0, 1, 1], [], []>} : vector<256x3xbf16>, vector<3x16xbf16>, vector<256x16xf32> -> vector<256x16xf32>
    %51 = arith.addf %44, %50 : vector<256x16xf32>
    %c2_56 = arith.constant 2 : index
    %c0_57 = arith.constant 0 : index
    %c0_58 = arith.constant 0 : index
    %52 = vector.load %arg7[%c2_56, %c0_57, %c0_58] : memref<18x18x3xf32, #tpu.memory_space<vmem>>, vector<16x16x3xf32>
    %53 = vector.shape_cast %52 : vector<16x16x3xf32> to vector<256x3xf32>
    %54 = arith.truncf %53 : vector<256x3xf32> to vector<256x3xbf16>
    %c6 = arith.constant 6 : index
    %c0_59 = arith.constant 0 : index
    %c0_60 = arith.constant 0 : index
    %55 = vector.load %arg2[%c6, %c0_59, %c0_60] : memref<9x3x16xbf16, #tpu.memory_space<vmem>>, vector<1x3x16xbf16>
    %56 = vector.shape_cast %55 : vector<1x3x16xbf16> to vector<3x16xbf16>
    %cst_61 = arith.constant dense<0.000000e+00> : vector<256x16xf32>
    %57 = tpu.matmul %54, %56, %cst_61 {dimension_numbers = #tpu.dot_dimension_numbers<[1], [0], [0], [1], [0, 0, 1, 1], [], []>} : vector<256x3xbf16>, vector<3x16xbf16>, vector<256x16xf32> -> vector<256x16xf32>
    %58 = arith.addf %51, %57 : vector<256x16xf32>
    %c2_62 = arith.constant 2 : index
    %c1_63 = arith.constant 1 : index
    %c0_64 = arith.constant 0 : index
    %59 = vector.load %arg7[%c2_62, %c1_63, %c0_64] : memref<18x18x3xf32, #tpu.memory_space<vmem>>, vector<16x16x3xf32>
    %60 = vector.shape_cast %59 : vector<16x16x3xf32> to vector<256x3xf32>
    %61 = arith.truncf %60 : vector<256x3xf32> to vector<256x3xbf16>
    %c7 = arith.constant 7 : index
    %c0_65 = arith.constant 0 : index
    %c0_66 = arith.constant 0 : index
    %62 = vector.load %arg2[%c7, %c0_65, %c0_66] : memref<9x3x16xbf16, #tpu.memory_space<vmem>>, vector<1x3x16xbf16>
    %63 = vector.shape_cast %62 : vector<1x3x16xbf16> to vector<3x16xbf16>
    %cst_67 = arith.constant dense<0.000000e+00> : vector<256x16xf32>
    %64 = tpu.matmul %61, %63, %cst_67 {dimension_numbers = #tpu.dot_dimension_numbers<[1], [0], [0], [1], [0, 0, 1, 1], [], []>} : vector<256x3xbf16>, vector<3x16xbf16>, vector<256x16xf32> -> vector<256x16xf32>
    %65 = arith.addf %58, %64 : vector<256x16xf32>
    %c2_68 = arith.constant 2 : index
    %c2_69 = arith.constant 2 : index
    %c0_70 = arith.constant 0 : index
    %66 = vector.load %arg7[%c2_68, %c2_69, %c0_70] : memref<18x18x3xf32, #tpu.memory_space<vmem>>, vector<16x16x3xf32>
    %67 = vector.shape_cast %66 : vector<16x16x3xf32> to vector<256x3xf32>
    %68 = arith.truncf %67 : vector<256x3xf32> to vector<256x3xbf16>
    %c8 = arith.constant 8 : index
    %c0_71 = arith.constant 0 : index
    %c0_72 = arith.constant 0 : index
    %69 = vector.load %arg2[%c8, %c0_71, %c0_72] : memref<9x3x16xbf16, #tpu.memory_space<vmem>>, vector<1x3x16xbf16>
    %70 = vector.shape_cast %69 : vector<1x3x16xbf16> to vector<3x16xbf16>
    %cst_73 = arith.constant dense<0.000000e+00> : vector<256x16xf32>
    %71 = tpu.matmul %68, %70, %cst_73 {dimension_numbers = #tpu.dot_dimension_numbers<[1], [0], [0], [1], [0, 0, 1, 1], [], []>} : vector<256x3xbf16>, vector<3x16xbf16>, vector<256x16xf32> -> vector<256x16xf32>
    %72 = arith.addf %65, %71 : vector<256x16xf32>
    %c0_74 = arith.constant 0 : index
    %c0_75 = arith.constant 0 : index
    %73 = vector.load %arg3[%c0_74, %c0_75] : memref<1x16xf32, #tpu.memory_space<vmem>>, vector<1x16xf32>
    %74 = vector.broadcast %73 : vector<1x16xf32> to vector<256x16xf32>
    %75 = arith.addf %72, %74 : vector<256x16xf32>
    %cst_76 = arith.constant 0.000000e+00 : f32
    %76 = vector.broadcast %cst_76 : f32 to vector<256x16xf32>
    %77 = arith.maximumf %75, %76 : vector<256x16xf32>
    %cst_77 = arith.constant 0.000000e+00 : f32
    %78 = vector.broadcast %cst_77 : f32 to vector<1x18x16xf32>
    %cst_78 = arith.constant 0.000000e+00 : f32
    %79 = vector.broadcast %cst_78 : f32 to vector<18x1x16xf32>
    %c0_79 = arith.constant 0 : index
    %c0_80 = arith.constant 0 : index
    %c0_81 = arith.constant 0 : index
    %80 = vector.load %arg8[%c0_79, %c0_80, %c0_81] : memref<18x18x16xf32, #tpu.memory_space<vmem>>, vector<1x18x16xf32>
    tpu.vector_store %arg8[%c0_79, %c0_80, %c0_81], %78 {strides = array<i32>} : memref<18x18x16xf32, #tpu.memory_space<vmem>>, vector<1x18x16xf32>,
    %c17_82 = arith.constant 17 : index
    %c0_83 = arith.constant 0 : index
    %c0_84 = arith.constant 0 : index
    %81 = vector.load %arg8[%c17_82, %c0_83, %c0_84] : memref<18x18x16xf32, #tpu.memory_space<vmem>>, vector<1x18x16xf32>
    tpu.vector_store %arg8[%c17_82, %c0_83, %c0_84], %78 {strides = array<i32>} : memref<18x18x16xf32, #tpu.memory_space<vmem>>, vector<1x18x16xf32>,
    %c0_85 = arith.constant 0 : index
    %c0_86 = arith.constant 0 : index
    %c0_87 = arith.constant 0 : index
    %82 = vector.load %arg8[%c0_85, %c0_86, %c0_87] : memref<18x18x16xf32, #tpu.memory_space<vmem>>, vector<18x1x16xf32>
    tpu.vector_store %arg8[%c0_85, %c0_86, %c0_87], %79 {strides = array<i32>} : memref<18x18x16xf32, #tpu.memory_space<vmem>>, vector<18x1x16xf32>,
    %c0_88 = arith.constant 0 : index
    %c17_89 = arith.constant 17 : index
    %c0_90 = arith.constant 0 : index
    %83 = vector.load %arg8[%c0_88, %c17_89, %c0_90] : memref<18x18x16xf32, #tpu.memory_space<vmem>>, vector<18x1x16xf32>
    tpu.vector_store %arg8[%c0_88, %c17_89, %c0_90], %79 {strides = array<i32>} : memref<18x18x16xf32, #tpu.memory_space<vmem>>, vector<18x1x16xf32>,
    %84 = vector.shape_cast %77 : vector<256x16xf32> to vector<16x16x16xf32>
    %c1_91 = arith.constant 1 : index
    %c1_92 = arith.constant 1 : index
    %c0_93 = arith.constant 0 : index
    %85 = vector.load %arg8[%c1_91, %c1_92, %c0_93] : memref<18x18x16xf32, #tpu.memory_space<vmem>>, vector<16x16x16xf32>
    tpu.vector_store %arg8[%c1_91, %c1_92, %c0_93], %84 {strides = array<i32>} : memref<18x18x16xf32, #tpu.memory_space<vmem>>, vector<16x16x16xf32>,
    %c0_94 = arith.constant 0 : index
    %c0_95 = arith.constant 0 : index
    %c0_96 = arith.constant 0 : index
    %86 = vector.load %arg8[%c0_94, %c0_95, %c0_96] : memref<18x18x16xf32, #tpu.memory_space<vmem>>, vector<16x16x16xf32>
    %c0_97 = arith.constant 0 : index
    %c0_98 = arith.constant 0 : index
    %87 = vector.load %arg4[%c0_97, %c0_98] : memref<9x16xf32, #tpu.memory_space<vmem>>, vector<1x16xf32>
    %88 = vector.shape_cast %87 : vector<1x16xf32> to vector<1x1x16xf32>
    %89 = vector.broadcast %88 : vector<1x1x16xf32> to vector<16x16x16xf32>
    %90 = arith.mulf %86, %89 : vector<16x16x16xf32>
    %c0_99 = arith.constant 0 : index
    %c1_100 = arith.constant 1 : index
    %c0_101 = arith.constant 0 : index
    %91 = vector.load %arg8[%c0_99, %c1_100, %c0_101] : memref<18x18x16xf32, #tpu.memory_space<vmem>>, vector<16x16x16xf32>
    %c1_102 = arith.constant 1 : index
    %c0_103 = arith.constant 0 : index
    %92 = vector.load %arg4[%c1_102, %c0_103] : memref<9x16xf32, #tpu.memory_space<vmem>>, vector<1x16xf32>
    %93 = vector.shape_cast %92 : vector<1x16xf32> to vector<1x1x16xf32>
    %94 = vector.broadcast %93 : vector<1x1x16xf32> to vector<16x16x16xf32>
    %95 = arith.mulf %91, %94 : vector<16x16x16xf32>
    %96 = arith.addf %90, %95 : vector<16x16x16xf32>
    %c0_104 = arith.constant 0 : index
    %c2_105 = arith.constant 2 : index
    %c0_106 = arith.constant 0 : index
    %97 = vector.load %arg8[%c0_104, %c2_105, %c0_106] : memref<18x18x16xf32, #tpu.memory_space<vmem>>, vector<16x16x16xf32>
    %c2_107 = arith.constant 2 : index
    %c0_108 = arith.constant 0 : index
    %98 = vector.load %arg4[%c2_107, %c0_108] : memref<9x16xf32, #tpu.memory_space<vmem>>, vector<1x16xf32>
    %99 = vector.shape_cast %98 : vector<1x16xf32> to vector<1x1x16xf32>
    %100 = vector.broadcast %99 : vector<1x1x16xf32> to vector<16x16x16xf32>
    %101 = arith.mulf %97, %100 : vector<16x16x16xf32>
    %102 = arith.addf %96, %101 : vector<16x16x16xf32>
    %c1_109 = arith.constant 1 : index
    %c0_110 = arith.constant 0 : index
    %c0_111 = arith.constant 0 : index
    %103 = vector.load %arg8[%c1_109, %c0_110, %c0_111] : memref<18x18x16xf32, #tpu.memory_space<vmem>>, vector<16x16x16xf32>
    %c3_112 = arith.constant 3 : index
    %c0_113 = arith.constant 0 : index
    %104 = vector.load %arg4[%c3_112, %c0_113] : memref<9x16xf32, #tpu.memory_space<vmem>>, vector<1x16xf32>
    %105 = vector.shape_cast %104 : vector<1x16xf32> to vector<1x1x16xf32>
    %106 = vector.broadcast %105 : vector<1x1x16xf32> to vector<16x16x16xf32>
    %107 = arith.mulf %103, %106 : vector<16x16x16xf32>
    %108 = arith.addf %102, %107 : vector<16x16x16xf32>
    %c1_114 = arith.constant 1 : index
    %c1_115 = arith.constant 1 : index
    %c0_116 = arith.constant 0 : index
    %109 = vector.load %arg8[%c1_114, %c1_115, %c0_116] : memref<18x18x16xf32, #tpu.memory_space<vmem>>, vector<16x16x16xf32>
    %c4_117 = arith.constant 4 : index
    %c0_118 = arith.constant 0 : index
    %110 = vector.load %arg4[%c4_117, %c0_118] : memref<9x16xf32, #tpu.memory_space<vmem>>, vector<1x16xf32>
    %111 = vector.shape_cast %110 : vector<1x16xf32> to vector<1x1x16xf32>
    %112 = vector.broadcast %111 : vector<1x1x16xf32> to vector<16x16x16xf32>
    %113 = arith.mulf %109, %112 : vector<16x16x16xf32>
    %114 = arith.addf %108, %113 : vector<16x16x16xf32>
    %c1_119 = arith.constant 1 : index
    %c2_120 = arith.constant 2 : index
    %c0_121 = arith.constant 0 : index
    %115 = vector.load %arg8[%c1_119, %c2_120, %c0_121] : memref<18x18x16xf32, #tpu.memory_space<vmem>>, vector<16x16x16xf32>
    %c5_122 = arith.constant 5 : index
    %c0_123 = arith.constant 0 : index
    %116 = vector.load %arg4[%c5_122, %c0_123] : memref<9x16xf32, #tpu.memory_space<vmem>>, vector<1x16xf32>
    %117 = vector.shape_cast %116 : vector<1x16xf32> to vector<1x1x16xf32>
    %118 = vector.broadcast %117 : vector<1x1x16xf32> to vector<16x16x16xf32>
    %119 = arith.mulf %115, %118 : vector<16x16x16xf32>
    %120 = arith.addf %114, %119 : vector<16x16x16xf32>
    %c2_124 = arith.constant 2 : index
    %c0_125 = arith.constant 0 : index
    %c0_126 = arith.constant 0 : index
    %121 = vector.load %arg8[%c2_124, %c0_125, %c0_126] : memref<18x18x16xf32, #tpu.memory_space<vmem>>, vector<16x16x16xf32>
    %c6_127 = arith.constant 6 : index
    %c0_128 = arith.constant 0 : index
    %122 = vector.load %arg4[%c6_127, %c0_128] : memref<9x16xf32, #tpu.memory_space<vmem>>, vector<1x16xf32>
    %123 = vector.shape_cast %122 : vector<1x16xf32> to vector<1x1x16xf32>
    %124 = vector.broadcast %123 : vector<1x1x16xf32> to vector<16x16x16xf32>
    %125 = arith.mulf %121, %124 : vector<16x16x16xf32>
    %126 = arith.addf %120, %125 : vector<16x16x16xf32>
    %c2_129 = arith.constant 2 : index
    %c1_130 = arith.constant 1 : index
    %c0_131 = arith.constant 0 : index
    %127 = vector.load %arg8[%c2_129, %c1_130, %c0_131] : memref<18x18x16xf32, #tpu.memory_space<vmem>>, vector<16x16x16xf32>
    %c7_132 = arith.constant 7 : index
    %c0_133 = arith.constant 0 : index
    %128 = vector.load %arg4[%c7_132, %c0_133] : memref<9x16xf32, #tpu.memory_space<vmem>>, vector<1x16xf32>
    %129 = vector.shape_cast %128 : vector<1x16xf32> to vector<1x1x16xf32>
    %130 = vector.broadcast %129 : vector<1x1x16xf32> to vector<16x16x16xf32>
    %131 = arith.mulf %127, %130 : vector<16x16x16xf32>
    %132 = arith.addf %126, %131 : vector<16x16x16xf32>
    %c2_134 = arith.constant 2 : index
    %c2_135 = arith.constant 2 : index
    %c0_136 = arith.constant 0 : index
    %133 = vector.load %arg8[%c2_134, %c2_135, %c0_136] : memref<18x18x16xf32, #tpu.memory_space<vmem>>, vector<16x16x16xf32>
    %c8_137 = arith.constant 8 : index
    %c0_138 = arith.constant 0 : index
    %134 = vector.load %arg4[%c8_137, %c0_138] : memref<9x16xf32, #tpu.memory_space<vmem>>, vector<1x16xf32>
    %135 = vector.shape_cast %134 : vector<1x16xf32> to vector<1x1x16xf32>
    %136 = vector.broadcast %135 : vector<1x1x16xf32> to vector<16x16x16xf32>
    %137 = arith.mulf %133, %136 : vector<16x16x16xf32>
    %138 = arith.addf %132, %137 : vector<16x16x16xf32>
    %cst_139 = arith.constant dense<0.000000e+00> : vector<16x16xf32>
    %139 = vector.multi_reduction <add>, %138, %cst_139 [2] : vector<16x16x16xf32> to vector<16x16xf32>
    %c0_140 = arith.constant 0 : index
    %c0_141 = arith.constant 0 : index
    %140 = vector.load %arg5[%c0_140, %c0_141] : memref<1x1xf32, #tpu.memory_space<vmem>>, vector<1x1xf32>
    %141 = vector.broadcast %140 : vector<1x1xf32> to vector<16x16xf32>
    %142 = arith.addf %139, %141 : vector<16x16xf32>
    %143 = arith.negf %142 : vector<16x16xf32>
    %144 = math.exp %143 : vector<16x16xf32>
    %cst_142 = arith.constant 1.000000e+00 : f32
    %145 = vector.broadcast %cst_142 : f32 to vector<16x16xf32>
    %146 = arith.addf %145, %144 : vector<16x16xf32>
    %147 = arith.divf %145, %146 : vector<16x16xf32>
    %148 = vector.shape_cast %147 : vector<16x16xf32> to vector<1x1x16x16xf32>
    %c0_143 = arith.constant 0 : index
    %c0_144 = arith.constant 0 : index
    %c0_145 = arith.constant 0 : index
    %c0_146 = arith.constant 0 : index
    %149 = vector.load %arg6[%c0_143, %c0_144, %c0_145, %c0_146] : memref<1x1x16x16xf32, #tpu.memory_space<vmem>>, vector<1x1x16x16xf32>
    tpu.vector_store %arg6[%c0_143, %c0_144, %c0_145, %c0_146], %148 {strides = array<i32>} : memref<1x1x16x16xf32, #tpu.memory_space<vmem>>, vector<1x1x16x16xf32>,
    return
  }
  func.func @transform_0(%arg0: i32) -> (i32, i32, i32, i32) {
    %c0_i32 = arith.constant 0 : i32
    %c0_i32_0 = arith.constant 0 : i32
    %c0_i32_1 = arith.constant 0 : i32
    %c0_i32_2 = arith.constant 0 : i32
    return %arg0, %c0_i32, %c0_i32_0, %c0_i32_1 : i32, i32, i32, i32
  }
  func.func @transform_1(%arg0: i32) -> (i32, i32, i32) {
    %c0_i32 = arith.constant 0 : i32
    %c0_i32_0 = arith.constant 0 : i32
    %c0_i32_1 = arith.constant 0 : i32
    %c0_i32_2 = arith.constant 0 : i32
    return %c0_i32, %c0_i32_0, %c0_i32_1 : i32, i32, i32
  }
  func.func @transform_2(%arg0: i32) -> (i32, i32) {
    %c0_i32 = arith.constant 0 : i32
    %c0_i32_0 = arith.constant 0 : i32
    %c0_i32_1 = arith.constant 0 : i32
    return %c0_i32, %c0_i32_0 : i32, i32
  }
  func.func @transform_3(%arg0: i32) -> (i32, i32) {
    %c0_i32 = arith.constant 0 : i32
    %c0_i32_0 = arith.constant 0 : i32
    %c0_i32_1 = arith.constant 0 : i32
    return %c0_i32, %c0_i32_0 : i32, i32
  }
  func.func @transform_4(%arg0: i32) -> (i32, i32) {
    %c0_i32 = arith.constant 0 : i32
    %c0_i32_0 = arith.constant 0 : i32
    %c0_i32_1 = arith.constant 0 : i32
    return %c0_i32, %c0_i32_0 : i32, i32
  }
  func.func @transform_5(%arg0: i32) -> (i32, i32, i32, i32) {
    %c0_i32 = arith.constant 0 : i32
    %c0_i32_0 = arith.constant 0 : i32
    %c0_i32_1 = arith.constant 0 : i32
    %c0_i32_2 = arith.constant 0 : i32
    return %arg0, %c0_i32, %c0_i32_0, %c0_i32_1 : i32, i32, i32, i32
  }
}

</mosaic_0001>

<bundles_post_ra>
// kernel: tpu_custom_call.1
= control target key start
LH: loop header
LB: loop body
LE: loop exit
PB: predicated region body
PF: predicated region fallthrough
CT: control target
= control target key end

     0   :  { %s7560_s0 = inlined_call_operand.vmem [shape: f32[2,16,16,3], index: 0, kind: input, shape index: {}]   ;;  %s7561_s1 = inlined_call_operand.vmem [shape: bf16[9,3,16], index: 1, kind: input, shape index: {}]   ;;  %s7562_s2 = inlined_call_operand.vmem [shape: f32[1,16], index: 2, kind: input, shape index: {}]   ;;  %s7563_s3 = inlined_call_operand.vmem [shape: f32[9,16], index: 3, kind: input, shape index: {}]   ;;  %s7564_s4 = inlined_call_operand.<no memory space> [shape: f32[1,1], index: 4, kind: input, shape index: {}]   ;;  %s7565_s5 = inlined_call_operand.hbm [shape: f32[2,1,16,16], index: 5, kind: output, shape index: {}]  }
   0x1   :  { %v10_v0 = vstv %s7564_s4 }
   0x2   :  { %11 = vst [vmem:[#allocation4] sm:$0x1] %v10_v0 }
   0x3   :  { %12 = vsyncpa [#allocation6], 0 }
   0x4   :  { %14 = vsyncpa [#allocation6 + $0x1], 0  ;;  %s5773_s20 = smov 0   ;;  %s5775_s21 = smov 0  }
   0x5   :  { %s5777_s22 = smov 0   ;;  %s5779_s23 = smov 0  }
   0x6 LB: > { %s5794_s4 = sadd.s32 4294967295, %s5732_s23   ;;  %s4562_s24 = sadd.s32 4294967294, %s5732_s23   ;;  %s5732_s23 = sphi %s5779_s23, %s7571_s23   ;;  %s5728_s22 = sphi %s5777_s22, %s7570_s22   ;;  %s5724_s21 = sphi %s5775_s21, %s7569_s21   ;;  %s5720_s20 = sphi %s5773_s20, %s7568_s20  }
   0x7   : > { %s5798_s25 = sadd.s32 1, %s5732_s23   ;;  %s137_s26 = sadd.s32 1, %s5728_s22 }
   0x8   : > { %s134_s27 = ssub.s32 %s5732_s23, %s5798_s25  ;;  %p147_p0 = scmp.ne.s32.totalorder %s5728_s22, %s5724_s21 }
   0x9   : > { %p135_p1 = scmp.eq.s32.totalorder %s134_s27, 0  ;;  %p148_p2 = scmp.eq.s32.totalorder %s5794_s4, 1 }
   0xa   : > { %p153_p3 = scmp.ne.s32.totalorder %s5724_s21, %s5720_s20  ;;  %p154_p4 = scmp.eq.s32.totalorder %s4562_s24, 1 }
   0xb   : > { %s5809_s28 = scalar_select %p135_p1, %s5728_s22, %s137_s26  }
   0xc   : > { %p5811_p5 = por %p148_p2, %p147_p0  ;;  %p5815_p6 = por %p154_p4, %p153_p3 }
   0xd   : > { %p4565_p7 = scmp.ge.s32.totalorder %s5732_s23, 1  ;;  %p192_p8 = scmp.lt.s32.totalorder %s5732_s23, 3 }
   0xf   : > { %p193_p9 = pnand %p4565_p7, %p192_p8 }
  0x10   : > { %v4569_v1 = vld [vmem:[%s7561_s1 + $0x2] sm:$0x3] (!%p193_p9)  ;;  %vm484_vm0 = vcmask (!%p193_p9), 1040384   ;;  %vm485_vm1 = vcmask (!%p193_p9), 1041408   ;;  %vm226_vm2 = vcmask (!%p193_p9), 23552   ;;  %v5734_v2 = vmov (!%p193_p9), 65535  }
  0x11   : > { %196 = sbr.rel (%p193_p9) target bundleno = 914 (0x392), region = 40  ;;  %v486_v3 = vsel (!%p193_p9), %vm484_vm0, 4294967295, %v5734_v2  ;;  %v4636_v4 = vld [vmem:[%s7561_s1 + $0x8] sm:$0x3] (!%p193_p9)  ;;  %vm229_vm3 = vcmask (!%p193_p9), 17408   ;;  %vm235_vm4 = vcmask (!%p193_p9), 16384  }
  0x12   : > { %v5827_v5 = vsel (!%p193_p9), %vm485_vm1, %v486_v3, 0  ;;  %v5735_v6 = vmov (!%p193_p9), 0.0   ;;  %p220_p10 = scmp.lt.s32.totalorder (!%p193_p9), %s5794_s4, 1  ;;  %v385_v7 = vld [vmem:[%s7561_s1] sm:$0x3] (!%p193_p9)  ;;  %vm2994_vm5 = vcmask (!%p193_p9), 130048  }
  0x13   : > { %227 = vst.msk [vmem:[#allocation2] sm:$0xff] (!%p193_p9), %vm226_vm2, %v5735_v6  ;;  %228 = vst.msk [vmem:[#allocation2 + $0x8] sm:$0xff] (!%p193_p9), %vm226_vm2, %v5735_v6  ;;  %v4653_v8 = vld [vmem:[%s7561_s1 + $0xa] sm:$0x3] (!%p193_p9)  ;;  %v489_v9 = vand.u32 (!%p193_p9), %v4569_v1, %v5827_v5  ;;  %v5912_v10 = vand.u32 (!%p193_p9), %v4636_v4, %v5827_v5  ;;  %v5923_v11 = vand.u32 (!%p193_p9), %v5827_v5, %v385_v7  ;;  %v4670_v32 = vld [vmem:[%s7561_s1 + $0xc] sm:$0x3] (!%p193_p9) }
  0x14   : > { %230 = vst.msk [vmem:[#allocation2 + $0x10] sm:$0x3] (!%p193_p9), %vm229_vm3, %v5735_v6  ;;  %234 = vst.msk [vmem:[#allocation2 + $0x1a8] sm:$0x3] (!%p193_p9), %vm229_vm3, %v5735_v6  ;;  %v5926_v12 = vand.u32 (!%p193_p9), %v4653_v8, %v5827_v5  ;;  %v4602_v36 = vld [vmem:[%s7561_s1 + $0x4] sm:$0x3] (!%p193_p9)  ;;  %v5992_v48 = vand.u32 (!%p193_p9), %v4670_v32, %v5827_v5 }
  0x15   : > { %232 = vst.msk [vmem:[#allocation2 + $0x198] sm:$0xff] (!%p193_p9), %vm226_vm2, %v5735_v6  ;;  %233 = vst.msk [vmem:[#allocation2 + $0x1a0] sm:$0xff] (!%p193_p9), %vm226_vm2, %v5735_v6  ;;  %4924 = vmatprep.subr.bf16.mxu1 (!%p193_p9), %v489_v9  ;;  %5060 = vmatprep.subr.bf16.mxu0 (!%p193_p9), %v5912_v10  ;;  %v5999_v50 = vand.u32 (!%p193_p9), %v4602_v36, %v5827_v5  ;;  %vm3003_vm6 = vcmask (!%p193_p9), 122880   ;;  %vm2997_vm7 = vcmask (!%p193_p9), 123904   ;;  %vm4324_vm8 = vcmask (!%p193_p9), 130112   ;;  %s217_s16 = sand.u32 (!%p193_p9), 1, %s5724_s21  }
  0x16   : > { %237 = vst.msk [vmem:[#allocation2 + $0x18] sm:$0x1] (!%p193_p9), %vm235_vm4, %v5735_v6  ;;  %238 = vst.msk [vmem:[#allocation2 + $0x30] sm:$0x1] (!%p193_p9), %vm235_vm4, %v5735_v6  ;;  %4925 = vmatpush3.bf16.msra.mxu1 (!%p193_p9), %v489_v9  ;;  %5061 = vmatpush3.bf16.msra.mxu0 (!%p193_p9), %v5912_v10  ;;  %vm4461_vm9 = vcmask (!%p193_p9), 1041409   ;;  %vm4463_vm10 = vcmask (!%p193_p9), 1042434  }
  0x17   : > { %239 = vst.msk [vmem:[#allocation2 + $0x48] sm:$0x1] (!%p193_p9), %vm235_vm4, %v5735_v6  ;;  %240 = vst.msk [vmem:[#allocation2 + $0x60] sm:$0x1] (!%p193_p9), %vm235_vm4, %v5735_v6  ;;  %4958 = vmatprep.subr.bf16.mxu1 (!%p193_p9), %v5923_v11  ;;  %5094 = vmatprep.subr.bf16.mxu0 (!%p193_p9), %v5926_v12  ;;  %vm4465_vm11 = vcmask (!%p193_p9), 1043459   ;;  %vm4467_vm12 = vcmask (!%p193_p9), 1044484  }
  0x18   : > { %241 = vst.msk [vmem:[#allocation2 + $0x78] sm:$0x1] %vm235_vm4, %v5735_v6  ;;  %242 = vst.msk [vmem:[#allocation2 + $0x90] sm:$0x1] %vm235_vm4, %v5735_v6  ;;  %s221_s14 = scalar_select %p220_p10, %s5794_s4, 1  ;;  %vm4469_vm13 = vcmask 1045509  }
  0x19   : > { %243 = vst.msk [vmem:[#allocation2 + $0xa8] sm:$0x1] %vm235_vm4, %v5735_v6  ;;  %244 = vst.msk [vmem:[#allocation2 + $0xc0] sm:$0x1] %vm235_vm4, %v5735_v6  ;;  %vm4471_vm14 = vcmask 1046534   ;;  %vm4473_vm15 = vcmask 1047559  }
  0x1a   : > { %245 = vst.msk [vmem:[#allocation2 + $0xd8] sm:$0x1] %vm235_vm4, %v5735_v6  ;;  %246 = vst.msk [vmem:[#allocation2 + $0xf0] sm:$0x1] %vm235_vm4, %v5735_v6  ;;  %s4769_s15 = sshll.u32 %s221_s14, 8  ;;  %v386_v16 = vld [vmem:[#allocation2 + $0x1] sm:$0xff] }
  0x1b   : > { %247 = vst.msk [vmem:[#allocation2 + $0x108] sm:$0x1] %vm235_vm4, %v5735_v6  ;;  %248 = vst.msk [vmem:[#allocation2 + $0x120] sm:$0x1] %vm235_vm4, %v5735_v6  ;;  %s5934_s18 = scalar_lea.vmem %s7560_s0, %s4769_s15  ;;  %v387_v17 = vld [vmem:[#allocation2 + $0x9] sm:$0xff]  ;;  %s7455_s17 = sshll.u32 %s217_s16, 4 }
  0x1c   : > { %249 = vst.msk [vmem:[#allocation2 + $0x138] sm:$0x1] %vm235_vm4, %v5735_v6  ;;  %250 = vst.msk [vmem:[#allocation2 + $0x150] sm:$0x1] %vm235_vm4, %v5735_v6  ;;  %v272_v13 = vld [vmem:[%s5934_s18] sm:$0xff]  ;;  %v273_v14 = vld [vmem:[%s5934_s18 + $0x8] sm:$0xff]  ;;  %v418_v19 = vpack.c.bf16 %v387_v17, %v386_v16 }
  0x1d   : > { %251 = vst.msk [vmem:[#allocation2 + $0x168] sm:$0x1] %vm235_vm4, %v5735_v6  ;;  %252 = vst.msk [vmem:[#allocation2 + $0x180] sm:$0x1] %vm235_vm4, %v5735_v6  ;;  %v274_v15 = vld [vmem:[%s5934_s18 + $0x10] sm:$0xff]  ;;  %v275_v18 = vld [vmem:[%s5934_s18 + $0x18] sm:$0xff] }
  0x1e   : > { %255 = vst.msk [vmem:[#allocation2 + $0x29] sm:$0x1] %vm235_vm4, %v5735_v6  ;;  %256 = vst.msk [vmem:[#allocation2 + $0x41] sm:$0x1] %vm235_vm4, %v5735_v6  ;;  %v276_v20 = vld [vmem:[%s5934_s18 + $0x20] sm:$0xff]  ;;  %v277_v21 = vld [vmem:[%s5934_s18 + $0x28] sm:$0xff]  ;;  %4926 = vmatprep.mubr.msk.bf16.mxu1 %vm226_vm2, %v418_v19 }
  0x1f   : > { %257 = vst.msk [vmem:[#allocation2 + $0x59] sm:$0x1] %vm235_vm4, %v5735_v6  ;;  %258 = vst.msk [vmem:[#allocation2 + $0x71] sm:$0x1] %vm235_vm4, %v5735_v6  ;;  %v278_v22 = vld [vmem:[%s5934_s18 + $0x30] sm:$0xff]  ;;  %v279_v23 = vld [vmem:[%s5934_s18 + $0x38] sm:$0xff] }
  0x20   : > { %259 = vst.msk [vmem:[#allocation2 + $0x89] sm:$0x1] %vm235_vm4, %v5735_v6  ;;  %260 = vst.msk [vmem:[#allocation2 + $0xa1] sm:$0x1] %vm235_vm4, %v5735_v6  ;;  %v280_v24 = vld [vmem:[%s5934_s18 + $0x40] sm:$0xff]  ;;  %v281_v25 = vld [vmem:[%s5934_s18 + $0x48] sm:$0xff] }
  0x21   : > { %261 = vst.msk [vmem:[#allocation2 + $0xb9] sm:$0x1] %vm235_vm4, %v5735_v6  ;;  %262 = vst.msk [vmem:[#allocation2 + $0xd1] sm:$0x1] %vm235_vm4, %v5735_v6  ;;  %v282_v26 = vld [vmem:[%s5934_s18 + $0x50] sm:$0xff]  ;;  %v283_v27 = vld [vmem:[%s5934_s18 + $0x58] sm:$0xff] }
  0x22   : > { %263 = vst.msk [vmem:[#allocation2 + $0xe9] sm:$0x1] %vm235_vm4, %v5735_v6  ;;  %264 = vst.msk [vmem:[#allocation2 + $0x101] sm:$0x1] %vm235_vm4, %v5735_v6  ;;  %v284_v28 = vld [vmem:[%s5934_s18 + $0x60] sm:$0xff]  ;;  %v285_v29 = vld [vmem:[%s5934_s18 + $0x68] sm:$0xff] }
  0x23   : > { %265 = vst.msk [vmem:[#allocation2 + $0x119] sm:$0x1] %vm235_vm4, %v5735_v6  ;;  %266 = vst.msk [vmem:[#allocation2 + $0x131] sm:$0x1] %vm235_vm4, %v5735_v6  ;;  %v286_v30 = vld [vmem:[%s5934_s18 + $0x70] sm:$0xff]  ;;  %v287_v31 = vld [vmem:[%s5934_s18 + $0x78] sm:$0xff] }
  0x24   : > { %267 = vst.msk [vmem:[#allocation2 + $0x149] sm:$0x1] %vm235_vm4, %v5735_v6  ;;  %268 = vst.msk [vmem:[#allocation2 + $0x161] sm:$0x1] %vm235_vm4, %v5735_v6  ;;  %v288_v33 = vld [vmem:[%s5934_s18 + $0x80] sm:$0xff]  ;;  %v289_v34 = vld [vmem:[%s5934_s18 + $0x88] sm:$0xff] }
  0x25   : > { %269 = vst.msk [vmem:[#allocation2 + $0x179] sm:$0x1] %vm235_vm4, %v5735_v6  ;;  %270 = vst.msk [vmem:[#allocation2 + $0x191] sm:$0x1] %vm235_vm4, %v5735_v6  ;;  %v290_v35 = vld [vmem:[%s5934_s18 + $0x90] sm:$0xff]  ;;  %v291_v37 = vld [vmem:[%s5934_s18 + $0x98] sm:$0xff] }
  0x26   : > { %236 = vst.msk [vmem:[#allocation2] sm:$0x1] %vm235_vm4, %v5735_v6  ;;  %254 = vst.msk [vmem:[#allocation2 + $0x11] sm:$0x1] %vm235_vm4, %v5735_v6  ;;  %v292_v38 = vld [vmem:[%s5934_s18 + $0xa0] sm:$0xff]  ;;  %v293_v39 = vld [vmem:[%s5934_s18 + $0xa8] sm:$0xff] }
  0x27   : > { %271 = vst.msk [vmem:[#allocation2 + $0x1a9] sm:$0x1] %vm235_vm4, %v5735_v6  ;;  %253 = vst.msk [vmem:[#allocation2 + $0x198] sm:$0x1] %vm235_vm4, %v5735_v6  ;;  %v294_v57 = vld [vmem:[%s5934_s18 + $0xb0] sm:$0xff]  ;;  %v295_v58 = vld [vmem:[%s5934_s18 + $0xb8] sm:$0xff] }
  0x28   : > { %305 = vst.msk [vmem:[#allocation2 + $0x19] sm:$0xff] %vm226_vm2, %v272_v13  ;;  %306 = vst.msk [vmem:[#allocation2 + $0x21] sm:$0xff] %vm226_vm2, %v273_v14  ;;  %v296_v59 = vld [vmem:[%s5934_s18 + $0xc0] sm:$0xff]  ;;  %v297_v60 = vld [vmem:[%s5934_s18 + $0xc8] sm:$0xff]  ;;  %s4770_s19 = sshll.u32 %s5794_s4, 8  ;;  %s7519_s4 = scalar_lea.sflag [#allocation6], %s217_s16 }
  0x29   : > { %307 = vst.msk [vmem:[#allocation2 + $0x31] sm:$0xff] %vm226_vm2, %v274_v15  ;;  %308 = vst.msk [vmem:[#allocation2 + $0x39] sm:$0xff] %vm226_vm2, %v275_v18  ;;  %v298_v63 = vld [vmem:[%s5934_s18 + $0xd0] sm:$0xff]  ;;  %v299_v0 = vld [vmem:[%s5934_s18 + $0xd8] sm:$0xff]  ;;  %s7509_s6 = scalar_lea.hbm %s7565_s5, %s4770_s19  ;;  %s5737_s8 = smov [#allocation5]  }
  0x2a   : > { %309 = vst.msk [vmem:[#allocation2 + $0x49] sm:$0xff] %vm226_vm2, %v276_v20  ;;  %310 = vst.msk [vmem:[#allocation2 + $0x51] sm:$0xff] %vm226_vm2, %v277_v21  ;;  %v300_v1 = vld [vmem:[%s5934_s18 + $0xe0] sm:$0xff]  ;;  %v301_v2 = vld [vmem:[%s5934_s18 + $0xe8] sm:$0xff]  ;;  %s5674_s9 = sshll.u32 %s5737_s8, 4  ;;  %s5675_s9 = int_to_ptr.vmem [resolvable:$false] %s5674_s9 }
  0x2b   : > { %311 = vst.msk [vmem:[#allocation2 + $0x61] sm:$0xff] %vm226_vm2, %v278_v22  ;;  %312 = vst.msk [vmem:[#allocation2 + $0x69] sm:$0xff] %vm226_vm2, %v279_v23  ;;  %v302_v19 = vld [vmem:[%s5934_s18 + $0xf0] sm:$0xff]  ;;  %v303_v20 = vld [vmem:[%s5934_s18 + $0xf8] sm:$0xff]  ;;  %s7476_s18 = scalar_lea.vmem [#allocation5], %s7455_s17  ;;  %s5676_s10 = scalar_lea.vmem %s5675_s9, 512 }
  0x2c   : > { %313 = vst.msk [vmem:[#allocation2 + $0x79] sm:$0xff] %vm226_vm2, %v280_v24  ;;  %314 = vst.msk [vmem:[#allocation2 + $0x81] sm:$0xff] %vm226_vm2, %v281_v25  ;;  %s4500_s24 = sshll.u32 %s7476_s18, 4  ;;  %s7511_s24 = int_to_ptr.vmem [resolvable:$true] %s4500_s24 }
  0x2d   : > { %315 = vst.msk [vmem:[#allocation2 + $0x91] sm:$0xff] %vm226_vm2, %v282_v26  ;;  %316 = vst.msk [vmem:[#allocation2 + $0x99] sm:$0xff] %vm226_vm2, %v283_v27  ;;  %v4687_v27 = vld [vmem:[%s7561_s1 + $0xe] sm:$0x3]  ;;  %s5670_s7 = scalar_lea.vmem %s7511_s24, 256  ;;  %p5677_p0 = scmp.lt.s32.totalorder %s7511_s24, %s5675_s9 }
  0x2e   : > { %317 = vst.msk [vmem:[#allocation2 + $0xa9] sm:$0xff] %vm226_vm2, %v284_v28  ;;  %318 = vst.msk [vmem:[#allocation2 + $0xb1] sm:$0xff] %vm226_vm2, %v285_v29  ;;  %p5671_p11 = scmp.ne.s32.totalorder %s7511_s24, %s5670_s7  ;;  %p5678_p1 = scmp.lt.s32.totalorder %s5676_s10, %s5670_s7 }
  0x2f   : > { %319 = vst.msk [vmem:[#allocation2 + $0xc1] sm:$0xff] %vm226_vm2, %v286_v30  ;;  %320 = vst.msk [vmem:[#allocation2 + $0xc9] sm:$0xff] %vm226_vm2, %v287_v31  ;;  %v388_v40 = vld [vmem:[#allocation2 + $0x19] sm:$0xff]  ;;  %v389_v41 = vld [vmem:[#allocation2 + $0x21] sm:$0xff]  ;;  %v6079_v31 = vand.u32 %v4687_v27, %v5827_v5 }
  0x30   : > { %321 = vst.msk [vmem:[#allocation2 + $0xd9] sm:$0xff] %vm226_vm2, %v288_v33  ;;  %322 = vst.msk [vmem:[#allocation2 + $0xe1] sm:$0xff] %vm226_vm2, %v289_v34  ;;  %v1454_v42 = vld [vmem:[#allocation2 + $0x31] sm:$0xff]  ;;  %v419_v43 = vpack.c.bf16 %v389_v41, %v388_v40  ;;  %v1455_v44 = vld [vmem:[#allocation2 + $0x39] sm:$0xff]  ;;  %p5672_p12 = pnand %p5671_p11, %p5811_p5  ;;  %p5679_p2 = por %p5678_p1, %p5677_p0 }
  0x31   : > { %323 = vst.msk [vmem:[#allocation2 + $0xf1] sm:$0xff] %vm226_vm2, %v290_v35  ;;  %324 = vst.msk [vmem:[#allocation2 + $0xf9] sm:$0xff] %vm226_vm2, %v291_v37  ;;  %v5989_v45 = vpack.c.bf16 %v1455_v44, %v1454_v42  ;;  %v392_v46 = vld [vmem:[#allocation2 + $0x49] sm:$0xff]  ;;  %v393_v47 = vld [vmem:[#allocation2 + $0x51] sm:$0xff] }
  0x32   : > { %325 = vst.msk [vmem:[#allocation2 + $0x109] sm:$0xff] %vm226_vm2, %v292_v38  ;;  %326 = vst.msk [vmem:[#allocation2 + $0x111] sm:$0xff] %vm226_vm2, %v293_v39  ;;  %4927 = vmatmul.mubr.msk.bf16.vlgmr.msra.gmra.mrb[0].mxu1 %vm226_vm2, %v419_v43  ;;  %5062 = vmatprep.mubr.msk.bf16.mxu0 %vm226_vm2, %v419_v43  ;;  %v5996_v49 = vpack.c.bf16 %v393_v47, %v392_v46  ;;  %v1458_v51 = vld [vmem:[#allocation2 + $0x61] sm:$0xff]  ;;  %v1459_v52 = vld [vmem:[#allocation2 + $0x69] sm:$0xff]  ;;  %p5673_p13 = pneg %p5672_p12 }
  0x33   : > { %4959 = vmatpush3.bf16.msra.mxu1 %v5923_v11  ;;  %5063 = vmatmul.mubr.msk.bf16.vlgmr.msra.gmra.mrb[0].mxu0 %vm226_vm2, %v5989_v45  ;;  %v396_v53 = vld [vmem:[#allocation2 + $0x79] sm:$0xff]  ;;  %v397_v54 = vld [vmem:[#allocation2 + $0x81] sm:$0xff]  ;;  %v6011_v55 = vpack.c.bf16 %v1459_v52, %v1458_v51  ;;  %327 = vst.msk [vmem:[#allocation2 + $0x121] sm:$0xff] %vm226_vm2, %v294_v57  ;;  %328 = vst.msk [vmem:[#allocation2 + $0x129] sm:$0xff] %vm226_vm2, %v295_v58 }
  0x34   : > { %5095 = vmatpush3.bf16.msra.mxu0 %v5926_v12  ;;  %4930 = vmatprep.mubr.msk.bf16.mxu1 %vm226_vm2, %v5989_v45  ;;  %v6013_v56 = vpack.c.bf16 %v397_v54, %v396_v53  ;;  %329 = vst.msk [vmem:[#allocation2 + $0x139] sm:$0xff] %vm226_vm2, %v296_v59  ;;  %v1462_v61 = vld [vmem:[#allocation2 + $0x91] sm:$0xff]  ;;  %v1463_v62 = vld [vmem:[#allocation2 + $0x99] sm:$0xff]  ;;  %330 = vst.msk [vmem:[#allocation2 + $0x141] sm:$0xff] %vm226_vm2, %v297_v60  ;;  %p5680_p3 = pnand %p5679_p2, %p5673_p13 }
  0x35   : > { %5066 = vmatprep.mubr.msk.bf16.mxu0 %vm226_vm2, %v5996_v49  ;;  %5128 = vmatprep.subr.bf16.mxu0 %v5992_v48  ;;  %331 = vst.msk [vmem:[#allocation2 + $0x151] sm:$0xff] %vm226_vm2, %v298_v63  ;;  %v400_v3 = vld [vmem:[#allocation2 + $0xa9] sm:$0xff]  ;;  %v401_v4 = vld [vmem:[#allocation2 + $0xb1] sm:$0xff]  ;;  %332 = vst.msk [vmem:[#allocation2 + $0x159] sm:$0xff] %vm226_vm2, %v299_v0  ;;  %v6039_v7 = vpack.c.bf16 %v1463_v62, %v1462_v61 }
  0x36   : > { %4992 = vmatprep.subr.bf16.mxu1 %v5999_v50  ;;  %333 = vst.msk [vmem:[#allocation2 + $0x169] sm:$0xff] %vm226_vm2, %v300_v1  ;;  %334 = vst.msk [vmem:[#allocation2 + $0x171] sm:$0xff] %vm226_vm2, %v301_v2  ;;  %v6041_v8 = vpack.c.bf16 %v401_v4, %v400_v3  ;;  %v1466_v9 = vld [vmem:[#allocation2 + $0xc1] sm:$0xff]  ;;  %v1467_v11 = vld [vmem:[#allocation2 + $0xc9] sm:$0xff] }
  0x37   : > { %v1746_v12 = vld [vmem:[#allocation2 + $0x1a] sm:$0xff]  ;;  %v1747_v13 = vld [vmem:[#allocation2 + $0x22] sm:$0xff]  ;;  %v6051_v14 = vpack.c.bf16 %v1467_v11, %v1466_v9  ;;  %v1748_v18 = vld [vmem:[#allocation2 + $0x32] sm:$0xff]  ;;  %335 = vst.msk [vmem:[#allocation2 + $0x181] sm:$0xff] %vm226_vm2, %v302_v19 }
  0x38   : > { %v6053_v15 = vpack.c.bf16 %v1747_v13, %v1746_v12  ;;  %v404_v16 = vld [vmem:[#allocation2 + $0xd9] sm:$0xff]  ;;  %v405_v17 = vld [vmem:[#allocation2 + $0xe1] sm:$0xff]  ;;  %v406_v22 = vld [vmem:[#allocation2 + $0xf1] sm:$0xff]  ;;  %336 = vst.msk [vmem:[#allocation2 + $0x189] sm:$0xff] %vm226_vm2, %v303_v20 }
  0x39   : > { %v1749_v21 = vld [vmem:[#allocation2 + $0x3a] sm:$0xff]  ;;  %v1750_v24 = vld [vmem:[#allocation2 + $0x4a] sm:$0xff]  ;;  %v1751_v25 = vld [vmem:[#allocation2 + $0x52] sm:$0xff]  ;;  %v6067_v26 = vpack.c.bf16 %v405_v17, %v404_v16  ;;  %2995 = vst.msk [vmem:[#allocation3] sm:$0xff] %vm2994_vm5, %v5735_v6 }
  0x3a   : > { %4931 = vmatmul.mubr.msk.bf16.gmra.mrb[4].mxu1 %vm226_vm2, %v5996_v49  ;;  %v407_v23 = vld [vmem:[#allocation2 + $0xf9] sm:$0xff]  ;;  %v6072_v28 = vpack.c.bf16 %v1749_v21, %v1748_v18  ;;  %v6076_v30 = vpack.c.bf16 %v1751_v25, %v1750_v24  ;;  %v408_v32 = vld [vmem:[#allocation2 + $0x109] sm:$0xff]  ;;  %v409_v33 = vld [vmem:[#allocation2 + $0x111] sm:$0xff]  ;;  %2996 = vst.msk [vmem:[#allocation3 + $0x8] sm:$0xff] %vm2994_vm5, %v5735_v6 }
  0x3b   : > { %5067 = vmatmul.mubr.msk.bf16.gmra.mrb[4].mxu0 %vm226_vm2, %v6011_v55  ;;  %4934 = vmatprep.mubr.msk.bf16.mxu1 %vm226_vm2, %v6011_v55  ;;  %v6074_v29 = vpack.c.bf16 %v407_v23, %v406_v22  ;;  %v1752_v34 = vld [vmem:[#allocation2 + $0x62] sm:$0xff]  ;;  %v1753_v35 = vld [vmem:[#allocation2 + $0x6a] sm:$0xff]  ;;  %v1754_v38 = vld [vmem:[#allocation2 + $0x7a] sm:$0xff]  ;;  %v6091_v40 = vpack.c.bf16 %v409_v33, %v408_v32  ;;  %3000 = vst.msk [vmem:[#allocation3 + $0x198] sm:$0xff] %vm2994_vm5, %v5735_v6 }
  0x3c   : > { %5070 = vmatprep.mubr.msk.bf16.mxu0 %vm226_vm2, %v6013_v56  ;;  %v410_v36 = vld [vmem:[#allocation2 + $0x121] sm:$0xff]  ;;  %v411_v37 = vld [vmem:[#allocation2 + $0x129] sm:$0xff]  ;;  %v6093_v41 = vpack.c.bf16 %v1753_v35, %v1752_v34  ;;  %v412_v44 = vld [vmem:[#allocation2 + $0x139] sm:$0xff]  ;;  %3001 = vst.msk [vmem:[#allocation3 + $0x1a0] sm:$0xff] %vm2994_vm5, %v5735_v6 }
  0x3d   : > { %v1755_v39 = vld [vmem:[#allocation2 + $0x82] sm:$0xff]  ;;  %v6095_v42 = vpack.c.bf16 %v411_v37, %v410_v36  ;;  %v1756_v47 = vld [vmem:[#allocation2 + $0x92] sm:$0xff]  ;;  %v1758_v53 = vld [vmem:[#allocation2 + $0xaa] sm:$0xff]  ;;  %3004 = vst.msk [vmem:[#allocation3] sm:$0x1] %vm3003_vm6, %v5735_v6 }
  0x3e   : > { %v6097_v43 = vpack.c.bf16 %v1755_v39, %v1754_v38  ;;  %v413_v46 = vld [vmem:[#allocation2 + $0x141] sm:$0xff]  ;;  %v414_v51 = vld [vmem:[#allocation2 + $0x151] sm:$0xff]  ;;  %v415_v52 = vld [vmem:[#allocation2 + $0x159] sm:$0xff]  ;;  %3005 = vst.msk [vmem:[#allocation3 + $0x18] sm:$0x1] %vm3003_vm6, %v5735_v6 }
  0x3f   : > { %v1759_v54 = vld [vmem:[#allocation2 + $0xb2] sm:$0xff]  ;;  %v6107_v57 = vpack.c.bf16 %v413_v46, %v412_v44  ;;  %v6111_v59 = vpack.c.bf16 %v415_v52, %v414_v51  ;;  %v416_v61 = vld [vmem:[#allocation2 + $0x169] sm:$0xff]  ;;  %v337_v1 = vld [vmem:[#allocation2] sm:$0xff]  ;;  %3006 = vst.msk [vmem:[#allocation3 + $0x30] sm:$0x1] %vm3003_vm6, %v5735_v6 }
  0x40   : > { %v6113_v60 = vpack.c.bf16 %v1759_v54, %v1758_v53  ;;  %v417_v62 = vld [vmem:[#allocation2 + $0x171] sm:$0xff]  ;;  %v1760_v63 = vld [vmem:[#allocation2 + $0xc2] sm:$0xff]  ;;  %v1762_v3 = vld [vmem:[#allocation2 + $0xda] sm:$0xff]  ;;  %3007 = vst.msk [vmem:[#allocation3 + $0x48] sm:$0x1] %vm3003_vm6, %v5735_v6 }
  0x41   : > { %v1761_v0 = vld [vmem:[#allocation2 + $0xca] sm:$0xff]  ;;  %v1763_v4 = vld [vmem:[#allocation2 + $0xe2] sm:$0xff]  ;;  %v6123_v9 = vpack.c.bf16 %v417_v62, %v416_v61  ;;  %v339_v16 = vld [vmem:[#allocation2 + $0x18] sm:$0xff]  ;;  %3008 = vst.msk [vmem:[#allocation3 + $0x60] sm:$0x1] %vm3003_vm6, %v5735_v6 }
  0x42   : > { %4935 = vmatmul.mubr.msk.bf16.gmra.mrb[8].mxu1 %vm226_vm2, %v6013_v56  ;;  %v338_v2 = vld [vmem:[#allocation2 + $0x8] sm:$0xff]  ;;  %v6125_v11 = vpack.c.bf16 %v1761_v0, %v1760_v63  ;;  %v6127_v13 = vpack.c.bf16 %v1763_v4, %v1762_v3  ;;  %v340_v17 = vld [vmem:[#allocation2 + $0x20] sm:$0xff]  ;;  %v1764_v18 = vld [vmem:[#allocation2 + $0xf2] sm:$0xff]  ;;  %3009 = vst.msk [vmem:[#allocation3 + $0x78] sm:$0x1] %vm3003_vm6, %v5735_v6 }
  0x43   : > { %5071 = vmatmul.mubr.msk.bf16.gmra.mrb[8].mxu0 %vm226_vm2, %v6039_v7  ;;  %4938 = vmatprep.mubr.msk.bf16.mxu1 %vm226_vm2, %v6039_v7  ;;  %v369_v12 = vpack.c.bf16 %v338_v2, %v337_v1  ;;  %v1765_v19 = vld [vmem:[#allocation2 + $0xfa] sm:$0xff]  ;;  %v341_v20 = vld [vmem:[#allocation2 + $0x30] sm:$0xff]  ;;  %v6136_v24 = vpack.c.bf16 %v340_v17, %v339_v16  ;;  %v4619_v25 = vld [vmem:[%s7561_s1 + $0x6] sm:$0x3]  ;;  %3010 = vst.msk [vmem:[#allocation3 + $0x90] sm:$0x1] %vm3003_vm6, %v5735_v6 }
  0x44   : > { %5074 = vmatprep.mubr.msk.bf16.mxu0 %vm226_vm2, %v6041_v8  ;;  %v342_v21 = vld [vmem:[#allocation2 + $0x38] sm:$0xff]  ;;  %v1766_v22 = vld [vmem:[#allocation2 + $0x10a] sm:$0xff]  ;;  %v6141_v27 = vpack.c.bf16 %v1765_v19, %v1764_v18  ;;  %v6148_v34 = vand.u32 %v4619_v25, %v5827_v5  ;;  %v1768_v37 = vld [vmem:[#allocation2 + $0x122] sm:$0xff]  ;;  %3011 = vst.msk [vmem:[#allocation3 + $0xa8] sm:$0x1] %vm3003_vm6, %v5735_v6 }
  0x45   : > { %v1767_v23 = vld [vmem:[#allocation2 + $0x112] sm:$0xff]  ;;  %v6143_v32 = vpack.c.bf16 %v342_v21, %v341_v20  ;;  %v343_v35 = vld [vmem:[#allocation2 + $0x48] sm:$0xff]  ;;  %v345_v39 = vld [vmem:[#allocation2 + $0x60] sm:$0xff]  ;;  %3012 = vst.msk [vmem:[#allocation3 + $0xc0] sm:$0x1] %vm3003_vm6, %v5735_v6 }
  0x46   : > { %v6145_v33 = vpack.c.bf16 %v1767_v23, %v1766_v22  ;;  %v344_v36 = vld [vmem:[#allocation2 + $0x50] sm:$0xff]  ;;  %v346_v44 = vld [vmem:[#allocation2 + $0x68] sm:$0xff]  ;;  %v1770_v46 = vld [vmem:[#allocation2 + $0x13a] sm:$0xff]  ;;  %3013 = vst.msk [vmem:[#allocation3 + $0xd8] sm:$0x1] %vm3003_vm6, %v5735_v6 }
  0x47   : > { %v1769_v38 = vld [vmem:[#allocation2 + $0x12a] sm:$0xff]  ;;  %v6164_v51 = vpack.c.bf16 %v346_v44, %v345_v39  ;;  %v347_v53 = vld [vmem:[#allocation2 + $0x78] sm:$0xff]  ;;  %v348_v54 = vld [vmem:[#allocation2 + $0x80] sm:$0xff]  ;;  %3014 = vst.msk [vmem:[#allocation3 + $0xf0] sm:$0x1] %vm3003_vm6, %v5735_v6 }
  0x48   : > { %v1772_v61 = vld [vmem:[#allocation2 + $0x152] sm:$0xff]  ;;  %v1773_v62 = vld [vmem:[#allocation2 + $0x15a] sm:$0xff]  ;;  %v1774_v1 = vld [vmem:[#allocation2 + $0x16a] sm:$0xff]  ;;  %v6176_v3 = vpack.c.bf16 %v348_v54, %v347_v53  ;;  %3015 = vst.msk [vmem:[#allocation3 + $0x108] sm:$0x1] %vm3003_vm6, %v5735_v6 }
  0x49   : > { %v349_v63 = vld [vmem:[#allocation2 + $0x90] sm:$0xff]  ;;  %v350_v0 = vld [vmem:[#allocation2 + $0x98] sm:$0xff]  ;;  %v6178_v4 = vpack.c.bf16 %v1773_v62, %v1772_v61  ;;  %v351_v17 = vld [vmem:[#allocation2 + $0xa8] sm:$0xff]  ;;  %3016 = vst.msk [vmem:[#allocation3 + $0x120] sm:$0x1] %vm3003_vm6, %v5735_v6 }
  0x4a   : > { %4939 = vmatmul.mubr.msk.bf16.gmra.mrb[12].mxu1 %vm226_vm2, %v6041_v8  ;;  %v1775_v2 = vld [vmem:[#allocation2 + $0x172] sm:$0xff]  ;;  %v353_v19 = vld [vmem:[#allocation2 + $0xc0] sm:$0xff]  ;;  %v1777_v21 = vld [vmem:[#allocation2 + $0x18a] sm:$0xff]  ;;  %3017 = vst.msk [vmem:[#allocation3 + $0x138] sm:$0x1] %vm3003_vm6, %v5735_v6 }
  0x4b   : > { %5075 = vmatmul.mubr.msk.bf16.gmra.mrb[12].mxu0 %vm226_vm2, %v6051_v14  ;;  %4942 = vmatprep.mubr.msk.bf16.mxu1 %vm226_vm2, %v6051_v14  ;;  %v6182_v16 = vpack.c.bf16 %v1775_v2, %v1774_v1  ;;  %v352_v18 = vld [vmem:[#allocation2 + $0xb0] sm:$0xff]  ;;  %v1776_v20 = vld [vmem:[#allocation2 + $0x182] sm:$0xff]  ;;  %v358_v39 = vld [vmem:[#allocation2 + $0xf8] sm:$0xff]  ;;  %3018 = vst.msk [vmem:[#allocation3 + $0x150] sm:$0x1] %vm3003_vm6, %v5735_v6 }
  0x4c   : > { %5096 = vmatprep.mubr.msk.bf16.mxu0 %vm226_vm2, %v6053_v15  ;;  %v354_v22 = vld [vmem:[#allocation2 + $0xc8] sm:$0xff]  ;;  %v6192_v23 = vpack.c.bf16 %v352_v18, %v351_v17  ;;  %v6194_v25 = vpack.c.bf16 %v1777_v21, %v1776_v20  ;;  %v360_v61 = vld [vmem:[#allocation2 + $0x110] sm:$0xff]  ;;  %v361_v62 = vld [vmem:[#allocation2 + $0x120] sm:$0xff]  ;;  %3019 = vst.msk [vmem:[#allocation3 + $0x168] sm:$0x1] %vm3003_vm6, %v5735_v6 }
  0x4d   : > { %v359_v54 = vld [vmem:[#allocation2 + $0x108] sm:$0xff]  ;;  %v364_v1 = vld [vmem:[#allocation2 + $0x140] sm:$0xff]  ;;  %v365_v2 = vld [vmem:[#allocation2 + $0x150] sm:$0xff]  ;;  %3020 = vst.msk [vmem:[#allocation3 + $0x180] sm:$0x1] %vm3003_vm6, %v5735_v6 }
  0x4e   : > { %v366_v17 = vld [vmem:[#allocation2 + $0x158] sm:$0xff]  ;;  %v367_v20 = vld [vmem:[#allocation2 + $0x168] sm:$0xff]  ;;  %v368_v21 = vld [vmem:[#allocation2 + $0x170] sm:$0xff]  ;;  %3021 = vst.msk [vmem:[#allocation3 + $0x198] sm:$0x1] %vm3003_vm6, %v5735_v6 }
  0x4f   : > { %3023 = vst.msk [vmem:[#allocation3 + $0x29] sm:$0x1] %vm3003_vm6, %v5735_v6  ;;  %3024 = vst.msk [vmem:[#allocation3 + $0x41] sm:$0x1] %vm3003_vm6, %v5735_v6 }
  0x50   : > { %3025 = vst.msk [vmem:[#allocation3 + $0x59] sm:$0x1] %vm3003_vm6, %v5735_v6  ;;  %3026 = vst.msk [vmem:[#allocation3 + $0x71] sm:$0x1] %vm3003_vm6, %v5735_v6 }
  0x51   : > { %3027 = vst.msk [vmem:[#allocation3 + $0x89] sm:$0x1] %vm3003_vm6, %v5735_v6  ;;  %3028 = vst.msk [vmem:[#allocation3 + $0xa1] sm:$0x1] %vm3003_vm6, %v5735_v6 }
  0x52   : > { %4943 = vmatmul.mubr.msk.bf16.gmra.mrb[16].mxu1 %vm226_vm2, %v6067_v26  ;;  %3029 = vst.msk [vmem:[#allocation3 + $0xb9] sm:$0x1] %vm3003_vm6, %v5735_v6  ;;  %3030 = vst.msk [vmem:[#allocation3 + $0xd1] sm:$0x1] %vm3003_vm6, %v5735_v6 }
  0x53   : > { %5097 = vmatmul.mubr.msk.bf16.vlgmr.msra.gmra.mrb[0].mxu0 %vm226_vm2, %v6072_v28  ;;  %4946 = vmatprep.mubr.msk.bf16.mxu1 %vm226_vm2, %v6074_v29  ;;  %3031 = vst.msk [vmem:[#allocation3 + $0xe9] sm:$0x1] %vm3003_vm6, %v5735_v6  ;;  %3032 = vst.msk [vmem:[#allocation3 + $0x101] sm:$0x1] %vm3003_vm6, %v5735_v6 }
  0x54   : > { %5129 = vmatpush3.bf16.msra.mxu0 %v5992_v48  ;;  %5100 = vmatprep.mubr.msk.bf16.mxu0 %vm226_vm2, %v6076_v30  ;;  %v1757_v48 = vld [vmem:[#allocation2 + $0x9a] sm:$0xff]  ;;  %3033 = vst.msk [vmem:[#allocation3 + $0x119] sm:$0x1] %vm3003_vm6, %v5735_v6  ;;  %3034 = vst.msk [vmem:[#allocation3 + $0x131] sm:$0x1] %vm3003_vm6, %v5735_v6 }
  0x55   : > { %5162 = vmatprep.subr.bf16.mxu0 %v6079_v31  ;;  %v6109_v58 = vpack.c.bf16 %v1757_v48, %v1756_v47  ;;  %v1771_v47 = vld [vmem:[#allocation2 + $0x142] sm:$0xff]  ;;  %v6162_v48 = vpack.c.bf16 %v1769_v38, %v1768_v37  ;;  %v357_v38 = vld [vmem:[#allocation2 + $0xf0] sm:$0xff]  ;;  %3035 = vst.msk [vmem:[#allocation3 + $0x149] sm:$0x1] %vm3003_vm6, %v5735_v6  ;;  %3036 = vst.msk [vmem:[#allocation3 + $0x161] sm:$0x1] %vm3003_vm6, %v5735_v6 }
  0x56   : > { %v6166_v52 = vpack.c.bf16 %v1771_v47, %v1770_v46  ;;  %v356_v37 = vld [vmem:[#allocation2 + $0xe0] sm:$0xff]  ;;  %v4704_v46 = vld [vmem:[%s7561_s1 + $0x10] sm:$0x3]  ;;  %v6211_v47 = vpack.c.bf16 %v358_v39, %v357_v38  ;;  %3037 = vst.msk [vmem:[#allocation3 + $0x179] sm:$0x1] %vm3003_vm6, %v5735_v6 }
  0x57   : > { %v6214_v53 = vand.u32 %v4704_v46, %v5827_v5  ;;  %v6226_v5 = vpack.c.bf16 %v360_v61, %v359_v54  ;;  %v2071_v46 = vld [vmem:[#allocation2 + $0x198] sm:$0xff]  ;;  %v2072_v54 = vld [vmem:[#allocation2 + $0x1a0] sm:$0xff]  ;;  %3038 = vst.msk [vmem:[#allocation3 + $0x191] sm:$0x1] %vm3003_vm6, %v5735_v6 }
  0x58   : > { %v2088_v61 = vpack.c.bf16 %v2072_v54, %v2071_v46  ;;  %2998 = vst.msk [vmem:[#allocation3 + $0x10] sm:$0x3] %vm2997_vm7, %v5735_v6  ;;  %3002 = vst.msk [vmem:[#allocation3 + $0x1a8] sm:$0x3] %vm2997_vm7, %v5735_v6 }
  0x59   : > { %3022 = vst.msk [vmem:[#allocation3 + $0x11] sm:$0x1] %vm3003_vm6, %v5735_v6  ;;  %3039 = vst.msk [vmem:[#allocation3 + $0x1a9] sm:$0x1] %vm3003_vm6, %v5735_v6 }
  0x5a   : > { %4947 = vmatmul.mubr.msk.bf16.gmra.mrb[20].mxu1 %vm226_vm2, %v6091_v40 }
  0x5b   : > { %5101 = vmatmul.mubr.msk.bf16.gmra.mrb[4].mxu0 %vm226_vm2, %v6093_v41  ;;  %4950 = vmatprep.mubr.msk.bf16.mxu1 %vm226_vm2, %v6095_v42 }
  0x5c   : > { %5104 = vmatprep.mubr.msk.bf16.mxu0 %vm226_vm2, %v6097_v43 }
  0x62   : > { %4951 = vmatmul.mubr.msk.bf16.gmra.mrb[24].mxu1 %vm226_vm2, %v6107_v57 }
  0x63   : > { %5105 = vmatmul.mubr.msk.bf16.gmra.mrb[8].mxu0 %vm226_vm2, %v6109_v58  ;;  %4954 = vmatprep.mubr.msk.bf16.mxu1 %vm226_vm2, %v6111_v59 }
  0x64   : > { %5108 = vmatprep.mubr.msk.bf16.mxu0 %vm226_vm2, %v6113_v60 }
  0x6a   : > { %4955 = vmatmul.mubr.msk.bf16.gmra.mrb[28].mxu1 %vm226_vm2, %v6123_v9 }
  0x6b   : > { %5109 = vmatmul.mubr.msk.bf16.gmra.mrb[12].mxu0 %vm226_vm2, %v6125_v11  ;;  %4960 = vmatprep.mubr.msk.bf16.mxu1 %vm226_vm2, %v369_v12  ;;  %v6180_v12 = vpack.c.bf16 %v350_v0, %v349_v63  ;;  %v362_v63 = vld [vmem:[#allocation2 + $0x128] sm:$0xff] }
  0x6c   : > { %5112 = vmatprep.mubr.msk.bf16.mxu0 %vm226_vm2, %v6127_v13  ;;  %v6228_v0 = vpack.c.bf16 %v362_v63, %v361_v62 }
  0x72   : > { %4961 = vmatmul.mubr.msk.bf16.vlgmr.msra.gmra.mrb[0].mxu1 %vm226_vm2, %v6136_v24 }
  0x73   : > { %4993 = vmatpush3.bf16.msra.mxu1 %v5999_v50  ;;  %5113 = vmatmul.mubr.msk.bf16.gmra.mrb[16].mxu0 %vm226_vm2, %v6141_v27  ;;  %v6160_v50 = vpack.c.bf16 %v344_v36, %v343_v35  ;;  %v6196_v35 = vpack.c.bf16 %v354_v22, %v353_v19  ;;  %v355_v36 = vld [vmem:[#allocation2 + $0xd8] sm:$0xff]  ;;  %v6240_v19 = vpack.c.bf16 %v366_v17, %v365_v2  ;;  %v864_v22 = vld [vmem:[#allocation2 + $0x2] sm:$0xff] }
  0x74   : > { %4964 = vmatprep.mubr.msk.bf16.mxu1 %vm226_vm2, %v6143_v32  ;;  %5116 = vmatprep.mubr.msk.bf16.mxu0 %vm226_vm2, %v6145_v33  ;;  %v6206_v44 = vpack.c.bf16 %v356_v37, %v355_v36  ;;  %v865_v36 = vld [vmem:[#allocation2 + $0xa] sm:$0xff]  ;;  %v6250_v37 = vpack.c.bf16 %v368_v21, %v367_v20  ;;  %v3243_v17 = vld [vmem:[#allocation3 + $0x2] sm:$0xff] }
  0x75   : > { %5026 = vmatprep.subr.bf16.mxu1 %v6148_v34  ;;  %v896_v38 = vpack.c.bf16 %v865_v36, %v864_v22  ;;  %v3244_v36 = vld [vmem:[#allocation3 + $0xa] sm:$0xff] }
  0x7a   : > { %4965 = vmatmul.mubr.msk.bf16.gmra.mrb[4].mxu1 %vm226_vm2, %v6160_v50 }
  0x7b   : > { %5117 = vmatmul.mubr.msk.bf16.gmra.mrb[20].mxu0 %vm226_vm2, %v6162_v48  ;;  %4968 = vmatprep.mubr.msk.bf16.mxu1 %vm226_vm2, %v6164_v51 }
  0x7c   : > { %5120 = vmatprep.mubr.msk.bf16.mxu0 %vm226_vm2, %v6166_v52 }
  0x82   : > { %4969 = vmatmul.mubr.msk.bf16.gmra.mrb[8].mxu1 %vm226_vm2, %v6176_v3 }
  0x83   : > { %5121 = vmatmul.mubr.msk.bf16.gmra.mrb[24].mxu0 %vm226_vm2, %v6178_v4  ;;  %4972 = vmatprep.mubr.msk.bf16.mxu1 %vm226_vm2, %v6180_v12 }
  0x84   : > { %5124 = vmatprep.mubr.msk.bf16.mxu0 %vm226_vm2, %v6182_v16 }
  0x8a   : > { %4973 = vmatmul.mubr.msk.bf16.gmra.mrb[12].mxu1 %vm226_vm2, %v6192_v23 }
  0x8b   : > { %5125 = vmatmul.mubr.msk.bf16.gmra.mrb[28].mxu0 %vm226_vm2, %v6194_v25  ;;  %4976 = vmatprep.mubr.msk.bf16.mxu1 %vm226_vm2, %v6196_v35 }
  0x8c   : > { %5130 = vmatprep.mubr.msk.bf16.mxu0 %vm226_vm2, %v6143_v32 }
  0x92   : > { %4977 = vmatmul.mubr.msk.bf16.gmra.mrb[16].mxu1 %vm226_vm2, %v6206_v44 }
  0x93   : > { %5131 = vmatmul.mubr.msk.bf16.vlgmr.msra.gmra.mrb[0].mxu0 %vm226_vm2, %v6160_v50  ;;  %4980 = vmatprep.mubr.msk.bf16.mxu1 %vm226_vm2, %v6211_v47 }
  0x94   : > { %5163 = vmatpush3.bf16.msra.mxu0 %v6079_v31  ;;  %5134 = vmatprep.mubr.msk.bf16.mxu0 %vm226_vm2, %v6164_v51  ;;  %v363_v31 = vld [vmem:[#allocation2 + $0x138] sm:$0xff] }
  0x95   : > { %5196 = vmatprep.subr.bf16.mxu0 %v6214_v53  ;;  %v6238_v18 = vpack.c.bf16 %v364_v1, %v363_v31 }
  0x9a   : > { %4981 = vmatmul.mubr.msk.bf16.gmra.mrb[20].mxu1 %vm226_vm2, %v6226_v5 }
  0x9b   : > { %5135 = vmatmul.mubr.msk.bf16.gmra.mrb[4].mxu0 %vm226_vm2, %v6176_v3  ;;  %4984 = vmatprep.mubr.msk.bf16.mxu1 %vm226_vm2, %v6228_v0 }
  0x9c   : > { %5138 = vmatprep.mubr.msk.bf16.mxu0 %vm226_vm2, %v6180_v12 }
  0xa2   : > { %4985 = vmatmul.mubr.msk.bf16.gmra.mrb[24].mxu1 %vm226_vm2, %v6238_v18 }
  0xa3   : > { %5139 = vmatmul.mubr.msk.bf16.gmra.mrb[8].mxu0 %vm226_vm2, %v6192_v23  ;;  %4988 = vmatprep.mubr.msk.bf16.mxu1 %vm226_vm2, %v6240_v19 }
  0xa4   : > { %5142 = vmatprep.mubr.msk.bf16.mxu0 %vm226_vm2, %v6196_v35 }
  0xaa   : > { %4989 = vmatmul.mubr.msk.bf16.gmra.mrb[28].mxu1 %vm226_vm2, %v6250_v37 }
  0xab   : > { %5143 = vmatmul.mubr.msk.bf16.gmra.mrb[12].mxu0 %vm226_vm2, %v6206_v44  ;;  %4994 = vmatprep.mubr.msk.bf16.mxu1 %vm226_vm2, %v896_v38 }
  0xac   : > { %5146 = vmatprep.mubr.msk.bf16.mxu0 %vm226_vm2, %v6211_v47 }
  0xb2   : > { %4995 = vmatmul.mubr.msk.bf16.vlgmr.msra.gmra.mrb[0].mxu1 %vm226_vm2, %v6053_v15  ;;  %v2069_v15 = vld [vmem:[#allocation2 + $0x180] sm:$0xff] }
  0xb3   : > { %5027 = vmatpush3.bf16.msra.mxu1 %v6148_v34  ;;  %5147 = vmatmul.mubr.msk.bf16.gmra.mrb[16].mxu0 %vm226_vm2, %v6226_v5  ;;  %v2070_v34 = vld [vmem:[#allocation2 + $0x188] sm:$0xff] }
  0xb4   : > { %4998 = vmatprep.mubr.msk.bf16.mxu1 %vm226_vm2, %v6072_v28  ;;  %5150 = vmatprep.mubr.msk.bf16.mxu0 %vm226_vm2, %v6228_v0  ;;  %v6277_v39 = vpack.c.bf16 %v2070_v34, %v2069_v15 }
  0xb5   : > { %5230 = vmatprep.subr.bf16.mxu1 %v5912_v10 }
  0xba   : > { %4999 = vmatmul.mubr.msk.bf16.gmra.mrb[4].mxu1 %vm226_vm2, %v6076_v30 }
  0xbb   : > { %5151 = vmatmul.mubr.msk.bf16.gmra.mrb[20].mxu0 %vm226_vm2, %v6238_v18  ;;  %5002 = vmatprep.mubr.msk.bf16.mxu1 %vm226_vm2, %v6093_v41 }
  0xbc   : > { %5154 = vmatprep.mubr.msk.bf16.mxu0 %vm226_vm2, %v6240_v19 }
  0xc2   : > { %5003 = vmatmul.mubr.msk.bf16.gmra.mrb[8].mxu1 %vm226_vm2, %v6097_v43 }
  0xc3   : > { %5155 = vmatmul.mubr.msk.bf16.gmra.mrb[24].mxu0 %vm226_vm2, %v6250_v37  ;;  %5006 = vmatprep.mubr.msk.bf16.mxu1 %vm226_vm2, %v6109_v58 }
  0xc4   : > { %5158 = vmatprep.mubr.msk.bf16.mxu0 %vm226_vm2, %v6277_v39 }
  0xca   : > { %5007 = vmatmul.mubr.msk.bf16.gmra.mrb[12].mxu1 %vm226_vm2, %v6113_v60 }
  0xcb   : > { %5159 = vmatmul.mubr.msk.bf16.gmra.mrb[28].mxu0 %vm226_vm2, %v2088_v61  ;;  %5010 = vmatprep.mubr.msk.bf16.mxu1 %vm226_vm2, %v6125_v11 }
  0xcc   : > { %5164 = vmatprep.mubr.msk.bf16.mxu0 %vm226_vm2, %v5989_v45  ;;  %v2364_v45 = vld [vmem:[#allocation2 + $0x189] sm:$0xff] }
  0xd2   : > { %5011 = vmatmul.mubr.msk.bf16.gmra.mrb[16].mxu1 %vm226_vm2, %v6127_v13 }
  0xd3   : > { %5165 = vmatmul.mubr.msk.bf16.vlgmr.msra.gmra.mrb[0].mxu0 %vm226_vm2, %v5996_v49  ;;  %5014 = vmatprep.mubr.msk.bf16.mxu1 %vm226_vm2, %v6141_v27 }
  0xd4   : > { %5197 = vmatpush3.bf16.msra.mxu0 %v6214_v53  ;;  %5168 = vmatprep.mubr.msk.bf16.mxu0 %vm226_vm2, %v6011_v55  ;;  %v2365_v55 = vld [vmem:[#allocation2 + $0x199] sm:$0xff] }
  0xd5   : > { %v3143_v53 = vld [vmem:[#allocation3 + $0x9] sm:$0xff] }
  0xda   : > { %5015 = vmatmul.mubr.msk.bf16.gmra.mrb[20].mxu1 %vm226_vm2, %v6145_v33 }
  0xdb   : > { %5169 = vmatmul.mubr.msk.bf16.gmra.mrb[4].mxu0 %vm226_vm2, %v6013_v56  ;;  %5018 = vmatprep.mubr.msk.bf16.mxu1 %vm226_vm2, %v6162_v48  ;;  %v2366_v56 = vld [vmem:[#allocation2 + $0x1a1] sm:$0xff] }
  0xdc   : > { %5172 = vmatprep.mubr.msk.bf16.mxu0 %vm226_vm2, %v6039_v7  ;;  %v2382_v7 = vpack.c.bf16 %v2366_v56, %v2365_v55 }
  0xe2   : > { %5019 = vmatmul.mubr.msk.bf16.gmra.mrb[24].mxu1 %vm226_vm2, %v6166_v52 }
  0xe3   : > { %5173 = vmatmul.mubr.msk.bf16.gmra.mrb[8].mxu0 %vm226_vm2, %v6041_v8  ;;  %5022 = vmatprep.mubr.msk.bf16.mxu1 %vm226_vm2, %v6178_v4  ;;  %v2659_v8 = vld [vmem:[#allocation2 + $0x19a] sm:$0xff] }
  0xe4   : > { %5176 = vmatprep.mubr.msk.bf16.mxu0 %vm226_vm2, %v6051_v14  ;;  %v2660_v14 = vld [vmem:[#allocation2 + $0x1a2] sm:$0xff] }
  0xea   : > { %5023 = vmatmul.mubr.msk.bf16.gmra.mrb[28].mxu1 %vm226_vm2, %v6182_v16 }
  0xeb   : > { %5177 = vmatmul.mubr.msk.bf16.gmra.mrb[12].mxu0 %vm226_vm2, %v6067_v26  ;;  %5028 = vmatprep.mubr.msk.bf16.mxu1 %vm226_vm2, %v6136_v24 }
  0xec   : > { %5180 = vmatprep.mubr.msk.bf16.mxu0 %vm226_vm2, %v6074_v29 }
  0xf2   : > { %5029 = vmatmul.mubr.msk.bf16.vlgmr.msra.gmra.mrb[0].mxu1 %vm226_vm2, %v6143_v32  ;;  %v6517_v32 = vld [vmem:[%s7562_s2] ss:$0 sm:$0xff] }
  0xf3   : > { %5231 = vmatpush3.bf16.msra.mxu1 %v5912_v10  ;;  %5181 = vmatmul.mubr.msk.bf16.gmra.mrb[16].mxu0 %vm226_vm2, %v6091_v40  ;;  %v2363_v10 = vld [vmem:[#allocation2 + $0x181] sm:$0xff] }
  0xf4   : > { %5032 = vmatprep.mubr.msk.bf16.mxu1 %vm226_vm2, %v6160_v50  ;;  %5184 = vmatprep.mubr.msk.bf16.mxu0 %vm226_vm2, %v6095_v42  ;;  %v2381_v49 = vpack.c.bf16 %v2364_v45, %v2363_v10 }
  0xfa   : > { %5033 = vmatmul.mubr.msk.bf16.gmra.mrb[4].mxu1 %vm226_vm2, %v6164_v51 }
  0xfb   : > { %5185 = vmatmul.mubr.msk.bf16.gmra.mrb[20].mxu0 %vm226_vm2, %v6107_v57  ;;  %5036 = vmatprep.mubr.msk.bf16.mxu1 %vm226_vm2, %v6176_v3 }
  0xfc   : > { %5188 = vmatprep.mubr.msk.bf16.mxu0 %vm226_vm2, %v6111_v59 }
 0x102   : > { %5037 = vmatmul.mubr.msk.bf16.gmra.mrb[8].mxu1 %vm226_vm2, %v6180_v12 }
 0x103   : > { %5189 = vmatmul.mubr.msk.bf16.gmra.mrb[24].mxu0 %vm226_vm2, %v6123_v9  ;;  %5040 = vmatprep.mubr.msk.bf16.mxu1 %vm226_vm2, %v6192_v23  ;;  %v3142_v23 = vld [vmem:[#allocation3 + $0x1] sm:$0xff] }
 0x104   : > { %5192 = vmatprep.mubr.msk.bf16.mxu0 %vm226_vm2, %v2381_v49 }
 0x10a   : > { %5041 = vmatmul.mubr.msk.bf16.gmra.mrb[12].mxu1 %vm226_vm2, %v6196_v35 }
 0x10b   : > { %5193 = vmatmul.mubr.msk.bf16.gmra.mrb[28].mxu0 %vm226_vm2, %v2382_v7  ;;  %5044 = vmatprep.mubr.msk.bf16.mxu1 %vm226_vm2, %v6206_v44  ;;  %v6553_v7 = vld [vmem:[%s7563_s3 + $0x3] ss:$0 sm:$0xff] }
 0x10c   : > { %5198 = vmatprep.mubr.msk.bf16.mxu0 %vm226_vm2, %v6072_v28 }
 0x112   : > { %5045 = vmatmul.mubr.msk.bf16.gmra.mrb[16].mxu1 %vm226_vm2, %v6211_v47  ;;  %v3074_v47 = vld [vmem:[#allocation3 + $0x8] sm:$0xff] }
 0x113   : > { %5199 = vmatmul.mubr.msk.bf16.vlgmr.msra.gmra.mrb[0].mxu0 %vm226_vm2, %v6076_v30  ;;  %5048 = vmatprep.mubr.msk.bf16.mxu1 %vm226_vm2, %v6226_v5 }
 0x114   : > { %5202 = vmatprep.mubr.msk.bf16.mxu0 %vm226_vm2, %v6093_v41 }
 0x11a   : > { %5049 = vmatmul.mubr.msk.bf16.gmra.mrb[20].mxu1 %vm226_vm2, %v6228_v0 }
 0x11b   : > { %5203 = vmatmul.mubr.msk.bf16.gmra.mrb[4].mxu0 %vm226_vm2, %v6097_v43  ;;  %5052 = vmatprep.mubr.msk.bf16.mxu1 %vm226_vm2, %v6238_v18  ;;  %v6539_v18 = vld [vmem:[%s7563_s3 + $0x2] ss:$0 sm:$0xff] }
 0x11c   : > { %5206 = vmatprep.mubr.msk.bf16.mxu0 %vm226_vm2, %v6109_v58  ;;  %v3280_v46 = vmul.f32 %v6539_v18, %v3243_v17 }
 0x122   : > { %5053 = vmatmul.mubr.msk.bf16.gmra.mrb[24].mxu1 %vm226_vm2, %v6240_v19 }
 0x123   : > { %5207 = vmatmul.mubr.msk.bf16.gmra.mrb[8].mxu0 %vm226_vm2, %v6113_v60  ;;  %5056 = vmatprep.mubr.msk.bf16.mxu1 %vm226_vm2, %v6250_v37 }
 0x124   : > { %5210 = vmatprep.mubr.msk.bf16.mxu0 %vm226_vm2, %v6125_v11 }
 0x12a   : > { %5057 = vmatmul.mubr.msk.bf16.gmra.mrb[28].mxu1 %vm226_vm2, %v6277_v39 }
 0x12b   : > { %5211 = vmatmul.mubr.msk.bf16.gmra.mrb[12].mxu0 %vm226_vm2, %v6127_v13  ;;  %5078 = vmatprep.mubr.msk.bf16.mxu1 %vm226_vm2, %v6067_v26  ;;  %v2676_v26 = vpack.c.bf16 %v2660_v14, %v2659_v8  ;;  %v6558_v8 = vld [vmem:[%s7563_s3 + $0x6] ss:$0 sm:$0xff] }
 0x12c   : > { %5214 = vmatprep.mubr.msk.bf16.mxu0 %vm226_vm2, %v6141_v27 }
 0x132   : > { %5079 = vmatmul.mubr.msk.bf16.vlgmr.msra.gmra.mrb[16].mxu1 %vm226_vm2, %v6074_v29 }
 0x133   : > { %5215 = vmatmul.mubr.msk.bf16.gmra.mrb[16].mxu0 %vm226_vm2, %v6145_v33  ;;  %5082 = vmatprep.mubr.msk.bf16.mxu1 %vm226_vm2, %v6091_v40 }
 0x134   : > { %5218 = vmatprep.mubr.msk.bf16.mxu0 %vm226_vm2, %v6162_v48 }
 0x13a   : > { %5083 = vmatmul.mubr.msk.bf16.gmra.mrb[20].mxu1 %vm226_vm2, %v6095_v42 }
 0x13b   : > { %5219 = vmatmul.mubr.msk.bf16.gmra.mrb[20].mxu0 %vm226_vm2, %v6166_v52  ;;  %5086 = vmatprep.mubr.msk.bf16.mxu1 %vm226_vm2, %v6107_v57  ;;  %v3073_v52 = vld [vmem:[#allocation3] sm:$0xff] }
 0x13c   : > { %5222 = vmatprep.mubr.msk.bf16.mxu0 %vm226_vm2, %v6178_v4 }
 0x142   : > { %5087 = vmatmul.mubr.msk.bf16.gmra.mrb[24].mxu1 %vm226_vm2, %v6111_v59 }
 0x143   : > { %5223 = vmatmul.mubr.msk.bf16.gmra.mrb[24].mxu0 %vm226_vm2, %v6182_v16  ;;  %5090 = vmatprep.mubr.msk.bf16.mxu1 %vm226_vm2, %v6123_v9  ;;  %v6523_v16 = vld [vmem:[%s7563_s3] ss:$0 sm:$0xff] }
 0x144   : > { %5226 = vmatprep.mubr.msk.bf16.mxu0 %vm226_vm2, %v6194_v25  ;;  %v6528_v25 = vld [vmem:[%s7563_s3 + $0x1] ss:$0 sm:$0xff]  ;;  %v3110_v31 = vmul.f32 %v6523_v16, %v3073_v52  ;;  %v3111_v19 = vmul.f32 %v6523_v16, %v3074_v47 }
 0x145   : > { %v3179_v1 = vmul.f32 %v6528_v25, %v3142_v23  ;;  %v3180_v20 = vmul.f32 %v6528_v25, %v3143_v53 }
 0x147   : > { %v3211_v39 = vadd.f32 %v3179_v1, %v3110_v31  ;;  %v3212_v45 = vadd.f32 %v3180_v20, %v3111_v19 }
 0x14a   : > { %5091 = vmatmul.mubr.msk.bf16.gmra.mrb[28].mxu1 %vm226_vm2, %v2381_v49  ;;  %v3281_v49 = vmul.f32 %v6539_v18, %v3244_v36 }
 0x14b   : > { %5227 = vmatmul.mubr.msk.bf16.gmra.mrb[28].mxu0 %vm226_vm2, %v2676_v26 }
 0x1c5   : > { %v5030_v28 = vpop.f32.mrb[0].mxu1 }
 0x1c6   : > { %v1293_v29 = vpop.f32.mrb[1].mxu1 }
 0x1c7   : > { %v5031_v30 = vpop.f32.mrb[2].mxu1 }
 0x1c8   : > { %v1296_v40 = vpop.f32.mrb[3].mxu1 }
 0x1cd   : > { %v5034_v41 = vpop.f32.mrb[4].mxu1 }
 0x1ce   : > { %v1309_v42 = vpop.f32.mrb[5].mxu1 }
 0x1cf   : > { %v5035_v43 = vpop.f32.mrb[6].mxu1 }
 0x1d0   : > { %v1312_v57 = vpop.f32.mrb[7].mxu1 }
 0x1d5   : > { %v6498_v58 = vpop.f32.mrb[8].mxu1 }
 0x1d6   : > { %v6500_v59 = vpop.f32.mrb[9].mxu1 }
 0x1d7   : > { %v6502_v60 = vpop.f32.mrb[10].mxu1 }
 0x1d8   : > { %v6504_v9 = vpop.f32.mrb[11].mxu1 }
 0x1dd   : > { %v6506_v11 = vpop.f32.mrb[12].mxu1 }
 0x1de   : > { %v6508_v13 = vpop.f32.mrb[13].mxu1 }
 0x1df   : > { %v6510_v6 = vpop.f32.mrb[14].mxu1 }
 0x1e0   : > { %v6512_v24 = vpop.f32.mrb[15].mxu1 }
 0x1e6   : > { %v5200_v27 = vpop.f32.mrb[0].mxu0 }
 0x1e7   : > { %v5232_v33 = vadd.f32 %v5200_v27, %v5030_v28  ;;  %v2764_v50 = vpop.f32.mrb[1].mxu0  ;;  %v6564_v28 = vld [vmem:[%s7563_s3 + $0x4] ss:$0 sm:$0xff] }
 0x1e8   : > { %v5233_v48 = vadd.f32 %v2764_v50, %v1293_v29  ;;  %v5201_v51 = vpop.f32.mrb[2].mxu0  ;;  %v6569_v29 = vld [vmem:[%s7563_s3 + $0x7] ss:$0 sm:$0xff] }
 0x1e9   : > { %v2932_v3 = vadd.f32 %v5232_v33, %v6517_v32  ;;  %v5234_v4 = vadd.f32 %v5201_v51, %v5031_v30  ;;  %v2767_v12 = vpop.f32.mrb[3].mxu0  ;;  %v3313_v51 = vadd.f32 %v3281_v49, %v3212_v45 }
 0x1ea   : > { %v2930_v35 = vadd.f32 %v5233_v48, %v6517_v32  ;;  %v5235_v44 = vadd.f32 %v2767_v12, %v1296_v40  ;;  %v6589_v12 = vld [vmem:[%s7563_s3 + $0x5] ss:$0 sm:$0xff] }
 0x1eb   : > { %v2964_v62 = vmax.f32 %v2932_v3, 0.0  ;;  %v2933_v63 = vadd.f32 %v5234_v4, %v6517_v32 }
 0x1ec   : > { %v2962_v5 = vmax.f32 %v2930_v35, 0.0  ;;  %v2931_v0 = vadd.f32 %v5235_v44, %v6517_v32 }
 0x1ed   : > { %3043 = vst.msk [vmem:[#allocation3 + $0x31] sm:$0xff] %vm2994_vm5, %v2964_v62  ;;  %v2965_v2 = vmax.f32 %v2933_v63, 0.0 }
 0x1ee   : > { %3041 = vst.msk [vmem:[#allocation3 + $0x19] sm:$0xff] %vm2994_vm5, %v2962_v5  ;;  %v2963_v21 = vmax.f32 %v2931_v0, 0.0  ;;  %v5204_v22 = vpop.f32.mrb[4].mxu0 }
 0x1ef   : > { %3044 = vst.msk [vmem:[#allocation3 + $0x39] sm:$0xff] %vm2994_vm5, %v2965_v2  ;;  %v5236_v37 = vadd.f32 %v5204_v22, %v5034_v41  ;;  %v2780_v38 = vpop.f32.mrb[5].mxu0  ;;  %v3312_v41 = vadd.f32 %v3280_v46, %v3211_v39 }
 0x1f0   : > { %3042 = vst.msk [vmem:[#allocation3 + $0x21] sm:$0xff] %vm2994_vm5, %v2963_v21  ;;  %v5237_v15 = vadd.f32 %v2780_v38, %v1309_v42  ;;  %v5205_v34 = vpop.f32.mrb[6].mxu0 }
 0x1f1   : > { %v2936_v54 = vadd.f32 %v5236_v37, %v6517_v32  ;;  %v5238_v61 = vadd.f32 %v5205_v34, %v5035_v43  ;;  %v2783_v10 = vpop.f32.mrb[7].mxu0 }
 0x1f2   : > { %v2934_v55 = vadd.f32 %v5237_v15, %v6517_v32  ;;  %v5239_v56 = vadd.f32 %v2783_v10, %v1312_v57  ;;  %v6579_v57 = vld [vmem:[%s7563_s3 + $0x8] ss:$0 sm:$0xff] }
 0x1f3   : > { %v2968_v14 = vmax.f32 %v2936_v54, 0.0  ;;  %v2937_v26 = vadd.f32 %v5238_v61, %v6517_v32 }
 0x1f4   : > { %v2966_v30 = vmax.f32 %v2934_v55, 0.0  ;;  %v2935_v40 = vadd.f32 %v5239_v56, %v6517_v32  ;;  %v6572_v42 = vld [vmem:[#allocation3 + $0x30] sm:$0xff] }
 0x1f5   : > { %v6574_v43 = vld [vmem:[#allocation3 + $0x31] sm:$0xff]  ;;  %3047 = vst.msk [vmem:[#allocation3 + $0x61] sm:$0xff] %vm2994_vm5, %v2968_v14  ;;  %v2969_v27 = vmax.f32 %v2937_v26, 0.0  ;;  %v3445_v50 = vld [vmem:[#allocation3 + $0x19] sm:$0xff]  ;;  %v3685_v48 = vmul.f32 %v6558_v8, %v6572_v42  ;;  %v6599_v47 = vmul.f32 %v6553_v7, %v6572_v42 }
 0x1f6   : > { %v3344_v33 = vld [vmem:[#allocation3 + $0x18] sm:$0xff]  ;;  %3045 = vst.msk [vmem:[#allocation3 + $0x49] sm:$0xff] %vm2994_vm5, %v2966_v30  ;;  %v2967_v52 = vmax.f32 %v2935_v40, 0.0  ;;  %v5208_v3 = vpop.f32.mrb[8].mxu0  ;;  %v3786_v23 = vmul.f32 %v6569_v29, %v6574_v43  ;;  %v3482_v63 = vmul.f32 %v6564_v28, %v3445_v50  ;;  %v3181_v55 = vmul.f32 %v6528_v25, %v3445_v50 }
 0x1f7   : > { %v3381_v4 = vmul.f32 %v6553_v7, %v3344_v33  ;;  %v6593_v35 = vld [vmem:[#allocation3 + $0x32] sm:$0xff]  ;;  %3048 = vst.msk [vmem:[#allocation3 + $0x69] sm:$0xff] %vm2994_vm5, %v2969_v27  ;;  %v5240_v53 = vadd.f32 %v5208_v3, %v6498_v58  ;;  %v2796_v62 = vpop.f32.mrb[9].mxu0  ;;  %v3546_v5 = vld [vmem:[#allocation3 + $0x1a] sm:$0xff]  ;;  %v3112_v2 = vmul.f32 %v6523_v16, %v3344_v33  ;;  %v6612_v21 = vld [vmem:[#allocation3 + $0x22] sm:$0xff] }
 0x1f8   : > { %v6595_v44 = vld [vmem:[#allocation3 + $0x38] sm:$0xff]  ;;  %v3887_v0 = vmul.f32 %v6579_v57, %v6593_v35  ;;  %v3345_v31 = vld [vmem:[#allocation3 + $0x20] sm:$0xff]  ;;  %3046 = vst.msk [vmem:[#allocation3 + $0x51] sm:$0xff] %vm2994_vm5, %v2967_v52  ;;  %v5241_v17 = vadd.f32 %v2796_v62, %v6500_v59  ;;  %v5209_v19 = vpop.f32.mrb[10].mxu0  ;;  %v3583_v15 = vmul.f32 %v6589_v12, %v3546_v5  ;;  %v3282_v27 = vmul.f32 %v6539_v18, %v3546_v5 }
 0x1f9   : > { %v6606_v1 = vld [vmem:[#allocation3 + $0x21] sm:$0xff]  ;;  %v3413_v20 = vadd.f32 %v3381_v4, %v3312_v41  ;;  %v3382_v58 = vmul.f32 %v6553_v7, %v3345_v31  ;;  %v3686_v22 = vmul.f32 %v6558_v8, %v6595_v44  ;;  %v2940_v36 = vadd.f32 %v5240_v53, %v6517_v32  ;;  %v2799_v38 = vpop.f32.mrb[11].mxu0  ;;  %v6623_v61 = vld [vmem:[#allocation3 + $0x39] sm:$0xff] }
 0x1fa   : > { %v5242_v37 = vadd.f32 %v5209_v19, %v6502_v60  ;;  %v3483_v34 = vmul.f32 %v6564_v28, %v6606_v1  ;;  %v2938_v59 = vadd.f32 %v5241_v17, %v6517_v32  ;;  %v5243_v39 = vadd.f32 %v2799_v38, %v6504_v9  ;;  %v6628_v49 = vld [vmem:[#allocation3 + $0x3a] sm:$0xff] }
 0x1fb   : > { %v3514_v46 = vadd.f32 %v3482_v63, %v3413_v20  ;;  %v3414_v54 = vadd.f32 %v3382_v58, %v3313_v51  ;;  %v2972_v10 = vmax.f32 %v2940_v36, 0.0  ;;  %v3584_v60 = vmul.f32 %v6589_v12, %v6612_v21 }
 0x1fc   : > { %v2941_v45 = vadd.f32 %v5242_v37, %v6517_v32  ;;  %v2970_v56 = vmax.f32 %v2938_v59, 0.0  ;;  %v2939_v14 = vadd.f32 %v5243_v39, %v6517_v32  ;;  %v3787_v40 = vmul.f32 %v6569_v29, %v6623_v61 }
 0x1fd   : > { %v3615_v26 = vadd.f32 %v3583_v15, %v3514_v46  ;;  %v3515_v30 = vadd.f32 %v3483_v34, %v3414_v54  ;;  %3051 = vst.msk [vmem:[#allocation3 + $0x91] sm:$0xff] %vm2994_vm5, %v2972_v10  ;;  %v3213_v41 = vadd.f32 %v3181_v55, %v3112_v2  ;;  %v6636_v33 = vld [vmem:[#allocation3 + $0x48] sm:$0xff]  ;;  %v3888_v4 = vmul.f32 %v6579_v57, %v6628_v49 }
 0x1fe   : > { %v2973_v9 = vmax.f32 %v2941_v45, 0.0  ;;  %3049 = vst.msk [vmem:[#allocation3 + $0x79] sm:$0xff] %vm2994_vm5, %v2970_v56  ;;  %v2971_v51 = vmax.f32 %v2939_v14, 0.0  ;;  %v5212_v50 = vpop.f32.mrb[12].mxu0  ;;  %v3484_v5 = vmul.f32 %v6564_v28, %v6574_v43  ;;  %v3585_v2 = vmul.f32 %v6589_v12, %v6593_v35  ;;  %v6658_v54 = vld [vmem:[#allocation3 + $0x49] sm:$0xff] }
 0x1ff   : > { %v3717_v52 = vadd.f32 %v3685_v48, %v3615_v26  ;;  %v3616_v3 = vadd.f32 %v3584_v60, %v3515_v30  ;;  %v5244_v53 = vadd.f32 %v5212_v50, %v6506_v11  ;;  %v2812_v62 = vpop.f32.mrb[13].mxu0  ;;  %v3314_v63 = vadd.f32 %v3282_v27, %v3213_v41  ;;  %v6660_v10 = vld [vmem:[#allocation3 + $0x4a] sm:$0xff] }
 0x200   : > { %3052 = vst.msk [vmem:[#allocation3 + $0x99] sm:$0xff] %vm2994_vm5, %v2973_v9  ;;  %3050 = vst.msk [vmem:[#allocation3 + $0x81] sm:$0xff] %vm2994_vm5, %v2971_v51  ;;  %v5245_v48 = vadd.f32 %v2812_v62, %v6508_v13  ;;  %v5213_v17 = vpop.f32.mrb[14].mxu0  ;;  %v3687_v58 = vmul.f32 %v6558_v8, %v6636_v33  ;;  %v3113_v15 = vmul.f32 %v6523_v16, %v3345_v31  ;;  %v6669_v26 = vld [vmem:[#allocation3 + $0x50] sm:$0xff] }
 0x201   : > { %v3818_v19 = vadd.f32 %v3786_v23, %v3717_v52  ;;  %v3718_v20 = vadd.f32 %v3686_v22, %v3616_v3  ;;  %v2944_v11 = vadd.f32 %v5244_v53, %v6517_v32  ;;  %v5246_v36 = vadd.f32 %v5213_v17, %v6510_v6  ;;  %v2815_v37 = vpop.f32.mrb[15].mxu0 }
 0x202   : > { %v3415_v38 = vadd.f32 %v6599_v47, %v3314_v63  ;;  %v2942_v34 = vadd.f32 %v5245_v48, %v6517_v32  ;;  %v5247_v59 = vadd.f32 %v2815_v37, %v6512_v24  ;;  %v3182_v6 = vmul.f32 %v6528_v25, %v6606_v1 }
 0x203   : > { %v3919_v13 = vadd.f32 %v3887_v0, %v3818_v19  ;;  %v3819_v39 = vadd.f32 %v3787_v40, %v3718_v20  ;;  %v2976_v23 = vmax.f32 %v2944_v11, 0.0  ;;  %v2945_v22 = vadd.f32 %v5246_v36, %v6517_v32 }
 0x204   : > { %v3516_v46 = vadd.f32 %v3484_v5, %v3415_v38  ;;  %v2974_v47 = vmax.f32 %v2942_v34, 0.0  ;;  %v2943_v31 = vadd.f32 %v5247_v59, %v6517_v32  ;;  %v3214_v56 = vadd.f32 %v3182_v6, %v3113_v15 }
 0x205   : > { %v3951_v45 = vsel %vm2994_vm5, %v3919_v13, 0.0  ;;  %v3920_v60 = vadd.f32 %v3888_v4, %v3819_v39  ;;  %3055 = vst.msk [vmem:[#allocation3 + $0xc1] sm:$0xff] %vm2994_vm5, %v2976_v23  ;;  %v2977_v24 = vmax.f32 %v2945_v22, 0.0  ;;  %v5080_v0 = vpop.f32.mrb[16].mxu1  ;;  %v3283_v14 = vmul.f32 %v6539_v18, %v6612_v21  ;;  %v6694_v23 = vld [vmem:[#allocation3 + $0x51] sm:$0xff] }
 0x206   : > { %3952 = vadd.xlane.f32.xlu0 %v3951_v45  ;;  %v3617_v55 = vadd.f32 %v3585_v2, %v3516_v46  ;;  %3053 = vst.msk [vmem:[#allocation3 + $0xa9] sm:$0xff] %vm2994_vm5, %v2974_v47  ;;  %v2975_v1 = vmax.f32 %v2943_v31, 0.0  ;;  %v1651_v30 = vpop.f32.mrb[17].mxu1  ;;  %v5216_v9 = vpop.f32.mrb[16].mxu0  ;;  %v3788_v41 = vmul.f32 %v6569_v29, %v6658_v54  ;;  %v3889_v27 = vmul.f32 %v6579_v57, %v6660_v10  ;;  %v6696_v22 = vld [vmem:[#allocation3 + $0x52] sm:$0xff] }
 0x207   : > { %v3954_v40 = vsel %vm2994_vm5, %v3920_v60, 0.0  ;;  %3056 = vst.msk [vmem:[#allocation3 + $0xc9] sm:$0xff] %vm2994_vm5, %v2977_v24  ;;  %v5248_v51 = vadd.f32 %v5216_v9, %v5080_v0  ;;  %v5081_v50 = vpop.f32.mrb[18].mxu1  ;;  %v2828_v21 = vpop.f32.mrb[17].mxu0  ;;  %v3315_v3 = vadd.f32 %v3283_v14, %v3214_v56  ;;  %v3384_v4 = vmul.f32 %v6553_v7, %v6595_v44 }
 0x208   : > { %v3719_v52 = vadd.f32 %v3687_v58, %v3617_v55  ;;  %3054 = vst.msk [vmem:[#allocation3 + $0xb1] sm:$0xff] %vm2994_vm5, %v2975_v1  ;;  %v5249_v53 = vadd.f32 %v2828_v21, %v1651_v30  ;;  %v1654_v62 = vpop.f32.mrb[19].mxu1  ;;  %v5217_v63 = vpop.f32.mrb[18].mxu0  ;;  %v3485_v5 = vmul.f32 %v6564_v28, %v6623_v61  ;;  %v3586_v2 = vmul.f32 %v6589_v12, %v6628_v49 }
 0x209   : > { %v3688_v48 = vmul.f32 %v6558_v8, %v6669_v26  ;;  %v2948_v17 = vadd.f32 %v5248_v51, %v6517_v32  ;;  %v5250_v19 = vadd.f32 %v5217_v63, %v5081_v50  ;;  %v2831_v20 = vpop.f32.mrb[19].mxu0  ;;  %v3416_v11 = vadd.f32 %v3384_v4, %v3315_v3 }
 0x20a   : > { %3955 = vadd.xlane.f32.xlu0 %v3954_v40  ;;  %v3820_v58 = vadd.f32 %v3788_v41, %v3719_v52  ;;  %v2946_v36 = vadd.f32 %v5249_v53, %v6517_v32  ;;  %v5251_v37 = vadd.f32 %v2831_v20, %v1654_v62  ;;  %v3114_v38 = vmul.f32 %v6523_v16, %v6572_v42  ;;  %v6701_v42 = vld [vmem:[#allocation3 + $0x60] sm:$0xff] }
 0x20b   : > { %v3183_v15 = vmul.f32 %v6528_v25, %v6574_v43  ;;  %v2980_v34 = vmax.f32 %v2948_v17, 0.0  ;;  %v2949_v59 = vadd.f32 %v5250_v19, %v6517_v32  ;;  %v3517_v39 = vadd.f32 %v3485_v5, %v3416_v11  ;;  %v6726_v20 = vld [vmem:[#allocation3 + $0x61] sm:$0xff] }
 0x20c   : > { %v3921_v13 = vadd.f32 %v3889_v27, %v3820_v58  ;;  %v2978_v46 = vmax.f32 %v2946_v36, 0.0  ;;  %v2947_v6 = vadd.f32 %v5251_v37, %v6517_v32  ;;  %v3284_v31 = vmul.f32 %v6539_v18, %v6593_v35 }
 0x20d   : > { %v3215_v47 = vadd.f32 %v3183_v15, %v3114_v38  ;;  %3059 = vst.msk [vmem:[#allocation3 + $0xf1] sm:$0xff] %vm2994_vm5, %v2980_v34  ;;  %v2981_v43 = vmax.f32 %v2949_v59, 0.0  ;;  %v3618_v60 = vadd.f32 %v3586_v2, %v3517_v39  ;;  %v3385_v24 = vmul.f32 %v6553_v7, %v6636_v33  ;;  %v5084_v0 = vpop.f32.mrb[20].mxu1  ;;  %v6730_v38 = vld [vmem:[#allocation3 + $0x62] sm:$0xff] }
 0x20e   : > { %v3957_v45 = vsel %vm2994_vm5, %v3921_v13, 0.0  ;;  %3057 = vst.msk [vmem:[#allocation3 + $0xd9] sm:$0xff] %vm2994_vm5, %v2978_v46  ;;  %v2979_v55 = vmax.f32 %v2947_v6, 0.0  ;;  %v3789_v56 = vmul.f32 %v6569_v29, %v6694_v23  ;;  %v3890_v35 = vmul.f32 %v6579_v57, %v6696_v22  ;;  %v1667_v1 = vpop.f32.mrb[21].mxu1  ;;  %v5220_v30 = vpop.f32.mrb[20].mxu0  ;;  %v6736_v39 = vld [vmem:[#allocation3 + $0x68] sm:$0xff] }
 0x20f   : > { %3958 = vadd.xlane.f32.xlu1 %v3957_v45  ;;  %v3316_v14 = vadd.f32 %v3284_v31, %v3215_v47  ;;  %3060 = vst.msk [vmem:[#allocation3 + $0xf9] sm:$0xff] %vm2994_vm5, %v2981_v43  ;;  %v3720_v9 = vadd.f32 %v3688_v48, %v3618_v60  ;;  %v3486_v40 = vmul.f32 %v6564_v28, %v6658_v54  ;;  %v5085_v51 = vpop.f32.mrb[22].mxu1  ;;  %v2844_v50 = vpop.f32.mrb[21].mxu0  ;;  %v6741_v43 = vld [vmem:[#allocation3 + $0x69] sm:$0xff] }
 0x210   : > { %v3587_v41 = vmul.f32 %v6589_v12, %v6660_v10  ;;  %v3689_v27 = vmul.f32 %v6558_v8, %v6701_v42  ;;  %3058 = vst.msk [vmem:[#allocation3 + $0xe1] sm:$0xff] %vm2994_vm5, %v2979_v55  ;;  %v5252_v52 = vadd.f32 %v5220_v30, %v5084_v0  ;;  %v5253_v3 = vadd.f32 %v2844_v50, %v1667_v1  ;;  %v1670_v4 = vpop.f32.mrb[23].mxu1  ;;  %v5221_v53 = vpop.f32.mrb[22].mxu0 }
 0x211   : > { %v3417_v21 = vadd.f32 %v3385_v24, %v3316_v14  ;;  %v3115_v62 = vmul.f32 %v6523_v16, %v6595_v44  ;;  %v3821_v63 = vadd.f32 %v3789_v56, %v3720_v9  ;;  %v5254_v5 = vadd.f32 %v5221_v53, %v5085_v51  ;;  %v2847_v2 = vpop.f32.mrb[23].mxu0  ;;  %v6751_v56 = vld [vmem:[#allocation3 + $0x6a] sm:$0xff] }
 0x212   : > { %v3184_v48 = vmul.f32 %v6528_v25, %v6623_v61  ;;  %v3285_v17 = vmul.f32 %v6539_v18, %v6628_v49  ;;  %v2952_v58 = vadd.f32 %v5252_v52, %v6517_v32  ;;  %v2950_v11 = vadd.f32 %v5253_v3, %v6517_v32 }
 0x213   : > { %v3518_v19 = vadd.f32 %v3486_v40, %v3417_v21  ;;  %v5255_v36 = vadd.f32 %v2847_v2, %v1670_v4  ;;  %v3922_v37 = vadd.f32 %v3890_v35, %v3821_v63  ;;  %v2953_v44 = vadd.f32 %v5254_v5, %v6517_v32  ;;  %v6777_v4 = vld [vmem:[#allocation3 + $0x79] sm:$0xff] }
 0x214   : > { %v3216_v15 = vadd.f32 %v3184_v48, %v3115_v62  ;;  %v3386_v61 = vmul.f32 %v6553_v7, %v6669_v26  ;;  %v2984_v59 = vmax.f32 %v2952_v58, 0.0  ;;  %v2982_v49 = vmax.f32 %v2950_v11, 0.0 }
 0x215   : > { %v3619_v34 = vadd.f32 %v3587_v41, %v3518_v19  ;;  %v2951_v13 = vadd.f32 %v5255_v36, %v6517_v32  ;;  %v3960_v46 = vsel %vm2994_vm5, %v3922_v37, 0.0  ;;  %v3790_v6 = vmul.f32 %v6569_v29, %v6726_v20  ;;  %v6743_v45 = vpop.f32.mrb[24].mxu1  ;;  %v6764_v41 = vld [vmem:[#allocation3 + $0x78] sm:$0xff] }
 0x216   : > { %v2985_v47 = vmax.f32 %v2953_v44, 0.0  ;;  %v3317_v31 = vadd.f32 %v3285_v17, %v3216_v15  ;;  %3961 = vadd.xlane.f32.xlu1 %v3960_v46  ;;  %v3891_v24 = vmul.f32 %v6579_v57, %v6730_v38  ;;  %3063 = vst.msk [vmem:[#allocation3 + $0x121] sm:$0xff] %vm2994_vm5, %v2984_v59  ;;  %3061 = vst.msk [vmem:[#allocation3 + $0x109] sm:$0xff] %vm2994_vm5, %v2982_v49  ;;  %v6753_v35 = vpop.f32.mrb[25].mxu1  ;;  %v6755_v14 = vpop.f32.mrb[24].mxu0  ;;  %v6801_v15 = vld [vmem:[#allocation3 + $0x80] sm:$0xff] }
 0x217   : > { %v3721_v60 = vadd.f32 %v3689_v27, %v3619_v34  ;;  %v2983_v0 = vmax.f32 %v2951_v13, 0.0  ;;  %v3487_v55 = vmul.f32 %v6564_v28, %v6694_v23  ;;  %v3588_v30 = vmul.f32 %v6589_v12, %v6696_v22  ;;  %v6766_v27 = vpop.f32.mrb[26].mxu1  ;;  %v6768_v51 = vpop.f32.mrb[25].mxu0 }
 0x218   : > { %3064 = vst.msk [vmem:[#allocation3 + $0x129] sm:$0xff] %vm2994_vm5, %v2985_v47  ;;  %v3418_v1 = vadd.f32 %v3386_v61, %v3317_v31  ;;  %v3690_v9 = vmul.f32 %v6558_v8, %v6736_v39  ;;  %v3116_v40 = vmul.f32 %v6523_v16, %v6636_v33  ;;  %v3791_v21 = vmul.f32 %v6569_v29, %v6741_v43  ;;  %v6779_v33 = vpop.f32.mrb[27].mxu1  ;;  %v6781_v53 = vpop.f32.mrb[26].mxu0  ;;  %v6814_v47 = vld [vmem:[#allocation3 + $0x82] sm:$0xff] }
 0x219   : > { %v3822_v50 = vadd.f32 %v3790_v6, %v3721_v60  ;;  %3062 = vst.msk [vmem:[#allocation3 + $0x111] sm:$0xff] %vm2994_vm5, %v2983_v0  ;;  %v3185_v52 = vmul.f32 %v6528_v25, %v6658_v54  ;;  %v3286_v3 = vmul.f32 %v6539_v18, %v6660_v10  ;;  %v3892_v63 = vmul.f32 %v6579_v57, %v6751_v56  ;;  %v6789_v54 = vld [vmem:[#allocation3 + $0x7a] sm:$0xff]  ;;  %v2863_v48 = vpop.f32.mrb[27].mxu0 }
 0x21a   : > { %v3519_v62 = vadd.f32 %v3487_v55, %v3418_v1  ;;  %v3387_v5 = vmul.f32 %v6553_v7, %v6701_v42  ;;  %v3488_v2 = vmul.f32 %v6564_v28, %v6726_v20  ;;  %v3589_v19 = vmul.f32 %v6589_v12, %v6730_v38  ;;  %v6812_v6 = vld [vmem:[#allocation3 + $0x81] sm:$0xff] }
 0x21b   : > { %v3923_v10 = vadd.f32 %v3891_v24, %v3822_v50  ;;  %v3217_v17 = vadd.f32 %v3185_v52, %v3116_v40  ;;  %v3691_v58 = vmul.f32 %v6558_v8, %v6764_v41  ;;  %v3792_v36 = vmul.f32 %v6569_v29, %v6777_v4  ;;  %v6832_v52 = vld [vmem:[#allocation3 + $0x90] sm:$0xff] }
 0x21c   : > { %v3620_v11 = vadd.f32 %v3588_v30, %v3519_v62  ;;  %v3117_v37 = vmul.f32 %v6523_v16, %v6669_v26  ;;  %v3186_v44 = vmul.f32 %v6528_v25, %v6694_v23  ;;  %v3893_v59 = vmul.f32 %v6579_v57, %v6789_v54 }
 0x21d   : > { %v3963_v61 = vsel %vm2994_vm5, %v3923_v10, 0.0  ;;  %v3318_v34 = vadd.f32 %v3286_v3, %v3217_v17  ;;  %v3287_v49 = vmul.f32 %v6539_v18, %v6696_v22  ;;  %v3388_v26 = vmul.f32 %v6553_v7, %v6736_v39  ;;  %v6816_v31 = vpop.f32.mrb[28].mxu1 }
 0x21e   : > { %3964 = vadd.xlane.f32.xlu0 %v3963_v61  ;;  %v3722_v13 = vadd.f32 %v3690_v9, %v3620_v11  ;;  %v3218_v46 = vadd.f32 %v3186_v44, %v3117_v37  ;;  %v3489_v23 = vmul.f32 %v6564_v28, %v6741_v43  ;;  %v3590_v24 = vmul.f32 %v6589_v12, %v6751_v56  ;;  %v6824_v55 = vpop.f32.mrb[29].mxu1  ;;  %v6826_v1 = vpop.f32.mrb[28].mxu0 }
 0x21f   : > { %v3419_v60 = vadd.f32 %v3387_v5, %v3318_v34  ;;  %v3692_v22 = vmul.f32 %v6558_v8, %v6801_v15  ;;  %v3118_v0 = vmul.f32 %v6523_v16, %v6701_v42  ;;  %v3187_v40 = vmul.f32 %v6528_v25, %v6726_v20  ;;  %v6834_v3 = vpop.f32.mrb[30].mxu1  ;;  %v6836_v62 = vpop.f32.mrb[29].mxu0 }
 0x220   : > { %v3823_v30 = vadd.f32 %v3791_v21, %v3722_v13  ;;  %v3319_v9 = vadd.f32 %v3287_v49, %v3218_v46  ;;  %v3288_v50 = vmul.f32 %v6539_v18, %v6730_v38  ;;  %v3793_v42 = vmul.f32 %v6569_v29, %v6812_v6  ;;  %v6844_v20 = vpop.f32.mrb[31].mxu1  ;;  %v6846_v17 = vpop.f32.mrb[30].mxu0 }
 0x221   : > { %v3520_v5 = vadd.f32 %v3488_v2, %v3419_v60  ;;  %v3894_v21 = vmul.f32 %v6579_v57, %v6814_v47  ;;  %v3389_v10 = vmul.f32 %v6553_v7, %v6764_v41  ;;  %v3219_v37 = vadd.f32 %v3187_v40, %v3118_v0  ;;  %v6850_v2 = vpop.f32.mrb[31].mxu0 }
 0x222   : > { %v3924_v38 = vadd.f32 %v3892_v63, %v3823_v30  ;;  %v3420_v11 = vadd.f32 %v3388_v26, %v3319_v9  ;;  %v3490_v44 = vmul.f32 %v6564_v28, %v6777_v4  ;;  %v3591_v34 = vmul.f32 %v6589_v12, %v6789_v54 }
 0x223   : > { %v3621_v61 = vadd.f32 %v3589_v19, %v3520_v5  ;;  %v3693_v49 = vmul.f32 %v6558_v8, %v6832_v52  ;;  %v5256_v13 = vadd.f32 %v6755_v14, %v6743_v45  ;;  %v3320_v26 = vadd.f32 %v3288_v50, %v3219_v37 }
 0x224   : > { %v3966_v46 = vsel %vm2994_vm5, %v3924_v38, 0.0  ;;  %v3521_v63 = vadd.f32 %v3489_v23, %v3420_v11  ;;  %v5257_v60 = vadd.f32 %v6768_v51, %v6753_v35  ;;  %v5258_v30 = vadd.f32 %v6781_v53, %v6766_v27  ;;  %v6870_v11 = vld [vmem:[#allocation3 + $0x91] sm:$0xff] }
 0x225   : > { %3967 = vadd.xlane.f32.xlu1 %v3966_v46  ;;  %v3723_v0 = vadd.f32 %v3691_v58, %v3621_v61  ;;  %v2956_v19 = vadd.f32 %v5256_v13, %v6517_v32  ;;  %v5259_v9 = vadd.f32 %v2863_v48, %v6779_v33  ;;  %v3421_v5 = vadd.f32 %v3389_v10, %v3320_v26  ;;  %v6874_v48 = vld [vmem:[#allocation3 + $0x92] sm:$0xff] }
 0x226   : > { %v3622_v40 = vadd.f32 %v3590_v24, %v3521_v63  ;;  %v2954_v45 = vadd.f32 %v5257_v60, %v6517_v32  ;;  %v3119_v14 = vmul.f32 %v6523_v16, %v6736_v39  ;;  %v2957_v35 = vadd.f32 %v5258_v30, %v6517_v32  ;;  %v6889_v13 = vld [vmem:[#allocation3 + $0x98] sm:$0xff] }
 0x227   : > { %v3824_v23 = vadd.f32 %v3792_v36, %v3723_v0  ;;  %v2988_v50 = vmax.f32 %v2956_v19, 0.0  ;;  %v2955_v51 = vadd.f32 %v5259_v9, %v6517_v32  ;;  %v3522_v38 = vadd.f32 %v3490_v44, %v3421_v5  ;;  %v6891_v46 = vld [vmem:[#allocation3 + $0x99] sm:$0xff] }
 0x228   : > { %v3724_v58 = vadd.f32 %v3692_v22, %v3622_v40  ;;  %v2986_v27 = vmax.f32 %v2954_v45, 0.0  ;;  %v3188_v33 = vmul.f32 %v6528_v25, %v6741_v43  ;;  %v2989_v39 = vmax.f32 %v2957_v35, 0.0  ;;  %v6893_v63 = vld [vmem:[#allocation3 + $0x9a] sm:$0xff]  ;;  %v6912_v45 = vld [vmem:[#allocation3 + $0xa8] sm:$0xff] }
 0x229   : > { %v3925_v53 = vadd.f32 %v3893_v59, %v3824_v23  ;;  %3067 = vst.msk [vmem:[#allocation3 + $0x151] sm:$0xff] %vm2994_vm5, %v2988_v50  ;;  %v2987_v36 = vmax.f32 %v2955_v51, 0.0  ;;  %v3289_v24 = vmul.f32 %v6539_v18, %v6751_v56  ;;  %v3623_v37 = vadd.f32 %v3591_v34, %v3522_v38  ;;  %v6920_v51 = vld [vmem:[#allocation3 + $0xaa] sm:$0xff] }
 0x22a   : > { %v3825_v10 = vadd.f32 %v3793_v42, %v3724_v58  ;;  %3065 = vst.msk [vmem:[#allocation3 + $0x139] sm:$0xff] %vm2994_vm5, %v2986_v27  ;;  %v3220_v22 = vadd.f32 %v3188_v33, %v3119_v14  ;;  %v3390_v44 = vmul.f32 %v6553_v7, %v6801_v15  ;;  %v3794_v59 = vmul.f32 %v6569_v29, %v6870_v11 }
 0x22b   : > { %v3969_v43 = vsel %vm2994_vm5, %v3925_v53, 0.0  ;;  %3068 = vst.msk [vmem:[#allocation3 + $0x159] sm:$0xff] %vm2994_vm5, %v2989_v39  ;;  %3066 = vst.msk [vmem:[#allocation3 + $0x141] sm:$0xff] %vm2994_vm5, %v2987_v36  ;;  %v3725_v56 = vadd.f32 %v3693_v49, %v3623_v37  ;;  %v3895_v42 = vmul.f32 %v6579_v57, %v6874_v48  ;;  %v3491_v26 = vmul.f32 %v6564_v28, %v6812_v6 }
 0x22c   : > { %3970 = vadd.xlane.f32.xlu0 %v3969_v43  ;;  %v3926_v61 = vadd.f32 %v3894_v21, %v3825_v10  ;;  %v3321_v34 = vadd.f32 %v3289_v24, %v3220_v22  ;;  %v3120_v60 = vmul.f32 %v6523_v16, %v6764_v41  ;;  %v3189_v21 = vmul.f32 %v6528_v25, %v6777_v4 }
 0x22d   : > { %v3290_v49 = vmul.f32 %v6539_v18, %v6789_v54  ;;  %v3826_v19 = vadd.f32 %v3794_v59, %v3725_v56  ;;  %v3592_v9 = vmul.f32 %v6589_v12, %v6814_v47  ;;  %v3694_v40 = vmul.f32 %v6558_v8, %v6889_v13  ;;  %v6914_v54 = vld [vmem:[#allocation3 + $0xa9] sm:$0xff] }
 0x22e   : > { %v3972_v0 = vsel %vm2994_vm5, %v3926_v61, 0.0  ;;  %v3422_v30 = vadd.f32 %v3390_v44, %v3321_v34  ;;  %v3795_v41 = vmul.f32 %v6569_v29, %v6891_v46  ;;  %v3896_v4 = vmul.f32 %v6579_v57, %v6893_v63  ;;  %v6937_v44 = vld [vmem:[#allocation3 + $0xb0] sm:$0xff] }
 0x22f   : > { %3973 = vadd.xlane.f32.xlu1 %v3972_v0  ;;  %v3221_v5 = vadd.f32 %v3189_v21, %v3120_v60  ;;  %v3927_v14 = vadd.f32 %v3895_v42, %v3826_v19  ;;  %v3391_v50 = vmul.f32 %v6553_v7, %v6832_v52  ;;  %v3492_v35 = vmul.f32 %v6564_v28, %v6870_v11 }
 0x230   : > { %v3523_v23 = vadd.f32 %v3491_v26, %v3422_v30  ;;  %v3593_v38 = vmul.f32 %v6589_v12, %v6874_v48  ;;  %v3121_v27 = vmul.f32 %v6523_v16, %v6801_v15  ;;  %v3190_v33 = vmul.f32 %v6528_v25, %v6812_v6  ;;  %v6939_v6 = vld [vmem:[#allocation3 + $0xb1] sm:$0xff] }
 0x231   : > { %v3322_v58 = vadd.f32 %v3290_v49, %v3221_v5  ;;  %v3975_v53 = vsel %vm2994_vm5, %v3927_v14, 0.0  ;;  %v3695_v36 = vmul.f32 %v6558_v8, %v6912_v45  ;;  %v3796_v24 = vmul.f32 %v6569_v29, %v6914_v54 }
 0x232   : > { %v3624_v39 = vadd.f32 %v3592_v9, %v3523_v23  ;;  %3976 = vadd.xlane.f32.xlu0 %v3975_v53  ;;  %v3897_v37 = vmul.f32 %v6579_v57, %v6920_v51  ;;  %v3222_v22 = vadd.f32 %v3190_v33, %v3121_v27  ;;  %v3291_v15 = vmul.f32 %v6539_v18, %v6814_v47 }
 0x233   : > { %v3423_v10 = vadd.f32 %v3391_v50, %v3322_v58  ;;  %v3392_v59 = vmul.f32 %v6553_v7, %v6889_v13  ;;  %v3493_v61 = vmul.f32 %v6564_v28, %v6891_v46  ;;  %v3122_v56 = vmul.f32 %v6523_v16, %v6832_v52 }
 0x234   : > { %v3726_v43 = vadd.f32 %v3694_v40, %v3624_v39  ;;  %v3323_v34 = vadd.f32 %v3291_v15, %v3222_v22  ;;  %v3191_v26 = vmul.f32 %v6528_v25, %v6870_v11  ;;  %v3292_v47 = vmul.f32 %v6539_v18, %v6874_v48  ;;  %v6976_v39 = vld [vmem:[#allocation3 + $0xc0] sm:$0xff] }
 0x235   : > { %v3524_v42 = vadd.f32 %v3492_v35, %v3423_v10  ;;  %v3594_v21 = vmul.f32 %v6589_v12, %v6893_v63  ;;  %v3696_v49 = vmul.f32 %v6558_v8, %v6937_v44  ;;  %v3797_v0 = vmul.f32 %v6569_v29, %v6939_v6  ;;  %v3761_v22 = vld [vmem:[#allocation3 + $0xc1] sm:$0xff] }
 0x236   : > { %v3827_v60 = vadd.f32 %v3795_v41, %v3726_v43  ;;  %v3424_v52 = vadd.f32 %v3392_v59, %v3323_v34  ;;  %v3223_v30 = vadd.f32 %v3191_v26, %v3122_v56  ;;  %v3393_v9 = vmul.f32 %v6553_v7, %v6912_v45 }
 0x237   : > { %v3625_v19 = vadd.f32 %v3593_v38, %v3524_v42  ;;  %v3494_v48 = vmul.f32 %v6564_v28, %v6914_v54  ;;  %v3595_v40 = vmul.f32 %v6589_v12, %v6920_v51  ;;  %v5260_v41 = vadd.f32 %v6826_v1, %v6816_v31  ;;  %v6973_v31 = vld [vmem:[#allocation3 + $0xb2] sm:$0xff] }
 0x238   : > { %v3928_v11 = vadd.f32 %v3896_v4, %v3827_v60  ;;  %v3525_v14 = vadd.f32 %v3493_v61, %v3424_v52  ;;  %v3324_v23 = vadd.f32 %v3292_v47, %v3223_v30  ;;  %v5261_v50 = vadd.f32 %v6836_v62, %v6824_v55 }
 0x239   : > { %v3727_v5 = vadd.f32 %v3695_v36, %v3625_v19  ;;  %v2960_v58 = vadd.f32 %v5260_v41, %v6517_v32  ;;  %v5262_v4 = vadd.f32 %v6846_v17, %v6834_v3  ;;  %v5263_v38 = vadd.f32 %v6850_v2, %v6844_v20 }
 0x23a   : > { %v3978_v35 = vsel %vm2994_vm5, %v3928_v11, 0.0  ;;  %v3626_v33 = vadd.f32 %v3594_v21, %v3525_v14  ;;  %v3425_v1 = vadd.f32 %v3393_v9, %v3324_v23  ;;  %v2958_v53 = vadd.f32 %v5261_v50, %v6517_v32 }
 0x23b   : > { %3979 = vadd.xlane.f32.xlu1 %v3978_v35  ;;  %v3828_v27 = vadd.f32 %v3796_v24, %v3727_v5  ;;  %v2992_v55 = vmax.f32 %v2960_v58, 0.0  ;;  %v2961_v62 = vadd.f32 %v5262_v4, %v6517_v32  ;;  %v2959_v36 = vadd.f32 %v5263_v38, %v6517_v32  ;;  %v7016_v4 = vld [vmem:[#allocation3 + $0xd8] sm:$0xff] }
 0x23c   : > { %v3123_v3 = vmul.f32 %v6523_v16, %v6889_v13  ;;  %v3728_v20 = vadd.f32 %v3696_v49, %v3626_v33  ;;  %v3526_v2 = vadd.f32 %v3494_v48, %v3425_v1  ;;  %v2990_v24 = vmax.f32 %v2958_v53, 0.0  ;;  %v3661_v49 = vld [vmem:[#allocation3 + $0xc8] sm:$0xff] }
 0x23d   : > { %v3929_v17 = vadd.f32 %v3897_v37, %v3828_v27  ;;  %v3898_v10 = vmul.f32 %v6579_v57, %v6973_v31  ;;  %3071 = vst.msk [vmem:[#allocation3 + $0x181] sm:$0xff] %vm2994_vm5, %v2992_v55  ;;  %v2993_v15 = vmax.f32 %v2961_v62, 0.0  ;;  %v2991_v43 = vmax.f32 %v2959_v36, 0.0  ;;  %v3862_v37 = vld [vmem:[#allocation3 + $0xc2] sm:$0xff]  ;;  %v3763_v62 = vld [vmem:[#allocation3 + $0xd9] sm:$0xff] }
 0x23e   : > { %v3192_v59 = vmul.f32 %v6528_v25, %v6891_v46  ;;  %v3829_v61 = vadd.f32 %v3797_v0, %v3728_v20  ;;  %v3627_v56 = vadd.f32 %v3595_v40, %v3526_v2  ;;  %v3697_v13 = vmul.f32 %v6558_v8, %v6976_v39  ;;  %3069 = vst.msk [vmem:[#allocation3 + $0x169] sm:$0xff] %vm2994_vm5, %v2990_v24  ;;  %v3762_v0 = vld [vmem:[#allocation3 + $0xc9] sm:$0xff]  ;;  %v3864_v36 = vld [vmem:[#allocation3 + $0xda] sm:$0xff] }
 0x23f   : > { %v3981_v32 = vsel %vm2994_vm5, %v3929_v17, 0.0  ;;  %3072 = vst.msk [vmem:[#allocation3 + $0x189] sm:$0xff] %vm2994_vm5, %v2993_v15  ;;  %3070 = vst.msk [vmem:[#allocation3 + $0x171] sm:$0xff] %vm2994_vm5, %v2991_v43  ;;  %v3293_v34 = vmul.f32 %v6539_v18, %v6893_v63  ;;  %v3394_v46 = vmul.f32 %v6553_v7, %v6937_v44  ;;  %v3798_v60 = vmul.f32 %v6569_v29, %v3761_v22 }
 0x240   : > { %3982 = vadd.xlane.f32.xlu0 %v3981_v32  ;;  %v3224_v42 = vadd.f32 %v3192_v59, %v3123_v3  ;;  %v3930_v26 = vadd.f32 %v3898_v10, %v3829_v61  ;;  %v3729_v47 = vadd.f32 %v3697_v13, %v3627_v56  ;;  %v3124_v19 = vmul.f32 %v6523_v16, %v6912_v45  ;;  %v3863_v45 = vld [vmem:[#allocation3 + $0xca] sm:$0xff]  ;;  %v7032_v59 = vld [vmem:[#allocation3 + $0xe0] sm:$0xff] }
 0x241   : > { %v3193_v52 = vmul.f32 %v6528_v25, %v6914_v54  ;;  %v3294_v30 = vmul.f32 %v6539_v18, %v6920_v51  ;;  %v3899_v11 = vmul.f32 %v6579_v57, %v3862_v37  ;;  %v3495_v40 = vmul.f32 %v6564_v28, %v6939_v6 }
 0x242   : > { %v3325_v21 = vadd.f32 %v3293_v34, %v3224_v42  ;;  %v3984_v63 = vsel %vm2994_vm5, %v3930_v26, 0.0  ;;  %v3830_v9 = vadd.f32 %v3798_v60, %v3729_v47  ;;  %v3596_v41 = vmul.f32 %v6589_v12, %v6973_v31 }
 0x243   : > { %3985 = vadd.xlane.f32.xlu1 %v3984_v63  ;;  %v3225_v5 = vadd.f32 %v3193_v52, %v3124_v19  ;;  %v3698_v54 = vmul.f32 %v6558_v8, %v3661_v49  ;;  %v3799_v51 = vmul.f32 %v6569_v29, %v3762_v0  ;;  %v3125_v23 = vmul.f32 %v6523_v16, %v6937_v44  ;;  %v7049_v19 = vld [vmem:[#allocation3 + $0xe2] sm:$0xff]  ;;  %v7054_v52 = vld [vmem:[%s7563_s3 + $0x1] ss:$0 sm:$0xff] }
 0x244   : > { %v3426_v48 = vadd.f32 %v3394_v46, %v3325_v21  ;;  %v3931_v14 = vadd.f32 %v3899_v11, %v3830_v9  ;;  %v3395_v58 = vmul.f32 %v6553_v7, %v6976_v39  ;;  %v3194_v38 = vmul.f32 %v6528_v25, %v6939_v6  ;;  %v3764_v21 = vld [vmem:[#allocation3 + $0xe1] sm:$0xff]  ;;  %v7058_v11 = vld [vmem:[#allocation3 + $0xf0] sm:$0xff] }
 0x245   : > { %v3326_v35 = vadd.f32 %v3294_v30, %v3225_v5  ;;  %v3900_v33 = vmul.f32 %v6579_v57, %v3863_v45  ;;  %v3496_v1 = vmul.f32 %v6564_v28, %v3761_v22  ;;  %v3597_v53 = vmul.f32 %v6589_v12, %v3862_v37 }
 0x246   : > { %v3527_v50 = vadd.f32 %v3495_v40, %v3426_v48  ;;  %v3987_v27 = vsel %vm2994_vm5, %v3931_v14, 0.0  ;;  %v3226_v3 = vadd.f32 %v3194_v38, %v3125_v23  ;;  %v3295_v17 = vmul.f32 %v6539_v18, %v6973_v31 }
 0x247   : > { %3988 = vadd.xlane.f32.xlu0 %v3987_v27  ;;  %v3427_v55 = vadd.f32 %v3395_v58, %v3326_v35  ;;  %v3699_v6 = vmul.f32 %v6558_v8, %v7016_v4  ;;  %v3396_v20 = vmul.f32 %v6553_v7, %v3661_v49  ;;  %v3126_v2 = vmul.f32 %v6523_v16, %v6976_v39  ;;  %v3866_v58 = vld [vmem:[#allocation3 + $0xf2] sm:$0xff] }
 0x248   : > { %v3628_v44 = vadd.f32 %v3596_v41, %v3527_v50  ;;  %v3195_v24 = vmul.f32 %v6528_v25, %v3761_v22  ;;  %v3327_v43 = vadd.f32 %v3295_v17, %v3226_v3  ;;  %v3296_v32 = vmul.f32 %v6539_v18, %v3862_v37  ;;  %v7046_v18 = vld [vmem:[%s7563_s3] ss:$0 sm:$0xff] }
 0x249   : > { %v3528_v15 = vadd.f32 %v3496_v1, %v3427_v55  ;;  %v3800_v61 = vmul.f32 %v6569_v29, %v3763_v62  ;;  %v3901_v31 = vmul.f32 %v6579_v57, %v3864_v36  ;;  %v3397_v13 = vmul.f32 %v6553_v7, %v7016_v4 }
 0x24a   : > { %v3730_v10 = vadd.f32 %v3698_v54, %v3628_v44  ;;  %v3227_v56 = vadd.f32 %v3195_v24, %v3126_v2  ;;  %v3428_v16 = vadd.f32 %v3396_v20, %v3327_v43  ;;  %v3497_v25 = vmul.f32 %v6564_v28, %v3762_v0  ;;  %v7100_v20 = vld [vmem:[#allocation3 + $0xf9] sm:$0xff]  ;;  %v7107_v43 = vld [vmem:[%s7563_s3 + $0x6] ss:$0 sm:$0xff] }
 0x24b   : > { %v3629_v34 = vadd.f32 %v3597_v53, %v3528_v15  ;;  %v3598_v39 = vmul.f32 %v6589_v12, %v3863_v45  ;;  %v3700_v22 = vmul.f32 %v6558_v8, %v7032_v59  ;;  %v3127_v37 = vmul.f32 %v7046_v18, %v3661_v49  ;;  %v7063_v49 = vld [vmem:[%s7563_s3 + $0x2] ss:$0 sm:$0xff] }
 0x24c   : > { %v3831_v42 = vadd.f32 %v3799_v51, %v3730_v10  ;;  %v3328_v46 = vadd.f32 %v3296_v32, %v3227_v56  ;;  %v3529_v60 = vadd.f32 %v3497_v25, %v3428_v16  ;;  %v3196_v30 = vmul.f32 %v7054_v52, %v3762_v0 }
 0x24d   : > { %v3731_v47 = vadd.f32 %v3699_v6, %v3629_v34  ;;  %v3498_v9 = vmul.f32 %v6564_v28, %v3763_v62  ;;  %v3297_v48 = vmul.f32 %v7063_v49, %v3863_v45  ;;  %v3398_v40 = vmul.f32 %v6553_v7, %v7032_v59  ;;  %v3765_v7 = vld [vmem:[#allocation3 + $0xf1] sm:$0xff] }
 0x24e   : > { %v3932_v26 = vadd.f32 %v3900_v33, %v3831_v42  ;;  %v3429_v63 = vadd.f32 %v3397_v13, %v3328_v46  ;;  %v3630_v14 = vadd.f32 %v3598_v39, %v3529_v60  ;;  %v3228_v0 = vadd.f32 %v3196_v30, %v3127_v37  ;;  %v7075_v33 = vld [vmem:[#allocation3 + $0xf8] sm:$0xff]  ;;  %v7116_v13 = vld [vmem:[%s7563_s3 + $0x3] ss:$0 sm:$0xff]  ;;  %v3666_v39 = vld [vmem:[#allocation3 + $0x108] sm:$0xff] }
 0x24f   : > { %v3832_v5 = vadd.f32 %v3800_v61, %v3731_v47  ;;  %v3801_v28 = vmul.f32 %v6569_v29, %v3764_v21  ;;  %v3902_v54 = vmul.f32 %v6579_v57, %v7049_v19  ;;  %v3599_v23 = vmul.f32 %v6589_v12, %v3864_v36  ;;  %v7111_v61 = vld [vmem:[#allocation3 + $0xfa] sm:$0xff] }
 0x250   : > { %v3990_v41 = vsel %vm2994_vm5, %v3932_v26, 0.0  ;;  %v3530_v51 = vadd.f32 %v3498_v9, %v3429_v63  ;;  %v3732_v35 = vadd.f32 %v3700_v22, %v3630_v14  ;;  %v3701_v45 = vmul.f32 %v6558_v8, %v7058_v11  ;;  %v7085_v8 = vld [vmem:[%s7563_s3 + $0x4] ss:$0 sm:$0xff]  ;;  %v3767_v63 = vld [vmem:[#allocation3 + $0x109] sm:$0xff] }
 0x251   : > { %3991 = vadd.xlane.f32.xlu1 %v3990_v41  ;;  %v3933_v50 = vadd.f32 %v3901_v31, %v3832_v5  ;;  %v3329_v38 = vadd.f32 %v3297_v48, %v3228_v0  ;;  %v3128_v29 = vmul.f32 %v7046_v18, %v7016_v4  ;;  %v3197_v1 = vmul.f32 %v7054_v52, %v3763_v62  ;;  %v7091_v4 = vld [vmem:[%s7563_s3 + $0x7] ss:$0 sm:$0xff]  ;;  %v3868_v0 = vld [vmem:[#allocation3 + $0x10a] sm:$0xff] }
 0x252   : > { %v3631_v27 = vadd.f32 %v3599_v23, %v3530_v51  ;;  %v3298_v57 = vmul.f32 %v7063_v49, %v3864_v36  ;;  %v3833_v44 = vadd.f32 %v3801_v28, %v3732_v35  ;;  %v3499_v3 = vmul.f32 %v7085_v8, %v3764_v21  ;;  %v7097_v36 = vld [vmem:[%s7563_s3 + $0x8] ss:$0 sm:$0xff] }
 0x253   : > { %v3993_v53 = vsel %vm2994_vm5, %v3933_v50, 0.0  ;;  %v3430_v55 = vadd.f32 %v3398_v40, %v3329_v38  ;;  %v3802_v62 = vmul.f32 %v7091_v4, %v3765_v7  ;;  %v3903_v6 = vmul.f32 %v7097_v36, %v3866_v58 }
 0x254   : > { %3994 = vadd.xlane.f32.xlu0 %v3993_v53  ;;  %v3733_v17 = vadd.f32 %v3701_v45, %v3631_v27  ;;  %v3229_v2 = vadd.f32 %v3197_v1, %v3128_v29  ;;  %v3934_v24 = vadd.f32 %v3902_v54, %v3833_v44  ;;  %v3600_v15 = vmul.f32 %v6589_v12, %v7049_v19  ;;  %v7141_v54 = vld [vmem:[#allocation3 + $0x110] sm:$0xff] }
 0x255   : > { %v3531_v10 = vadd.f32 %v3499_v3, %v3430_v55  ;;  %v3702_v32 = vmul.f32 %v7107_v43, %v7075_v33  ;;  %v3399_v12 = vmul.f32 %v7116_v13, %v7058_v11  ;;  %v3129_v42 = vmul.f32 %v7046_v18, %v7032_v59  ;;  %v7132_v59 = vld [vmem:[%s7563_s3 + $0x5] ss:$0 sm:$0xff] }
 0x256   : > { %v3834_v31 = vadd.f32 %v3802_v62, %v3733_v17  ;;  %v3330_v56 = vadd.f32 %v3298_v57, %v3229_v2  ;;  %v3996_v34 = vsel %vm2994_vm5, %v3934_v24, 0.0  ;;  %v3803_v25 = vmul.f32 %v7091_v4, %v7100_v20  ;;  %v3768_v29 = vld [vmem:[#allocation3 + $0x111] sm:$0xff] }
 0x257   : > { %v3632_v16 = vadd.f32 %v3600_v15, %v3531_v10  ;;  %v3198_v22 = vmul.f32 %v7054_v52, %v3764_v21  ;;  %3997 = vadd.xlane.f32.xlu1 %v3996_v34  ;;  %v3904_v37 = vmul.f32 %v7097_v36, %v7111_v61  ;;  %v3500_v47 = vmul.f32 %v7085_v8, %v3765_v7  ;;  %v7150_v1 = vld [vmem:[#allocation3 + $0x112] sm:$0xff]  ;;  %v3668_v10 = vld [vmem:[#allocation3 + $0x120] sm:$0xff] }
 0x258   : > { %v3935_v46 = vadd.f32 %v3903_v6, %v3834_v31  ;;  %v3431_v26 = vadd.f32 %v3399_v12, %v3330_v56  ;;  %v3601_v30 = vmul.f32 %v7132_v59, %v3866_v58  ;;  %v3299_v21 = vmul.f32 %v7063_v49, %v7049_v19  ;;  %v3769_v34 = vld [vmem:[#allocation3 + $0x121] sm:$0xff] }
 0x259   : > { %v3734_v60 = vadd.f32 %v3702_v32, %v3632_v16  ;;  %v3230_v9 = vadd.f32 %v3198_v22, %v3129_v42  ;;  %v3703_v41 = vmul.f32 %v7107_v43, %v3666_v39  ;;  %v3400_v5 = vmul.f32 %v7116_v13, %v7075_v33 }
 0x25a   : > { %v3999_v48 = vsel %vm2994_vm5, %v3935_v46, 0.0  ;;  %v3532_v40 = vadd.f32 %v3500_v47, %v3431_v26  ;;  %v3130_v51 = vmul.f32 %v7046_v18, %v7058_v11  ;;  %v3199_v23 = vmul.f32 %v7054_v52, %v3765_v7 }
 0x25b   : > { %4000 = vadd.xlane.f32.xlu0 %v3999_v48  ;;  %v3835_v14 = vadd.f32 %v3803_v25, %v3734_v60  ;;  %v3331_v28 = vadd.f32 %v3299_v21, %v3230_v9  ;;  %v3804_v50 = vmul.f32 %v7091_v4, %v3767_v63  ;;  %v3501_v35 = vmul.f32 %v7085_v8, %v7100_v20 }
 0x25c   : > { %v3633_v19 = vadd.f32 %v3601_v30, %v3532_v40  ;;  %v3300_v45 = vmul.f32 %v7063_v49, %v3866_v58  ;;  %v3231_v57 = vadd.f32 %v3199_v23, %v3130_v51  ;;  %v3401_v53 = vmul.f32 %v7116_v13, %v3666_v39  ;;  %v7175_v30 = vld [vmem:[#allocation3 + $0x128] sm:$0xff] }
 0x25d   : > { %v3936_v38 = vadd.f32 %v3904_v37, %v3835_v14  ;;  %v3432_v27 = vadd.f32 %v3400_v5, %v3331_v28  ;;  %v3905_v11 = vmul.f32 %v7097_v36, %v3868_v0  ;;  %v3602_v7 = vmul.f32 %v7132_v59, %v7111_v61  ;;  %v3770_v28 = vld [vmem:[#allocation3 + $0x129] sm:$0xff] }
 0x25e   : > { %v3735_v44 = vadd.f32 %v3703_v41, %v3633_v19  ;;  %v3704_v55 = vmul.f32 %v7107_v43, %v7141_v54  ;;  %v3332_v17 = vadd.f32 %v3300_v45, %v3231_v57  ;;  %v3131_v62 = vmul.f32 %v7046_v18, %v7075_v33  ;;  %v3870_v33 = vld [vmem:[#allocation3 + $0x122] sm:$0xff] }
 0x25f   : > { %v4002_v3 = vsel %vm2994_vm5, %v3936_v38, 0.0  ;;  %v3533_v58 = vadd.f32 %v3501_v35, %v3432_v27  ;;  %v3805_v2 = vmul.f32 %v7091_v4, %v3768_v29  ;;  %v3906_v24 = vmul.f32 %v7097_v36, %v7150_v1  ;;  %v3871_v35 = vld [vmem:[#allocation3 + $0x12a] sm:$0xff]  ;;  %v7187_v38 = vld [vmem:[#allocation3 + $0x138] sm:$0xff] }
 0x260   : > { %4003 = vadd.xlane.f32.xlu1 %v4002_v3  ;;  %v3836_v6 = vadd.f32 %v3804_v50, %v3735_v44  ;;  %v3200_v15 = vmul.f32 %v7054_v52, %v7100_v20  ;;  %v3433_v31 = vadd.f32 %v3401_v53, %v3332_v17  ;;  %v3502_v56 = vmul.f32 %v7085_v8, %v3767_v63 }
 0x261   : > { %v3634_v32 = vadd.f32 %v3602_v7, %v3533_v58  ;;  %v3603_v12 = vmul.f32 %v7132_v59, %v3868_v0  ;;  %v3301_v25 = vmul.f32 %v7063_v49, %v7111_v61  ;;  %v3402_v22 = vmul.f32 %v7116_v13, %v7141_v54 }
 0x262   : > { %v3937_v42 = vadd.f32 %v3905_v11, %v3836_v6  ;;  %v3232_v16 = vadd.f32 %v3200_v15, %v3131_v62  ;;  %v3534_v37 = vadd.f32 %v3502_v56, %v3433_v31  ;;  %v3705_v20 = vmul.f32 %v7107_v43, %v3668_v10  ;;  %v3771_v15 = vld [vmem:[#allocation3 + $0x139] sm:$0xff] }
 0x263   : > { %v3736_v46 = vadd.f32 %v3704_v55, %v3634_v32  ;;  %v3132_v26 = vmul.f32 %v7046_v18, %v3666_v39  ;;  %v3201_v9 = vmul.f32 %v7054_v52, %v3767_v63  ;;  %v3302_v21 = vmul.f32 %v7063_v49, %v3868_v0  ;;  %v3872_v32 = vld [vmem:[#allocation3 + $0x13a] sm:$0xff] }
 0x264   : > { %v4005_v47 = vsel %vm2994_vm5, %v3937_v42, 0.0  ;;  %v3333_v60 = vadd.f32 %v3301_v25, %v3232_v16  ;;  %v3635_v48 = vadd.f32 %v3603_v12, %v3534_v37  ;;  %v3806_v40 = vmul.f32 %v7091_v4, %v3769_v34 }
 0x265   : > { %4006 = vadd.xlane.f32.xlu0 %v4005_v47  ;;  %v3837_v61 = vadd.f32 %v3805_v2, %v3736_v46  ;;  %v3907_v41 = vmul.f32 %v7097_v36, %v3870_v33  ;;  %v3503_v14 = vmul.f32 %v7085_v8, %v3768_v29  ;;  %v3604_v39 = vmul.f32 %v7132_v59, %v7150_v1 }
 0x266   : > { %v3434_v5 = vadd.f32 %v3402_v22, %v3333_v60  ;;  %v3233_v51 = vadd.f32 %v3201_v9, %v3132_v26  ;;  %v3737_v19 = vadd.f32 %v3705_v20, %v3635_v48  ;;  %v3706_v63 = vmul.f32 %v7107_v43, %v7175_v30  ;;  %v3671_v20 = vld [vmem:[#allocation3 + $0x140] sm:$0xff] }
 0x267   : > { %v3938_v23 = vadd.f32 %v3906_v24, %v3837_v61  ;;  %v3403_v0 = vmul.f32 %v7116_v13, %v3668_v10  ;;  %v3133_v27 = vmul.f32 %v7046_v18, %v7141_v54  ;;  %v3202_v57 = vmul.f32 %v7054_v52, %v3768_v29  ;;  %v3772_v48 = vld [vmem:[#allocation3 + $0x141] sm:$0xff] }
 0x268   : > { %v3535_v50 = vadd.f32 %v3503_v14, %v3434_v5  ;;  %v3334_v45 = vadd.f32 %v3302_v21, %v3233_v51  ;;  %v3838_v44 = vadd.f32 %v3806_v40, %v3737_v19  ;;  %v3807_v11 = vmul.f32 %v7091_v4, %v3770_v28  ;;  %v3873_v40 = vld [vmem:[#allocation3 + $0x142] sm:$0xff] }
 0x269   : > { %v4008_v53 = vsel %vm2994_vm5, %v3938_v23, 0.0  ;;  %v3504_v7 = vmul.f32 %v7085_v8, %v3769_v34  ;;  %v3234_v58 = vadd.f32 %v3202_v57, %v3133_v27  ;;  %v3303_v17 = vmul.f32 %v7063_v49, %v7150_v1 }
 0x26a   : > { %4009 = vadd.xlane.f32.xlu1 %v4008_v53  ;;  %v3636_v55 = vadd.f32 %v3604_v39, %v3535_v50  ;;  %v3435_v3 = vadd.f32 %v3403_v0, %v3334_v45  ;;  %v3939_v62 = vadd.f32 %v3907_v41, %v3838_v44  ;;  %v3908_v6 = vmul.f32 %v7097_v36, %v3871_v35 }
 0x26b   : > { %v3605_v54 = vmul.f32 %v7132_v59, %v3870_v33  ;;  %v3707_v29 = vmul.f32 %v7107_v43, %v7187_v38  ;;  %v3335_v31 = vadd.f32 %v3303_v17, %v3234_v58  ;;  %v3404_v56 = vmul.f32 %v7116_v13, %v7175_v30 }
 0x26c   : > { %v3738_v2 = vadd.f32 %v3706_v63, %v3636_v55  ;;  %v3536_v24 = vadd.f32 %v3504_v7, %v3435_v3  ;;  %v4011_v12 = vsel %vm2994_vm5, %v3939_v62, 0.0  ;;  %v3134_v1 = vmul.f32 %v7046_v18, %v3668_v10  ;;  %v3672_v63 = vld [vmem:[#allocation3 + $0x150] sm:$0xff] }
 0x26d   : > { %v3203_v42 = vmul.f32 %v7054_v52, %v3769_v34  ;;  %v3304_v16 = vmul.f32 %v7063_v49, %v3870_v33  ;;  %4012 = vadd.xlane.f32.xlu0 %v4011_v12  ;;  %v3436_v46 = vadd.f32 %v3404_v56, %v3335_v31  ;;  %v3505_v37 = vmul.f32 %v7085_v8, %v3770_v28  ;;  %v3773_v55 = vld [vmem:[#allocation3 + $0x151] sm:$0xff] }
 0x26e   : > { %v3839_v25 = vadd.f32 %v3807_v11, %v3738_v2  ;;  %v3637_v22 = vadd.f32 %v3605_v54, %v3536_v24  ;;  %v3808_v26 = vmul.f32 %v7091_v4, %v3771_v15  ;;  %v3909_v47 = vmul.f32 %v7097_v36, %v3872_v32  ;;  %v3874_v62 = vld [vmem:[#allocation3 + $0x152] sm:$0xff] }
 0x26f   : > { %v3235_v60 = vadd.f32 %v3203_v42, %v3134_v1  ;;  %v3405_v9 = vmul.f32 %v7116_v13, %v7187_v38  ;;  %v3537_v34 = vadd.f32 %v3505_v37, %v3436_v46  ;;  %v3606_v33 = vmul.f32 %v7132_v59, %v3871_v35  ;;  %v3673_v12 = vld [vmem:[#allocation3 + $0x158] sm:$0xff] }
 0x270   : > { %v3940_v10 = vadd.f32 %v3908_v6, %v3839_v25  ;;  %v3739_v21 = vadd.f32 %v3707_v29, %v3637_v22  ;;  %v3708_v61 = vmul.f32 %v7107_v43, %v3671_v20  ;;  %v3135_v5 = vmul.f32 %v7046_v18, %v7175_v30  ;;  %v3774_v22 = vld [vmem:[#allocation3 + $0x159] sm:$0xff] }
 0x271   : > { %v3336_v41 = vadd.f32 %v3304_v16, %v3235_v60  ;;  %v3204_v14 = vmul.f32 %v7054_v52, %v3770_v28  ;;  %v3638_v23 = vadd.f32 %v3606_v33, %v3537_v34  ;;  %v3506_v19 = vmul.f32 %v7085_v8, %v3771_v15 }
 0x272   : > { %v4014_v39 = vsel %vm2994_vm5, %v3940_v10, 0.0  ;;  %v3840_v51 = vadd.f32 %v3808_v26, %v3739_v21  ;;  %v3305_v45 = vmul.f32 %v7063_v49, %v3871_v35  ;;  %v3406_v27 = vmul.f32 %v7116_v13, %v3671_v20 }
 0x273   : > { %4015 = vadd.xlane.f32.xlu1 %v4014_v39  ;;  %v3437_v0 = vadd.f32 %v3405_v9, %v3336_v41  ;;  %v3236_v50 = vadd.f32 %v3204_v14, %v3135_v5  ;;  %v3740_v53 = vadd.f32 %v3708_v61, %v3638_v23  ;;  %v3809_v30 = vmul.f32 %v7091_v4, %v3772_v48  ;;  %v3674_v14 = vld [vmem:[#allocation3 + $0x168] sm:$0xff] }
 0x274   : > { %v3941_v57 = vadd.f32 %v3909_v47, %v3840_v51  ;;  %v3910_v28 = vmul.f32 %v7097_v36, %v3873_v40  ;;  %v3607_v11 = vmul.f32 %v7132_v59, %v3872_v32  ;;  %v3709_v7 = vmul.f32 %v7107_v43, %v3672_v63 }
 0x275   : > { %v3538_v44 = vadd.f32 %v3506_v19, %v3437_v0  ;;  %v3337_v3 = vadd.f32 %v3305_v45, %v3236_v50  ;;  %v3841_v17 = vadd.f32 %v3809_v30, %v3740_v53  ;;  %v3136_v35 = vmul.f32 %v7046_v18, %v7187_v38  ;;  %v3775_v45 = vld [vmem:[#allocation3 + $0x169] sm:$0xff] }
 0x276   : > { %v4017_v58 = vsel %vm2994_vm5, %v3941_v57, 0.0  ;;  %v3205_v6 = vmul.f32 %v7054_v52, %v3771_v15  ;;  %v3507_v2 = vmul.f32 %v7085_v8, %v3772_v48  ;;  %v3306_v24 = vmul.f32 %v7063_v49, %v3872_v32  ;;  %v3875_v15 = vld [vmem:[#allocation3 + $0x15a] sm:$0xff] }
 0x277   : > { %4018 = vadd.xlane.f32.xlu0 %v4017_v58  ;;  %v3639_v54 = vadd.f32 %v3607_v11, %v3538_v44  ;;  %v3438_v29 = vadd.f32 %v3406_v27, %v3337_v3  ;;  %v3942_v31 = vadd.f32 %v3910_v28, %v3841_v17  ;;  %v3810_v56 = vmul.f32 %v7091_v4, %v3773_v55  ;;  %v3876_v27 = vld [vmem:[#allocation3 + $0x16a] sm:$0xff] }
 0x278   : > { %v3237_v1 = vadd.f32 %v3205_v6, %v3136_v35  ;;  %v3911_v16 = vmul.f32 %v7097_v36, %v3874_v62  ;;  %v3608_v38 = vmul.f32 %v7132_v59, %v3873_v40  ;;  %v3407_v26 = vmul.f32 %v7116_v13, %v3672_v63  ;;  %v3675_v3 = vld [vmem:[#allocation3 + $0x170] sm:$0xff] }
 0x279   : > { %v3741_v42 = vadd.f32 %v3709_v7, %v3639_v54  ;;  %v3539_v25 = vadd.f32 %v3507_v2, %v3438_v29  ;;  %v4020_v46 = vsel %vm2994_vm5, %v3942_v31, 0.0  ;;  %v3137_v32 = vmul.f32 %v7046_v18, %v3671_v20  ;;  %v3877_v29 = vld [vmem:[#allocation3 + $0x172] sm:$0xff] }
 0x27a   : > { %v3338_v37 = vadd.f32 %v3306_v24, %v3237_v1  ;;  %4021 = vadd.xlane.f32.xlu1 %v4020_v46  ;;  %v3710_v9 = vmul.f32 %v7107_v43, %v3673_v12  ;;  %v3206_v10 = vmul.f32 %v7054_v52, %v3772_v48  ;;  %v3811_v21 = vmul.f32 %v7091_v4, %v3774_v22 }
 0x27b   : > { %v3842_v47 = vadd.f32 %v3810_v56, %v3741_v42  ;;  %v3640_v60 = vadd.f32 %v3608_v38, %v3539_v25  ;;  %v3912_v34 = vmul.f32 %v7097_v36, %v3875_v15  ;;  %v3508_v61 = vmul.f32 %v7085_v8, %v3773_v55 }
 0x27c   : > { %v3439_v33 = vadd.f32 %v3407_v26, %v3338_v37  ;;  %v3238_v39 = vadd.f32 %v3206_v10, %v3137_v32  ;;  %v3307_v20 = vmul.f32 %v7063_v49, %v3873_v40  ;;  %v3609_v23 = vmul.f32 %v7132_v59, %v3874_v62  ;;  %v3676_v32 = vld [vmem:[#allocation3 + $0x180] sm:$0xff] }
 0x27d   : > { %v3943_v41 = vadd.f32 %v3911_v16, %v3842_v47  ;;  %v3742_v5 = vadd.f32 %v3710_v9, %v3640_v60  ;;  %v3408_v19 = vmul.f32 %v7116_v13, %v3673_v12  ;;  %v3138_v48 = vmul.f32 %v7046_v18, %v3672_v63  ;;  %v3776_v63 = vld [vmem:[#allocation3 + $0x171] sm:$0xff]  ;;  %v3777_v47 = vld [vmem:[#allocation3 + $0x181] sm:$0xff] }
 0x27e   : > { %v3540_v51 = vadd.f32 %v3508_v61, %v3439_v33  ;;  %v3339_v57 = vadd.f32 %v3307_v20, %v3238_v39  ;;  %v3207_v53 = vmul.f32 %v7054_v52, %v3773_v55  ;;  %v3711_v28 = vmul.f32 %v7107_v43, %v3674_v14  ;;  %v3878_v33 = vld [vmem:[#allocation3 + $0x182] sm:$0xff] }
 0x27f   : > { %v4023_v0 = vsel %vm2994_vm5, %v3943_v41, 0.0  ;;  %v3843_v50 = vadd.f32 %v3811_v21, %v3742_v5  ;;  %v3509_v40 = vmul.f32 %v7085_v8, %v3774_v22  ;;  %v3308_v44 = vmul.f32 %v7063_v49, %v3874_v62 }
 0x280   : > { %4024 = vadd.xlane.f32.xlu0 %v4023_v0  ;;  %v3641_v30 = vadd.f32 %v3609_v23, %v3540_v51  ;;  %v3440_v7 = vadd.f32 %v3408_v19, %v3339_v57  ;;  %v3239_v58 = vadd.f32 %v3207_v53, %v3138_v48  ;;  %v3409_v17 = vmul.f32 %v7116_v13, %v3674_v14 }
 0x281   : > { %v3944_v11 = vadd.f32 %v3912_v34, %v3843_v50  ;;  %v3812_v6 = vmul.f32 %v7091_v4, %v3775_v45  ;;  %v3913_v55 = vmul.f32 %v7097_v36, %v3876_v27  ;;  %v3610_v54 = vmul.f32 %v7132_v59, %v3875_v15 }
 0x282   : > { %v3743_v35 = vadd.f32 %v3711_v28, %v3641_v30  ;;  %v3541_v24 = vadd.f32 %v3509_v40, %v3440_v7  ;;  %v3340_v31 = vadd.f32 %v3308_v44, %v3239_v58  ;;  %v3139_v62 = vmul.f32 %v7046_v18, %v3673_v12  ;;  %v3778_v28 = vld [vmem:[#allocation3 + $0x189] sm:$0xff]  ;;  %v3678_v44 = vld [vmem:[#allocation3 + $0x198] sm:$0xff] }
 0x283   : > { %v4026_v2 = vsel %vm2994_vm5, %v3944_v11, 0.0  ;;  %v3712_v1 = vmul.f32 %v7107_v43, %v3675_v3  ;;  %v3813_v42 = vmul.f32 %v7091_v4, %v3776_v63  ;;  %v3208_v16 = vmul.f32 %v7054_v52, %v3774_v22 }
 0x284   : > { %4027 = vadd.xlane.f32.xlu1 %v4026_v2  ;;  %v3844_v56 = vadd.f32 %v3812_v6, %v3743_v35  ;;  %v3642_v25 = vadd.f32 %v3610_v54, %v3541_v24  ;;  %v3914_v38 = vmul.f32 %v7097_v36, %v3877_v29  ;;  %v3441_v46 = vadd.f32 %v3409_v17, %v3340_v31  ;;  %v3879_v54 = vld [vmem:[#allocation3 + $0x18a] sm:$0xff]  ;;  %v3779_v24 = vld [vmem:[#allocation3 + $0x199] sm:$0xff] }
 0x285   : > { %v3510_v37 = vmul.f32 %v7085_v8, %v3775_v45  ;;  %v3240_v60 = vadd.f32 %v3208_v16, %v3139_v62  ;;  %v3309_v12 = vmul.f32 %v7063_v49, %v3875_v15  ;;  %v3410_v9 = vmul.f32 %v7116_v13, %v3675_v3 }
 0x286   : > { %v3945_v26 = vadd.f32 %v3913_v55, %v3844_v56  ;;  %v3744_v10 = vadd.f32 %v3712_v1, %v3642_v25  ;;  %v3611_v34 = vmul.f32 %v7132_v59, %v3876_v27  ;;  %v3140_v22 = vmul.f32 %v7046_v18, %v3674_v14  ;;  %v3677_v14 = vld [vmem:[#allocation3 + $0x188] sm:$0xff] }
 0x287   : > { %v3542_v21 = vadd.f32 %v3510_v37, %v3441_v46  ;;  %v3341_v41 = vadd.f32 %v3309_v12, %v3240_v60  ;;  %v3209_v5 = vmul.f32 %v7054_v52, %v3775_v45  ;;  %v3310_v39 = vmul.f32 %v7063_v49, %v3876_v27 }
 0x288   : > { %v4029_v61 = vsel %vm2994_vm5, %v3945_v26, 0.0  ;;  %v3845_v20 = vadd.f32 %v3813_v42, %v3744_v10  ;;  %v3713_v15 = vmul.f32 %v7107_v43, %v3676_v32  ;;  %v3814_v23 = vmul.f32 %v7091_v4, %v3777_v47  ;;  %v3880_v42 = vld [vmem:[#allocation3 + $0x19a] sm:$0xff] }
 0x289   : > { %4030 = vadd.xlane.f32.xlu0 %v4029_v61  ;;  %v3643_v51 = vadd.f32 %v3611_v34, %v3542_v21  ;;  %v3915_v19 = vmul.f32 %v7097_v36, %v3878_v33  ;;  %v3442_v48 = vadd.f32 %v3410_v9, %v3341_v41  ;;  %v3511_v0 = vmul.f32 %v7085_v8, %v3776_v63  ;;  %v3780_v9 = vld [vmem:[#allocation3 + $0x1a1] sm:$0xff] }
 0x28a   : > { %v3241_v50 = vadd.f32 %v3209_v5, %v3140_v22  ;;  %v3946_v57 = vadd.f32 %v3914_v38, %v3845_v20  ;;  %v3612_v45 = vmul.f32 %v7132_v59, %v3877_v29  ;;  %v3411_v27 = vmul.f32 %v7116_v13, %v3676_v32  ;;  %v3881_v22 = vld [vmem:[#allocation3 + $0x1a2] sm:$0xff] }
 0x28b   : > { %v3745_v53 = vadd.f32 %v3713_v15, %v3643_v51  ;;  %v3543_v30 = vadd.f32 %v3511_v0, %v3442_v48  ;;  %v3141_v11 = vmul.f32 %v7046_v18, %v3675_v3  ;;  %v3210_v7 = vmul.f32 %v7054_v52, %v3776_v63 }
 0x28c   : > { %v3342_v40 = vadd.f32 %v3310_v39, %v3241_v50  ;;  %v4032_v58 = vsel %vm2994_vm5, %v3946_v57, 0.0  ;;  %v3714_v35 = vmul.f32 %v7107_v43, %v3677_v14  ;;  %v3512_v6 = vmul.f32 %v7085_v8, %v3777_v47 }
 0x28d   : > { %v3846_v17 = vadd.f32 %v3814_v23, %v3745_v53  ;;  %4033 = vadd.xlane.f32.xlu1 %v4032_v58  ;;  %v3644_v55 = vadd.f32 %v3612_v45, %v3543_v30  ;;  %v3242_v31 = vadd.f32 %v3210_v7, %v3141_v11  ;;  %v3311_v62 = vmul.f32 %v7063_v49, %v3877_v29  ;;  %v3679_v49 = vld [vmem:[#allocation3 + $0x1a0] sm:$0xff] }
 0x28e   : > { %v3443_v2 = vadd.f32 %v3411_v27, %v3342_v40  ;;  %v3815_v18 = vmul.f32 %v7091_v4, %v3778_v28  ;;  %v3613_v52 = vmul.f32 %v7132_v59, %v3878_v33  ;;  %v3715_v3 = vmul.f32 %v7107_v43, %v3678_v44 }
 0x28f   : > { %v3947_v56 = vadd.f32 %v3915_v19, %v3846_v17  ;;  %v3746_v63 = vadd.f32 %v3714_v35, %v3644_v55  ;;  %v3343_v16 = vadd.f32 %v3311_v62, %v3242_v31  ;;  %v3412_v25 = vmul.f32 %v7116_v13, %v3677_v14 }
 0x290   : > { %v3544_v1 = vadd.f32 %v3512_v6, %v3443_v2  ;;  %v3916_v46 = vmul.f32 %v7097_v36, %v3879_v54  ;;  %v3816_v37 = vmul.f32 %v7091_v4, %v3779_v24  ;;  %v3513_v47 = vmul.f32 %v7085_v8, %v3778_v28 }
 0x291   : > { %v4035_v38 = vsel %vm2994_vm5, %v3947_v56, 0.0  ;;  %v3847_v29 = vadd.f32 %v3815_v18, %v3746_v63  ;;  %v3444_v32 = vadd.f32 %v3412_v25, %v3343_v16  ;;  %v3917_v60 = vmul.f32 %v7097_v36, %v3880_v42 }
 0x292   : > { %4036 = vadd.xlane.f32.xlu0 %v4035_v38  ;;  %v3645_v26 = vadd.f32 %v3613_v52, %v3544_v1  ;;  %v3614_v12 = vmul.f32 %v7132_v59, %v3879_v54  ;;  %v5736_v10 = vmov 0   ;;  %v3716_v33 = vmul.f32 %v7107_v43, %v3679_v49  ;;  %v4731_v43 = vld [vmem:[#allocation4] ss:$0 sm:$0xff] }
 0x293   : > { %5532 = vset.pattern.permute.xlu0 %v5736_v10  ;;  %v3948_v13 = vadd.f32 %v3916_v46, %v3847_v29  ;;  %v3545_v34 = vadd.f32 %v3513_v47, %v3444_v32  ;;  %v3817_v39 = vmul.f32 %v7091_v4, %v3780_v9  ;;  %v3918_v59 = vmul.f32 %v7097_v36, %v3881_v22  ;;  %v3953_v48 = vpop.xlane.xlu0 %3952 }
 0x294   : > { %v3747_v21 = vadd.f32 %v3715_v3, %v3645_v26 }
 0x295   : > { %v4038_v61 = vsel %vm2994_vm5, %v3948_v13, 0.0  ;;  %v3646_v5 = vadd.f32 %v3614_v12, %v3545_v34 }
 0x296   : > { %v3848_v41 = vadd.f32 %v3816_v37, %v3747_v21  ;;  %4039 = vadd.xlane.f32.xlu1 %v4038_v61 }
 0x297   : > { %v3748_v20 = vadd.f32 %v3716_v33, %v3646_v5  ;;  %v3956_v0 = vpop.xlane.xlu0 %3955 }
 0x298   : > { %v3949_v8 = vadd.f32 %v3917_v60, %v3848_v41 }
 0x299   : > { %v3849_v15 = vadd.f32 %v3817_v39, %v3748_v20 }
 0x29a   : > { %v4041_v51 = vsel %vm2994_vm5, %v3949_v8, 0.0 }
 0x29b   : > { %4042 = vadd.xlane.f32.xlu0 %v4041_v51  ;;  %v3950_v23 = vadd.f32 %v3918_v59, %v3849_v15 }
 0x29c   : > { %v3959_v53 = vpop.xlane.xlu1 %3958 }
 0x29d   : > { %v4044_v19 = vsel %vm2994_vm5, %v3950_v23, 0.0 }
 0x29e   : > { %4045 = vadd.xlane.f32.xlu1 %v4044_v19 }
 0x2a3   : > { %v3962_v27 = vpop.xlane.xlu1 %3961 }
 0x2ab   : > { %v3965_v14 = vpop.xlane.xlu0 %3964 }
 0x2b1   : > { %4054 = vperm.xlu0 %5532, %v4731_v43  }
 0x2b2   : > { %v3968_v30 = vpop.xlane.xlu1 %3967 }
 0x2b9   : > { %v3971_v50 = vpop.xlane.xlu0 %3970 }
 0x2bc   : > { %v3974_v40 = vpop.xlane.xlu1 %3973 }
 0x2bf   : > { %v3977_v4 = vpop.xlane.xlu0 %3976 }
 0x2c8   : > { %v3980_v11 = vpop.xlane.xlu1 %3979 }
 0x2cd   : > { %v3983_v57 = vpop.xlane.xlu0 %3982 }
 0x2d0   : > { %v3986_v58 = vpop.xlane.xlu1 %3985 }
 0x2d4   : > { %v3989_v45 = vpop.xlane.xlu0 %3988 }
 0x2de   : > { %v3992_v35 = vpop.xlane.xlu1 %3991 }
 0x2e1   : > { %v3995_v36 = vpop.xlane.xlu0 %3994 }
 0x2e4   : > { %v3998_v55 = vpop.xlane.xlu1 %3997 }
 0x2e8   : > { %v4001_v28 = vpop.xlane.xlu0 %4000 }
 0x2ed   : > { %v4004_v2 = vpop.xlane.xlu1 %4003 }
 0x2f2   : > { %v4007_v44 = vpop.xlane.xlu0 %4006 }
 0x2f7   : > { %v4010_v31 = vpop.xlane.xlu1 %4009 }
 0x2fa   : > { %v7297_v7 = vpop.xlane.xlu0 %4012 }
 0x300   : > { %v4016_v18 = vpop.xlane.xlu1 %4015 }
 0x304   : > { %v7299_v17 = vpop.xlane.xlu0 %4018 }
 0x307   : > { %v4022_v25 = vpop.xlane.xlu1 %4021 }
 0x30d   : > { %v7301_v6 = vpop.xlane.xlu0 %4024 }
 0x311   : > { %v4028_v34 = vpop.xlane.xlu1 %4027 }
 0x316   : > { %v7303_v54 = vpop.xlane.xlu0 %4030 }
 0x31a   : > { %v4034_v43 = vpop.xlane.xlu1 %4033 }
 0x31f   : > { %v7305_v24 = vpop.xlane.xlu0 %4036 }
 0x328   : > { %v7307_v62 = vpop.xlane.xlu0 %4042 }
 0x330   : > { %v7309_v56 = vpop.permute.xlu0 %4054 }
 0x331   : > { %v4057_v52 = vadd.f32 %v7309_v56, %v3953_v48  ;;  %v4058_v3 = vadd.f32 %v7309_v56, %v3956_v0  ;;  %v4059_v63 = vadd.f32 %v7309_v56, %v3959_v53  ;;  %v4060_v1 = vadd.f32 %v7309_v56, %v3962_v27 }
 0x332   : > { %v4061_v42 = vadd.f32 %v7309_v56, %v3965_v14  ;;  %v4062_v16 = vadd.f32 %v7309_v56, %v3968_v30  ;;  %v4063_v38 = vadd.f32 %v7309_v56, %v3971_v50  ;;  %v4064_v29 = vadd.f32 %v7309_v56, %v3974_v40 }
 0x333   : > { %v4732_v46 = vmul.f32 -1.442695, %v4057_v52  ;;  %v4733_v37 = vmul.f32 -1.442695, %v4058_v3  ;;  %v4734_v49 = vmul.f32 -1.442695, %v4059_v63  ;;  %v4065_v32 = vadd.f32 %v7309_v56, %v3977_v4 }
 0x334   : > { %v4735_v26 = vmul.f32 -1.442695, %v4060_v1  ;;  %v4736_v47 = vmul.f32 -1.442695, %v4061_v42  ;;  %v4066_v60 = vadd.f32 %v7309_v56, %v3980_v11  ;;  %v4737_v12 = vmul.f32 -1.442695, %v4062_v16 }
 0x335   : > { %5533 = vpow2.f32 %v4732_v46  ;;  %v4067_v9 = vadd.f32 %v7309_v56, %v3983_v57  ;;  %v4738_v10 = vmul.f32 -1.442695, %v4063_v38  ;;  %v4068_v13 = vadd.f32 %v7309_v56, %v3986_v58 }
 0x336   : > { %5535 = vpow2.f32 %v4733_v37  ;;  %v4739_v21 = vmul.f32 -1.442695, %v4064_v29  ;;  %v4069_v33 = vadd.f32 %v7309_v56, %v3989_v45  ;;  %v4740_v22 = vmul.f32 -1.442695, %v4065_v32 }
 0x337   : > { %5537 = vpow2.f32 %v4734_v49  ;;  %v4070_v61 = vadd.f32 %v7309_v56, %v3992_v35  ;;  %v4741_v41 = vmul.f32 -1.442695, %v4066_v60  ;;  %v4071_v5 = vadd.f32 %v7309_v56, %v3995_v36 }
 0x338   : > { %5539 = vpow2.f32 %v4735_v26  ;;  %v4742_v39 = vmul.f32 -1.442695, %v4067_v9  ;;  %v4072_v8 = vadd.f32 %v7309_v56, %v3998_v55  ;;  %v4743_v20 = vmul.f32 -1.442695, %v4068_v13  ;;  %v4040_v55 = vpop.xlane.xlu1 %4039 }
 0x339   : > { %5541 = vpow2.f32 %v4736_v47  ;;  %v4073_v59 = vadd.f32 %v7309_v56, %v4001_v28  ;;  %v4744_v51 = vmul.f32 -1.442695, %v4069_v33  ;;  %v4074_v15 = vadd.f32 %v7309_v56, %v4004_v2 }
 0x33a   : > { %5543 = vpow2.f32 %v4737_v12  ;;  %v4745_v23 = vmul.f32 -1.442695, %v4070_v61  ;;  %v4075_v48 = vadd.f32 %v7309_v56, %v4007_v44  ;;  %v4746_v0 = vmul.f32 -1.442695, %v4071_v5 }
 0x33b   : > { %5545 = vpow2.f32 %v4738_v10  ;;  %v4076_v50 = vadd.f32 %v7309_v56, %v4010_v31  ;;  %v4747_v4 = vmul.f32 -1.442695, %v4072_v8  ;;  %v4077_v53 = vadd.f32 %v7309_v56, %v7297_v7 }
 0x33c   : > { %5547 = vpow2.f32 %v4739_v21  ;;  %v4748_v45 = vmul.f32 -1.442695, %v4073_v59  ;;  %v4078_v36 = vadd.f32 %v7309_v56, %v4016_v18  ;;  %v4749_v30 = vmul.f32 -1.442695, %v4074_v15  ;;  %v4046_v26 = vpop.xlane.xlu1 %4045 }
 0x33d   : > { %5549 = vpow2.f32 %v4740_v22  ;;  %v4079_v40 = vadd.f32 %v7309_v56, %v7299_v17  ;;  %v4750_v44 = vmul.f32 -1.442695, %v4075_v48  ;;  %v4080_v58 = vadd.f32 %v7309_v56, %v4022_v25 }
 0x33e   : > { %5551 = vpow2.f32 %v4741_v41  ;;  %v4751_v7 = vmul.f32 -1.442695, %v4076_v50  ;;  %v4081_v2 = vadd.f32 %v7309_v56, %v7301_v6  ;;  %v4752_v31 = vmul.f32 -1.442695, %v4077_v53 }
 0x33f   : > { %v7329_v19 = vpop.eup %5533  ;;  %5553 = vpow2.f32 %v4742_v39  ;;  %v4082_v17 = vadd.f32 %v7309_v56, %v4028_v34  ;;  %v4753_v52 = vmul.f32 -1.442695, %v4078_v36  ;;  %v4083_v63 = vadd.f32 %v7309_v56, %v7303_v54 }
 0x340   : > { %v7332_v14 = vpop.eup %5535  ;;  %5555 = vpow2.f32 %v4743_v20  ;;  %v4754_v1 = vmul.f32 -1.442695, %v4079_v40  ;;  %v4084_v16 = vadd.f32 %v7309_v56, %v4034_v43  ;;  %v4755_v6 = vmul.f32 -1.442695, %v4080_v58 }
 0x341   : > { %v7335_v57 = vpop.eup %5537  ;;  %5557 = vpow2.f32 %v4744_v51  ;;  %v4085_v38 = vadd.f32 %v7309_v56, %v7305_v24  ;;  %v4756_v46 = vmul.f32 -1.442695, %v4081_v2  ;;  %v4086_v49 = vadd.f32 %v7309_v56, %v4040_v55 }
 0x342   : > { %v7339_v27 = vpop.eup %5539  ;;  %5559 = vpow2.f32 %v4745_v23  ;;  %v4757_v54 = vmul.f32 -1.442695, %v4082_v17  ;;  %v4087_v32 = vadd.f32 %v7309_v56, %v7307_v62  ;;  %v4758_v47 = vmul.f32 -1.442695, %v4083_v63 }
 0x343   : > { %v7342_v28 = vpop.eup %5541  ;;  %5561 = vpow2.f32 %v4746_v0  ;;  %v4088_v12 = vadd.f32 %v7309_v56, %v4046_v26  ;;  %v4759_v9 = vmul.f32 -1.442695, %v4084_v16  ;;  %v4760_v10 = vmul.f32 -1.442695, %v4085_v38 }
 0x344   : > { %v7346_v11 = vpop.eup %5543  ;;  %5563 = vpow2.f32 %v4747_v4  ;;  %v4761_v21 = vmul.f32 -1.442695, %v4086_v49  ;;  %v4762_v33 = vmul.f32 -1.442695, %v4087_v32  ;;  %v4185_v56 = vadd.f32 1.0, %v7329_v19 }
 0x345   : > { %v7349_v35 = vpop.eup %5545  ;;  %5565 = vpow2.f32 %v4748_v45  ;;  %v4763_v62 = vmul.f32 -1.442695, %v4088_v12  ;;  %v4313_v41 = vlaneseq  ;;  %v4186_v39 = vadd.f32 1.0, %v7332_v14 }
 0x346   : > { %v7353_v18 = vpop.eup %5547  ;;  %5567 = vpow2.f32 %v4749_v30  ;;  %v4187_v20 = vadd.f32 1.0, %v7335_v57  ;;  %v4188_v51 = vadd.f32 1.0, %v7339_v27  ;;  %v4189_v23 = vadd.f32 1.0, %v7342_v28 }
 0x347   : > { %v7356_v3 = vpop.eup %5549  ;;  %5569 = vpow2.f32 %v4750_v44  ;;  %v4314_v19 = vand.u32 127, %v4313_v41  ;;  %v4190_v48 = vadd.f32 1.0, %v7346_v11  ;;  %v4191_v14 = vadd.f32 1.0, %v7349_v35 }
 0x348   : > { %v7360_v42 = vpop.eup %5551  ;;  %5571 = vpow2.f32 %v4751_v7  ;;  %v4192_v4 = vadd.f32 1.0, %v7353_v18  ;;  %v4316_v57 = vshrl.u32 %v4313_v41, 7  ;;  %v4193_v45 = vadd.f32 1.0, %v7356_v3 }
 0x349   : > { %v7363_v25 = vpop.eup %5553  ;;  %5573 = vpow2.f32 %v4752_v31  ;;  %v4319_v27 = vadd.s32 4294967288, %v4314_v19  ;;  %v4194_v30 = vadd.f32 1.0, %v7360_v42 }
 0x34a   : > { %v5556_v37 = vpop.eup %5555  ;;  %5575 = vpow2.f32 %v4753_v52  ;;  %v4195_v40 = vadd.f32 1.0, %v7363_v25  ;;  %v7410_v58 = vsub.s32 %v4314_v19, %v4316_v57 }
 0x34b   : > { %v5558_v29 = vpop.eup %5557  ;;  %5577 = vpow2.f32 %v4754_v1  ;;  %v4196_v11 = vadd.f32 1.0, %v5556_v37  ;;  %v7414_v55 = vsub.s32 %v4319_v27, %v4316_v57 }
 0x34c   : > { %v5560_v60 = vpop.eup %5559  ;;  %5579 = vpow2.f32 %v4755_v6  ;;  %v4197_v35 = vadd.f32 1.0, %v5558_v29 }
 0x34d   : > { %v5562_v24 = vpop.eup %5561  ;;  %5581 = vpow2.f32 %v4756_v46  ;;  %v4198_v31 = vadd.f32 1.0, %v5560_v60 }
 0x34e   : > { %v5564_v13 = vpop.eup %5563  ;;  %5583 = vpow2.f32 %v4757_v54  ;;  %v4199_v17 = vadd.f32 1.0, %v5562_v24 }
 0x34f   : > { %v7371_v34 = vpop.eup %5565  ;;  %5585 = vpow2.f32 %v4758_v47  ;;  %v4200_v3 = vadd.f32 1.0, %v5564_v13 }
 0x350   : > { %v7373_v22 = vpop.eup %5567  ;;  %5587 = vpow2.f32 %v4759_v9  ;;  %v4201_v42 = vadd.f32 1.0, %v7371_v34 }
 0x351   : > { %v7375_v61 = vpop.eup %5569  ;;  %5589 = vpow2.f32 %v4760_v10  ;;  %v4202_v25 = vadd.f32 1.0, %v7373_v22 }
 0x352   : > { %v7378_v5 = vpop.eup %5571  ;;  %5591 = vpow2.f32 %v4761_v21  ;;  %v4203_v37 = vadd.f32 1.0, %v7375_v61 }
 0x353   : > { %v7381_v8 = vpop.eup %5573  ;;  %5593 = vpow2.f32 %v4762_v33  ;;  %v4204_v26 = vadd.f32 1.0, %v7378_v5 }
 0x354   : > { %v7384_v59 = vpop.eup %5575  ;;  %5595 = vpow2.f32 %v4763_v62  ;;  %v4205_v60 = vadd.f32 1.0, %v7381_v8 }
 0x355   : > { %v7387_v15 = vpop.eup %5577  ;;  %5597 = vrcp.f32 %v4185_v56  ;;  %v4206_v10 = vadd.f32 1.0, %v7384_v59 }
 0x356   : > { %v7390_v43 = vpop.eup %5579  ;;  %5599 = vrcp.f32 %v4186_v39  ;;  %v4207_v33 = vadd.f32 1.0, %v7387_v15 }
 0x357   : > { %v7393_v0 = vpop.eup %5581  ;;  %5601 = vrcp.f32 %v4187_v20  ;;  %v4208_v56 = vadd.f32 1.0, %v7390_v43 }
 0x358   : > { %v7396_v50 = vpop.eup %5583  ;;  %5603 = vrcp.f32 %v4188_v51  ;;  %v4209_v8 = vadd.f32 1.0, %v7393_v0 }
 0x359   : > { %v7399_v53 = vpop.eup %5585  ;;  %5605 = vrcp.f32 %v4189_v23  ;;  %v4210_v15 = vadd.f32 1.0, %v7396_v50 }
 0x35a   : > { %v7402_v36 = vpop.eup %5587  ;;  %5607 = vrcp.f32 %v4190_v48  ;;  %v4211_v48 = vadd.f32 1.0, %v7399_v53 }
 0x35b   : > { %v7405_v28 = vpop.eup %5589  ;;  %5609 = vrcp.f32 %v4191_v14  ;;  %v4212_v57 = vadd.f32 1.0, %v7402_v36 }
 0x35c   : > { %v7408_v44 = vpop.eup %5591  ;;  %5611 = vrcp.f32 %v4192_v4 }
 0x35d   : > { %v7412_v7 = vpop.eup %5593  ;;  %5613 = vrcp.f32 %v4193_v45 }
 0x35e   : > { %v7416_v2 = vpop.eup %5595  ;;  %5615 = vrcp.f32 %v4194_v30  ;;  %v4213_v30 = vadd.f32 1.0, %v7405_v28 }
 0x35f   : > { %v5598_v18 = vpop.eup %5597  ;;  %5617 = vrcp.f32 %v4195_v40 }
 0x360   : > { %v5600_v52 = vpop.eup %5599  ;;  %5619 = vrcp.f32 %v4196_v11  ;;  %v4318_v63 = vrot.slane %v5598_v18, %v7410_v58 }
 0x361   : > { %v5602_v1 = vpop.eup %5601  ;;  %5621 = vrcp.f32 %v4197_v35  ;;  %v4323_v16 = vrot.slane %v5600_v52, %v7414_v55  ;;  %v4214_v35 = vadd.f32 1.0, %v7408_v44 }
 0x362   : > { %v5604_v6 = vpop.eup %5603  ;;  %5623 = vrcp.f32 %v4198_v31  ;;  %v4329_v38 = vrot.slane %v5602_v1, %v7410_v58 }
 0x363   : > { %v5606_v46 = vpop.eup %5605  ;;  %5625 = vrcp.f32 %v4199_v17  ;;  %v4325_v49 = vsel %vm4324_vm8, %v4323_v16, %v4318_v63  ;;  %v4333_v54 = vrot.slane %v5604_v6, %v7414_v55  ;;  %v4215_v17 = vadd.f32 1.0, %v7412_v7 }
 0x364   : > { %v5608_v29 = vpop.eup %5607  ;;  %5627 = vrcp.f32 %v4200_v3  ;;  %v4338_v32 = vrot.slane %v5606_v46, %v7410_v58  ;;  %v4216_v63 = vadd.f32 1.0, %v7416_v2 }
 0x365   : > { %v5610_v47 = vpop.eup %5609  ;;  %5629 = vrcp.f32 %v4201_v42  ;;  %v4334_v12 = vsel %vm4324_vm8, %v4333_v54, %v4329_v38  ;;  %v4342_v9 = vrot.slane %v5608_v29, %v7414_v55 }
 0x366   : > { %v5612_v24 = vpop.eup %5611  ;;  %5631 = vrcp.f32 %v4202_v25  ;;  %v4347_v13 = vrot.slane %v5610_v47, %v7410_v58  ;;  %v4462_v21 = vsel %vm4461_vm9, %v4334_v12, %v4325_v49 }
 0x367   : > { %v5614_v34 = vpop.eup %5613  ;;  %5633 = vrcp.f32 %v4203_v37  ;;  %v4343_v22 = vsel %vm4324_vm8, %v4342_v9, %v4338_v32  ;;  %v4351_v62 = vrot.slane %v5612_v24, %v7414_v55 }
 0x368   : > { %v5616_v61 = vpop.eup %5615  ;;  %5635 = vrcp.f32 %v4204_v26  ;;  %v4356_v41 = vrot.slane %v5614_v34, %v7410_v58  ;;  %v4464_v5 = vsel %vm4463_vm10, %v4343_v22, %v4462_v21 }
 0x369   : > { %v5618_v39 = vpop.eup %5617  ;;  %5637 = vrcp.f32 %v4205_v60  ;;  %v4352_v20 = vsel %vm4324_vm8, %v4351_v62, %v4347_v13  ;;  %v4360_v59 = vrot.slane %v5616_v61, %v7414_v55 }
 0x36a   : > { %v5620_v51 = vpop.eup %5619  ;;  %5639 = vrcp.f32 %v4206_v10  ;;  %v4365_v23 = vrot.slane %v5618_v39, %v7410_v58  ;;  %v4466_v19 = vsel %vm4465_vm11, %v4352_v20, %v4464_v5 }
 0x36b   : > { %v5622_v43 = vpop.eup %5621  ;;  %5641 = vrcp.f32 %v4207_v33  ;;  %v4361_v0 = vsel %vm4324_vm8, %v4360_v59, %v4356_v41  ;;  %v4369_v14 = vrot.slane %v5620_v51, %v7414_v55 }
 0x36c   : > { %v5624_v4 = vpop.eup %5623  ;;  %5643 = vrcp.f32 %v4208_v56  ;;  %v4374_v45 = vrot.slane %v5622_v43, %v7410_v58  ;;  %v4468_v50 = vsel %vm4467_vm12, %v4361_v0, %v4466_v19 }
 0x36d   : > { %v5626_v27 = vpop.eup %5625  ;;  %5645 = vrcp.f32 %v4209_v8  ;;  %v4370_v53 = vsel %vm4324_vm8, %v4369_v14, %v4365_v23  ;;  %v4378_v40 = vrot.slane %v5624_v4, %v7414_v55 }
 0x36e   : > { %v5628_v11 = vpop.eup %5627  ;;  %5647 = vrcp.f32 %v4210_v15  ;;  %v4383_v36 = vrot.slane %v5626_v27, %v7410_v58  ;;  %v4470_v31 = vsel %vm4469_vm13, %v4370_v53, %v4468_v50 }
 0x36f   : > { %v5630_v18 = vpop.eup %5629  ;;  %5649 = vrcp.f32 %v4211_v48  ;;  %v4379_v52 = vsel %vm4324_vm8, %v4378_v40, %v4374_v45  ;;  %v4387_v28 = vrot.slane %v5628_v11, %v7414_v55 }
 0x370   : > { %v5632_v3 = vpop.eup %5631  ;;  %5651 = vrcp.f32 %v4212_v57  ;;  %v4392_v44 = vrot.slane %v5630_v18, %v7410_v58  ;;  %v4472_v1 = vsel %vm4471_vm14, %v4379_v52, %v4470_v31 }
 0x371   : > { %v5634_v42 = vpop.eup %5633  ;;  %5653 = vrcp.f32 %v4213_v30  ;;  %v4388_v16 = vsel %vm4324_vm8, %v4387_v28, %v4383_v36  ;;  %v4396_v7 = vrot.slane %v5632_v3, %v7414_v55 }
 0x372   : > { %v5636_v6 = vpop.eup %5635  ;;  %5655 = vrcp.f32 %v4214_v35  ;;  %v4401_v25 = vrot.slane %v5634_v42, %v7410_v58  ;;  %v4474_v38 = vsel %vm4473_vm15, %v4388_v16, %v4472_v1 }
 0x373   : > { %v5638_v46 = vpop.eup %5637  ;;  %5657 = vrcp.f32 %v4215_v17  ;;  %v4397_v2 = vsel %vm4324_vm8, %v4396_v7, %v4392_v44  ;;  %v4405_v37 = vrot.slane %v5636_v6, %v7414_v55  ;;  %4484 = vst.msk [vmem:[%s7476_s18] sm:$0xff] %vm2994_vm5, %v4474_v38 }
 0x374   : > { %v5640_v49 = vpop.eup %5639  ;;  %5659 = vrcp.f32 %v4216_v63  ;;  %v4410_v54 = vrot.slane %v5638_v46, %v7410_v58 }
 0x375   : > { %v5642_v29 = vpop.eup %5641  ;;  %v4406_v26 = vsel %vm4324_vm8, %v4405_v37, %v4401_v25  ;;  %v4414_v32 = vrot.slane %v5640_v49, %v7414_v55 }
 0x376   : > { %v5644_v47 = vpop.eup %5643  ;;  %v4419_v60 = vrot.slane %v5642_v29, %v7410_v58  ;;  %v4475_v12 = vsel %vm4461_vm9, %v4406_v26, %v4397_v2 }
 0x377   : > { %v5646_v9 = vpop.eup %5645  ;;  %v4415_v24 = vsel %vm4324_vm8, %v4414_v32, %v4410_v54  ;;  %v4423_v10 = vrot.slane %v5644_v47, %v7414_v55 }
 0x378   : > { %v5648_v13 = vpop.eup %5647  ;;  %v4428_v21 = vrot.slane %v5646_v9, %v7410_v58  ;;  %v4476_v34 = vsel %vm4463_vm10, %v4415_v24, %v4475_v12 }
 0x379   : > { %v5650_v33 = vpop.eup %5649  ;;  %v4424_v22 = vsel %vm4324_vm8, %v4423_v10, %v4419_v60  ;;  %v4432_v62 = vrot.slane %v5648_v13, %v7414_v55 }
 0x37a   : > { %v5652_v61 = vpop.eup %5651  ;;  %v4437_v56 = vrot.slane %v5650_v33, %v7410_v58  ;;  %v4477_v41 = vsel %vm4465_vm11, %v4424_v22, %v4476_v34 }
 0x37b   : > { %v5654_v5 = vpop.eup %5653  ;;  %v4433_v39 = vsel %vm4324_vm8, %v4432_v62, %v4428_v21  ;;  %v4441_v8 = vrot.slane %v5652_v61, %v7414_v55 }
 0x37c   : > { %v5656_v20 = vpop.eup %5655  ;;  %v4446_v59 = vrot.slane %v5654_v5, %v7410_v58  ;;  %v4478_v51 = vsel %vm4467_vm12, %v4433_v39, %v4477_v41 }
 0x37d   : > { %v5658_v15 = vpop.eup %5657  ;;  %v4442_v23 = vsel %vm4324_vm8, %v4441_v8, %v4437_v56  ;;  %v4450_v19 = vrot.slane %v5656_v20, %v7414_v55 }
 0x37e   : > { %v5660_v43 = vpop.eup %5659  ;;  %v4455_v48 = vrot.slane %v5658_v15, %v7410_v58  ;;  %v4479_v0 = vsel %vm4469_vm13, %v4442_v23, %v4478_v51 }
 0x37f   : > { %v4451_v14 = vsel %vm4324_vm8, %v4450_v19, %v4446_v59  ;;  %v4459_v4 = vrot.slane %v5660_v43, %v7414_v55 }
 0x380   : > { %v4480_v57 = vsel %vm4471_vm14, %v4451_v14, %v4479_v0 }
 0x381   : > { %v4460_v58 = vsel %vm4324_vm8, %v4459_v4, %v4455_v48 }
 0x382   : > { %v4481_v45 = vsel %vm4473_vm15, %v4460_v58, %v4480_v57 }
 0x383   : > { %4485 = vst.msk [vmem:[%s7476_s18 + $0x8] sm:$0xff] %vm2994_vm5, %v4481_v45 }
 0x384   : > { %5683 = shalt.err (!%p5680_p3)
}
 0x385   : > { %s5684_s11 = scalar_lea.hbm %s7509_s6, 256  ;;  %s5688_s14 = scalar_lea.hbm %s7565_s5, 512 }
 0x386   : > { %p5685_p4 = scmp.ne.s32.totalorder %s7509_s6, %s5684_s11  ;;  %p5689_p9 = scmp.lt.u32.totalorder %s7509_s6, %s7565_s5 }
 0x387   : > { %p5690_p10 = scmp.lt.u32.totalorder %s5688_s14, %s5684_s11  ;;  %p5692_p12 = scmp.lt.u32.totalorder %s5684_s11, %s7509_s6 }
 0x388   : > { %p5686_p7 = pnand %p5685_p4, %p5811_p5 }
 0x389   : > { %p5691_p11 = por %p5690_p10, %p5689_p9 }
 0x38a   : > { %p5687_p8 = pneg %p5686_p7 }
 0x38b   : > { %p5693_p13 = por %p5692_p12, %p5691_p11 }
 0x38d   : > { %p5694_p0 = pnand %p5693_p13, %p5687_p8 }
 0x38f   : > { %5697 = shalt.err (!%p5694_p0)
}
 0x390   : > { %s5738_s17 = smov 128   ;;  %s5739_s18 = smov 8  }
 0x391   : > { %5488 = dma.vmem_to_hbm [thread:$0]  (%p5811_p5), %s7511_s24, 256, %s7509_s6, %s7519_s4, %s5738_s17, %s5738_s17, %s5739_s18  }
 0x392 PF: > { %p5494_p1 = scmp.ge.s32.totalorder %s5732_s23, 2  ;;  %s4515_s19 = sand.u32 1, %s5720_s20  }
 0x393   : > { %s4516_s26 = scalar_lea.sflag [#allocation6], %s4515_s19 }
 0x394   : > { %p5491_p2 = pnand %p5494_p1, %p5815_p6 }
 0x396   : > { %5715 = dma.done.wait (!%p5491_p2), %s4516_s26, 256  }
 0x397   : > { %5717 = vsyncadd (!%p5491_p2), %s4516_s26, 4294967040  ;;  %p17_p3 = scmp.ge.s32.totalorder %s5798_s25, 4   ;;  %s7568_s20 = smov %s5724_s21 }
 0x398   : > { %s7569_s21 = smov %s5728_s22  ;;  %s7570_s22 = smov %s5809_s28 }
 0x399   : > { %s7571_s23 = smov %s5798_s25  ;;  %19 = sbr.rel (!%p17_p3) target bundleno = 6 (0x6), region = 89 }
 0x3a0   :  { %4521 = vsyncpa [#allocation6], 1 }
 0x3a1   :  { %4523 = vsyncpa [#allocation6 + $0x1], 1 }

</bundles_post_ra>
